<compile_context>
chip_gen: v7x
topology: tpu7x:2x2x1
jax: 0.10.0
libtpu: 0.0.40
codegen_flags: <defaults>
</compile_context>

<pallas_src>
import functools

import jax
import jax.numpy as jnp
from jax import lax
from jax.experimental import pallas as pl
from jax.experimental.pallas import tpu as pltpu

_BN_EPS = 1e-5


# ---------------------------------------------------------------------------
# Hardware-aware knobs
# ---------------------------------------------------------------------------
def _query_vmem_capacity_bytes():
    try:
        return int(pltpu.get_tpu_info().vmem_capacity_bytes)
    except Exception:
        return 64 * 1024 * 1024  # conservative fallback (v7x per-core VMEM)


_VMEM_CAP = _query_vmem_capacity_bytes()
_VMEM_LIMIT = min(int(_VMEM_CAP * 3 // 4), 112 * 1024 * 1024)
# Bigger N tiles on 128-MiB-VMEM chips (v5e/v6e), smaller on v7x (64 MiB).
_FC_TN_TARGET = 2048 if _VMEM_CAP >= 100 * 1024 * 1024 else 1024
_ROW_TILE_TARGET = 512


def _mosaic_params(n_grid_axes):
    return pltpu.CompilerParams(
        dimension_semantics=("parallel",) * n_grid_axes,
        vmem_limit_bytes=_VMEM_LIMIT,
    )


def _round_up(x, m):
    return (x + m - 1) // m * m


def _pick_col_tile(n, target):
    """Largest divisor of n that is a multiple of 128 and <= target."""
    assert n % 128 == 0
    best, t = 128, 128
    while t <= n:
        if n % t == 0 and t <= target:
            best = t
        t += 128
    return best


def _pick_row_tile(m, target=_ROW_TILE_TARGET, align=16):
    return min(_round_up(m, align), target)


def _pad_rows(x, mp):
    m = x.shape[0]
    return x if mp == m else jnp.pad(x, ((0, mp - m), (0, 0)))


def _stream_spec(block_shape, index_map, n_buffers=2):
    """BlockSpec for a streamed operand; deeper multi-buffering when supported."""
    if n_buffers > 2 and hasattr(pl, "Buffered"):
        try:
            return pl.BlockSpec(block_shape, index_map,
                                pipeline_mode=pl.Buffered(n_buffers))
        except TypeError:  # older BlockSpec without pipeline_mode
            pass
    return pl.BlockSpec(block_shape, index_map)


# ---------------------------------------------------------------------------
# Kernel 1: fused  y = relu(BatchNorm1d(x @ W))  — grid over N tiles.
# M (batch) is NOT tiled, so per-column batch statistics stay exact.
# ---------------------------------------------------------------------------
def _fc_bn_relu_kernel(x_ref, w_ref, g_ref, b_ref, o_ref, *, inv_rows, valid_rows):
    z = jnp.dot(x_ref[...], w_ref[...], preferred_element_type=jnp.float32)
    # Padded batch rows of x are zero => they add nothing to the sums; divide by
    # the real batch size.  The Linear bias cancels inside BatchNorm.
    s = jnp.sum(z, axis=0, keepdims=True) * inv_rows
    q = jnp.sum(z * z, axis=0, keepdims=True) * inv_rows
    var = jnp.maximum(q - s * s, 0.0)
    y = (z - s) * lax.rsqrt(var + _BN_EPS) * g_ref[...] + b_ref[...]
    y = jnp.maximum(y, 0.0)
    if valid_rows < y.shape[0]:
        # Keep padded rows exactly zero so the next layer's BN stats stay exact.
        rid = lax.broadcasted_iota(jnp.int32, y.shape, 0)
        y = jnp.where(rid < valid_rows, y, 0.0)
    o_ref[...] = y.astype(o_ref.dtype)


def fc_bn_relu(x, w, gamma, beta, *, rows):
    mp, k = x.shape
    n = w.shape[1]
    tn = _pick_col_tile(n, _FC_TN_TARGET)
    grid = n // tn
    kernel = functools.partial(_fc_bn_relu_kernel,
                               inv_rows=1.0 / float(rows), valid_rows=rows)
    return pl.pallas_call(
        kernel,
        out_shape=jax.ShapeDtypeStruct((mp, n), jnp.bfloat16),
        grid=(grid,),
        in_specs=[
            pl.BlockSpec((mp, k), lambda j: (0, 0)),                 # resident acts
            _stream_spec((k, tn), lambda j: (0, j),
                         n_buffers=3 if grid >= 3 else 2),           # streamed weights
            pl.BlockSpec((1, tn), lambda j: (0, j)),
            pl.BlockSpec((1, tn), lambda j: (0, j)),
        ],
        out_specs=pl.BlockSpec((mp, tn), lambda j: (0, j)),
        compiler_params=_mosaic_params(1),
    )(x, w, gamma, beta)


# ---------------------------------------------------------------------------
# Kernel 2: deconv matmul (sub-pixel 3x3 conv) + per-tile BN partial statistics.
# ---------------------------------------------------------------------------
def _matmul_stats_kernel(p_ref, w_ref, z_ref, stat_ref):
    z = jnp.dot(p_ref[...], w_ref[...], preferred_element_type=jnp.float32)
    z_ref[...] = z
    s = jnp.sum(z, axis=0, keepdims=True)        # padded rows are zero -> harmless
    q = jnp.sum(z * z, axis=0, keepdims=True)
    stat_ref[...] = jnp.stack([s, q], axis=1)    # (1, 2, n)


def deconv_matmul_with_stats(patches, wmat):
    m, k = patches.shape
    n = wmat.shape[1]
    tm = _pick_row_tile(m)
    mp = _round_up(m, tm)
    patches = _pad_rows(patches, mp)
    grid = mp // tm
    z, stats = pl.pallas_call(
        _matmul_stats_kernel,
        out_shape=(jax.ShapeDtypeStruct((mp, n), jnp.float32),
                   jax.ShapeDtypeStruct((grid, 2, n), jnp.float32)),
        grid=(grid,),
        in_specs=[
            _stream_spec((tm, k), lambda i: (i, 0),
                         n_buffers=3 if grid >= 3 else 2),           # streamed patches
            pl.BlockSpec((k, n), lambda i: (0, 0)),                  # resident weight
        ],
        out_specs=(
            pl.BlockSpec((tm, n), lambda i: (i, 0)),
            pl.BlockSpec((1, 2, n), lambda i: (i, 0, 0)),
        ),
        compiler_params=_mosaic_params(1),
    )(patches, wmat)
    return z, stats


# ---------------------------------------------------------------------------
# Kernel 3: fused per-channel affine (global BN) + ReLU, bf16 out.
# ---------------------------------------------------------------------------
def _affine_relu_kernel(z_ref, sc_ref, sh_ref, o_ref):
    y = z_ref[...] * sc_ref[...] + sh_ref[...]
    o_ref[...] = jnp.maximum(y, 0.0).astype(o_ref.dtype)


def affine_relu(z, scale, shift):
    mp, n = z.shape
    tm = _pick_row_tile(mp)
    assert mp % tm == 0
    grid = mp // tm
    return pl.pallas_call(
        _affine_relu_kernel,
        out_shape=jax.ShapeDtypeStruct((mp, n), jnp.bfloat16),
        grid=(grid,),
        in_specs=[
            _stream_spec((tm, n), lambda i: (i, 0),
                         n_buffers=3 if grid >= 3 else 2),
            pl.BlockSpec((1, n), lambda i: (0, 0)),
            pl.BlockSpec((1, n), lambda i: (0, 0)),
        ],
        out_specs=pl.BlockSpec((tm, n), lambda i: (i, 0)),
        compiler_params=_mosaic_params(1),
    )(z, scale, shift)


# ---------------------------------------------------------------------------
# Kernel 4: final deconv matmul + bias + tanh (no BN).
# ---------------------------------------------------------------------------
def _matmul_bias_tanh_kernel(p_ref, w_ref, b_ref, o_ref):
    z = jnp.dot(p_ref[...], w_ref[...], preferred_element_type=jnp.float32)
    o_ref[...] = jnp.tanh(z + b_ref[...])


def matmul_bias_tanh(patches, wmat, bias):
    m, k = patches.shape
    n = wmat.shape[1]
    tm = _pick_row_tile(m)
    mp = _round_up(m, tm)
    patches = _pad_rows(patches, mp)
    grid = mp // tm
    return pl.pallas_call(
        _matmul_bias_tanh_kernel,
        out_shape=jax.ShapeDtypeStruct((mp, n), jnp.float32),
        grid=(grid,),
        in_specs=[
            _stream_spec((tm, k), lambda i: (i, 0),
                         n_buffers=3 if grid >= 3 else 2),
            pl.BlockSpec((k, n), lambda i: (0, 0)),
            pl.BlockSpec((1, n), lambda i: (0, 0)),
        ],
        out_specs=pl.BlockSpec((tm, n), lambda i: (i, 0)),
        compiler_params=_mosaic_params(1),
    )(patches, wmat, bias)


# ---------------------------------------------------------------------------
# Glue (pure indexing): 3x3 im2col + weight rearrangement for the sub-pixel
# (pixel-shuffle) lowering of ConvTranspose2d(k=4, stride=2, pad=1).
# ---------------------------------------------------------------------------
def _im2col_3x3(x_nhwc):
    # TODO(synk): pull the 3x3 shifted reads into the Pallas kernel (pl.ds on a
    # padded VMEM block) to avoid materializing the 9x patch tensor in HBM.
    b, h, w, c = x_nhwc.shape
    xp = jnp.pad(x_nhwc, ((0, 0), (1, 1), (1, 1), (0, 0)))
    cols = [xp[:, ry:ry + h, rx:rx + w, :] for ry in range(3) for rx in range(3)]
    return jnp.concatenate(cols, axis=-1).reshape(b * h * w, 9 * c)


def _deconv_to_shuffle_matmul(w):
    """ConvTranspose2d(Cin,Cout,4,stride=2,pad=1) == 3x3 conv (pad=1) producing
    4*Cout sub-pixel channels, followed by PixelShuffle(2).
    Returns the (9*Cin, 4*Cout) matmul weight; rows ordered (ry,rx,ci),
    columns ordered (py,px,co)."""
    cin, cout, kh, kw = w.shape
    wm = jnp.zeros((3, 3, cin, 2, 2, cout), w.dtype)
    for ry in range(3):
        for py in range(2):
            ky = py + 3 - 2 * ry
            if not 0 <= ky < kh:
                continue
            for rx in range(3):
                for px in range(2):
                    kx = px + 3 - 2 * rx
                    if not 0 <= kx < kw:
                        continue
                    wm = wm.at[ry, rx, :, py, px, :].set(w[:, :, ky, kx])
    return wm.reshape(9 * cin, 4 * cout)


# ---------------------------------------------------------------------------
# Parameters (deterministic, matching initialize_weights: N(0, 0.02), zero bias,
# BatchNorm defaults gamma=1, beta=0), plus one-time preprocessing.
# ---------------------------------------------------------------------------
def init_params(key, input_dim, output_dim, input_size):
    s4 = input_size // 4
    n2 = 128 * s4 * s4
    k = jax.random.split(key, 4)
    return {
        "fc1_w": 0.02 * jax.random.normal(k[0], (input_dim, 1024), jnp.float32),
        "fc1_b": jnp.zeros((1024,), jnp.float32),
        "bn1_g": jnp.ones((1024,), jnp.float32),
        "bn1_b": jnp.zeros((1024,), jnp.float32),
        "fc2_w": 0.02 * jax.random.normal(k[1], (1024, n2), jnp.float32),
        "fc2_b": jnp.zeros((n2,), jnp.float32),
        "bn2_g": jnp.ones((n2,), jnp.float32),
        "bn2_b": jnp.zeros((n2,), jnp.float32),
        "dc1_w": 0.02 * jax.random.normal(k[2], (128, 64, 4, 4), jnp.float32),
        "dc1_b": jnp.zeros((64,), jnp.float32),
        "bn3_g": jnp.ones((64,), jnp.float32),
        "bn3_b": jnp.zeros((64,), jnp.float32),
        "dc2_w": 0.02 * jax.random.normal(k[3], (64, output_dim, 4, 4), jnp.float32),
        "dc2_b": jnp.zeros((output_dim,), jnp.float32),
    }


def prepare_params(params, *, input_size, output_dim):
    """One-time preprocessing: bf16 weights, fc2 columns permuted to NHWC order,
    deconv weights rearranged for the sub-pixel matmul.  Biases feeding a
    BatchNorm are dropped (they cancel; also zero-initialized)."""
    s4 = input_size // 4
    n2 = params["fc2_w"].shape[1]
    assert n2 == 128 * s4 * s4

    def perm_cols(mat):  # fc2 output columns: (c, h, w) -> (h, w, c)  [NHWC]
        k = mat.shape[0]
        return mat.reshape(k, 128, s4, s4).transpose(0, 2, 3, 1).reshape(k, n2)

    def perm_vec(v):
        return v.reshape(128, s4, s4).transpose(1, 2, 0).reshape(n2)

    return {
        "fc1_w": params["fc1_w"].astype(jnp.bfloat16),
        "bn1_g": params["bn1_g"].reshape(1, -1).astype(jnp.float32),
        "bn1_b": params["bn1_b"].reshape(1, -1).astype(jnp.float32),
        "fc2_w": perm_cols(params["fc2_w"]).astype(jnp.bfloat16),
        "bn2_g": perm_vec(params["bn2_g"]).reshape(1, -1).astype(jnp.float32),
        "bn2_b": perm_vec(params["bn2_b"]).reshape(1, -1).astype(jnp.float32),
        "dc1_w": _deconv_to_shuffle_matmul(params["dc1_w"]).astype(jnp.bfloat16),
        "bn3_g": params["bn3_g"].astype(jnp.float32),
        "bn3_b": params["bn3_b"].astype(jnp.float32),
        "dc2_w": _deconv_to_shuffle_matmul(params["dc2_w"]).astype(jnp.bfloat16),
        "dc2_b": jnp.tile(params["dc2_b"], 4).reshape(1, 4 * output_dim).astype(jnp.float32),
    }


# ---------------------------------------------------------------------------
# Forward pass
# ---------------------------------------------------------------------------
def generator_forward(prep, z, *, batch, input_size, output_dim):
    b = batch
    s4, s2 = input_size // 4, input_size // 2

    # ---- fc block (BatchNorm1d over the batch; PyTorch train-mode statistics) ----
    mp = _round_up(b, 8)
    x0 = jnp.pad(z.astype(jnp.bfloat16), ((0, mp - b), (0, 0)))
    h1 = fc_bn_relu(x0, prep["fc1_w"], prep["bn1_g"], prep["bn1_b"], rows=b)
    h2 = fc_bn_relu(h1, prep["fc2_w"], prep["bn2_g"], prep["bn2_b"], rows=b)
    # fc2 columns are pre-permuted to NHWC order -> plain reshape, no transpose.
    x = h2[:b].reshape(b, s4, s4, 128)

    # ---- deconv1: ConvTranspose2d(128,64,4,2,1) + BatchNorm2d + ReLU -------------
    c1 = prep["dc1_w"].shape[1] // 4            # 64
    m1 = b * s4 * s4
    p1 = _im2col_3x3(x)                         # (m1, 9*128) bf16
    z1, st1 = deconv_matmul_with_stats(p1, prep["dc1_w"])      # (mp1, 4*c1) f32
    # Global BN2d statistics: reduce per-tile partial sums over all M tiles and
    # the 4 sub-pixel column groups -> exact per-channel mean/var over B*oH*oW.
    col_sum = jnp.sum(st1[:, 0, :], axis=0).reshape(4, c1).sum(axis=0)
    col_sq = jnp.sum(st1[:, 1, :], axis=0).reshape(4, c1).sum(axis=0)
    cnt = 4.0 * m1
    mean = col_sum / cnt
    var = jnp.maximum(col_sq / cnt - mean * mean, 0.0)
    scale_c = prep["bn3_g"] * lax.rsqrt(var + _BN_EPS)
    shift_c = prep["bn3_b"] - mean * scale_c
    scale = jnp.tile(scale_c, 4).reshape(1, 4 * c1)
    shift = jnp.tile(shift_c, 4).reshape(1, 4 * c1)
    y1 = affine_relu(z1, scale, shift)          # (mp1, 4*c1) bf16
    # pixel shuffle -> NHWC (b, s2, s2, c1)
    x1 = (y1[:m1].reshape(b, s4, s4, 2, 2, c1)
          .transpose(0, 1, 3, 2, 4, 5).reshape(b, s2, s2, c1))

    # ---- deconv2: ConvTranspose2d(64,out_dim,4,2,1) + Tanh -----------------------
    m2 = b * s2 * s2
    p2 = _im2col_3x3(x1)                        # (m2, 9*64) bf16
    y2 = matmul_bias_tanh(p2, prep["dc2_w"], prep["dc2_b"])    # (mp2, 4*out) f32
    out = (y2[:m2].reshape(b, s2, s2, 2, 2, output_dim)
           .transpose(0, 5, 1, 3, 2, 4)
           .reshape(b, output_dim, input_size, input_size))    # NCHW
    return out


if __name__ == "__main__":
    INPUT_DIM = 32      # latent dim (PyTorch default 100; small for test)
    OUTPUT_DIM = 1
    INPUT_SIZE = 16     # output image is INPUT_SIZE x INPUT_SIZE
    BATCH = 2

    key = jax.random.PRNGKey(0)
    pkey, zkey = jax.random.split(key)
    params = init_params(pkey, INPUT_DIM, OUTPUT_DIM, INPUT_SIZE)
    prep = prepare_params(params, input_size=INPUT_SIZE, output_dim=OUTPUT_DIM)
    z = jax.random.normal(zkey, (BATCH, INPUT_DIM), jnp.float32)

    fwd = jax.jit(functools.partial(generator_forward, batch=BATCH,
                                    input_size=INPUT_SIZE, output_dim=OUTPUT_DIM))
    out = fwd(prep, z)
    jax.block_until_ready(out)

    assert out.shape == (BATCH, OUTPUT_DIM, INPUT_SIZE, INPUT_SIZE), out.shape
    assert bool(jnp.all(jnp.isfinite(out)))
    assert bool(jnp.all(jnp.abs(out) <= 1.0 + 1e-6))  # tanh range
    print("KERNEL_OK")
</pallas_src>

<mosaic_0001>
module attributes {stable_mosaic.version = 11 : i64} {
  func.func @_fc_bn_relu_kernel(%arg0: i32, %arg1: memref<8x1024xbf16, #tpu.memory_space<vmem>>, %arg2: memref<1024x1024xbf16, #tpu.memory_space<vmem>>, %arg3: memref<1x1024xf32, #tpu.memory_space<vmem>>, %arg4: memref<1x1024xf32, #tpu.memory_space<vmem>>, %arg5: memref<8x1024xbf16, #tpu.memory_space<vmem>>) attributes {dimension_semantics = [#tpu.dimension_semantics<parallel>], iteration_bounds = array<i64: 2>, scalar_prefetch = 0 : i64, scratch_operands = 0 : i64, tpu.core_type = #tpu.core_type<tc>, window_params = [{pipeline_mode = #tpu.pipeline_mode<synchronous>, transform_indices = @transform_0, window_bounds = array<i64: 8, 1024>}, {transform_indices = @transform_1, window_bounds = array<i64: 1024, 1024>}, {transform_indices = @transform_2, window_bounds = array<i64: 1, 1024>}, {transform_indices = @transform_3, window_bounds = array<i64: 1, 1024>}, {transform_indices = @transform_4, window_bounds = array<i64: 8, 1024>}]} {
    %c0 = arith.constant 0 : index
    %c0_0 = arith.constant 0 : index
    %0 = vector.load %arg1[%c0, %c0_0] : memref<8x1024xbf16, #tpu.memory_space<vmem>>, vector<8x1024xbf16>
    %c0_1 = arith.constant 0 : index
    %c0_2 = arith.constant 0 : index
    %1 = vector.load %arg2[%c0_1, %c0_2] : memref<1024x1024xbf16, #tpu.memory_space<vmem>>, vector<1024x1024xbf16>
    %cst = arith.constant dense<0.000000e+00> : vector<8x1024xf32>
    %2 = tpu.matmul %0, %1, %cst {dimension_numbers = #tpu.dot_dimension_numbers<[1], [0], [0], [1], [0, 0, 1, 1], [], []>} : vector<8x1024xbf16>, vector<1024x1024xbf16>, vector<8x1024xf32> -> vector<8x1024xf32>
    %cst_3 = arith.constant dense<0.000000e+00> : vector<1024xf32>
    %3 = vector.multi_reduction <add>, %2, %cst_3 [0] : vector<8x1024xf32> to vector<1024xf32>
    %4 = vector.shape_cast %3 : vector<1024xf32> to vector<1x1024xf32>
    %cst_4 = arith.constant 5.000000e-01 : f32
    %5 = vector.broadcast %cst_4 : f32 to vector<1x1024xf32>
    %6 = arith.mulf %4, %5 : vector<1x1024xf32>
    %7 = arith.mulf %2, %2 : vector<8x1024xf32>
    %cst_5 = arith.constant dense<0.000000e+00> : vector<1024xf32>
    %8 = vector.multi_reduction <add>, %7, %cst_5 [0] : vector<8x1024xf32> to vector<1024xf32>
    %9 = vector.shape_cast %8 : vector<1024xf32> to vector<1x1024xf32>
    %cst_6 = arith.constant 5.000000e-01 : f32
    %10 = vector.broadcast %cst_6 : f32 to vector<1x1024xf32>
    %11 = arith.mulf %9, %10 : vector<1x1024xf32>
    %12 = arith.mulf %6, %6 : vector<1x1024xf32>
    %13 = arith.subf %11, %12 : vector<1x1024xf32>
    %cst_7 = arith.constant 0.000000e+00 : f32
    %14 = vector.broadcast %cst_7 : f32 to vector<1x1024xf32>
    %15 = arith.maximumf %13, %14 : vector<1x1024xf32>
    %16 = vector.broadcast %6 : vector<1x1024xf32> to vector<8x1024xf32>
    %17 = arith.subf %2, %16 : vector<8x1024xf32>
    %cst_8 = arith.constant 9.99999974E-6 : f32
    %18 = vector.broadcast %cst_8 : f32 to vector<1x1024xf32>
    %19 = arith.addf %15, %18 : vector<1x1024xf32>
    %20 = math.rsqrt %19 : vector<1x1024xf32>
    %21 = vector.broadcast %20 : vector<1x1024xf32> to vector<8x1024xf32>
    %22 = arith.mulf %17, %21 : vector<8x1024xf32>
    %c0_9 = arith.constant 0 : index
    %c0_10 = arith.constant 0 : index
    %23 = vector.load %arg3[%c0_9, %c0_10] : memref<1x1024xf32, #tpu.memory_space<vmem>>, vector<1x1024xf32>
    %24 = vector.broadcast %23 : vector<1x1024xf32> to vector<8x1024xf32>
    %25 = arith.mulf %22, %24 : vector<8x1024xf32>
    %c0_11 = arith.constant 0 : index
    %c0_12 = arith.constant 0 : index
    %26 = vector.load %arg4[%c0_11, %c0_12] : memref<1x1024xf32, #tpu.memory_space<vmem>>, vector<1x1024xf32>
    %27 = vector.broadcast %26 : vector<1x1024xf32> to vector<8x1024xf32>
    %28 = arith.addf %25, %27 : vector<8x1024xf32>
    %cst_13 = arith.constant 0.000000e+00 : f32
    %29 = vector.broadcast %cst_13 : f32 to vector<8x1024xf32>
    %30 = arith.maximumf %28, %29 : vector<8x1024xf32>
    %31 = tpu.iota {dimensions = array<i32: 0>} : vector<8x1024xi32>
    %c2_i32 = arith.constant 2 : i32
    %32 = vector.broadcast %c2_i32 : i32 to vector<8x1024xi32>
    %33 = arith.cmpi slt, %31, %32 : vector<8x1024xi32>
    %cst_14 = arith.constant 0.000000e+00 : f32
    %34 = vector.broadcast %cst_14 : f32 to vector<8x1024xf32>
    %35 = arith.select %33, %30, %34 : vector<8x1024xi1>, vector<8x1024xf32>
    %36 = arith.truncf %35 : vector<8x1024xf32> to vector<8x1024xbf16>
    %c0_15 = arith.constant 0 : index
    %c0_16 = arith.constant 0 : index
    %37 = vector.load %arg5[%c0_15, %c0_16] : memref<8x1024xbf16, #tpu.memory_space<vmem>>, vector<8x1024xbf16>
    tpu.vector_store %arg5[%c0_15, %c0_16], %36 {strides = array<i32>} : memref<8x1024xbf16, #tpu.memory_space<vmem>>, vector<8x1024xbf16>,
    return
  }
  func.func @transform_0(%arg0: i32) -> (i32, i32) {
    %c0_i32 = arith.constant 0 : i32
    %c0_i32_0 = arith.constant 0 : i32
    %c0_i32_1 = arith.constant 0 : i32
    return %c0_i32, %c0_i32_0 : i32, i32
  }
  func.func @transform_1(%arg0: i32) -> (i32, i32) {
    %c0_i32 = arith.constant 0 : i32
    %c0_i32_0 = arith.constant 0 : i32
    return %c0_i32, %arg0 : i32, i32
  }
  func.func @transform_2(%arg0: i32) -> (i32, i32) {
    %c0_i32 = arith.constant 0 : i32
    %c0_i32_0 = arith.constant 0 : i32
    return %c0_i32, %arg0 : i32, i32
  }
  func.func @transform_3(%arg0: i32) -> (i32, i32) {
    %c0_i32 = arith.constant 0 : i32
    %c0_i32_0 = arith.constant 0 : i32
    return %c0_i32, %arg0 : i32, i32
  }
  func.func @transform_4(%arg0: i32) -> (i32, i32) {
    %c0_i32 = arith.constant 0 : i32
    %c0_i32_0 = arith.constant 0 : i32
    return %c0_i32, %arg0 : i32, i32
  }
}

module attributes {stable_mosaic.version = 11 : i64} {
  func.func @_fc_bn_relu_kernel(%arg0: i32, %arg1: memref<8x32xbf16, #tpu.memory_space<vmem>>, %arg2: memref<32x1024xbf16, #tpu.memory_space<vmem>>, %arg3: memref<1x1024xf32, #tpu.memory_space<vmem>>, %arg4: memref<1x1024xf32, #tpu.memory_space<vmem>>, %arg5: memref<8x1024xbf16, #tpu.memory_space<vmem>>) attributes {dimension_semantics = [#tpu.dimension_semantics<parallel>], iteration_bounds = array<i64: 1>, scalar_prefetch = 0 : i64, scratch_operands = 0 : i64, tpu.core_type = #tpu.core_type<tc>, window_params = [{pipeline_mode = #tpu.pipeline_mode<synchronous>, transform_indices = @transform_0, window_bounds = array<i64: 8, 32>}, {transform_indices = @transform_1, window_bounds = array<i64: 32, 1024>}, {transform_indices = @transform_2, window_bounds = array<i64: 1, 1024>}, {transform_indices = @transform_3, window_bounds = array<i64: 1, 1024>}, {transform_indices = @transform_4, window_bounds = array<i64: 8, 1024>}]} {
    %c0 = arith.constant 0 : index
    %c0_0 = arith.constant 0 : index
    %0 = vector.load %arg1[%c0, %c0_0] : memref<8x32xbf16, #tpu.memory_space<vmem>>, vector<8x32xbf16>
    %c0_1 = arith.constant 0 : index
    %c0_2 = arith.constant 0 : index
    %1 = vector.load %arg2[%c0_1, %c0_2] : memref<32x1024xbf16, #tpu.memory_space<vmem>>, vector<32x1024xbf16>
    %cst = arith.constant dense<0.000000e+00> : vector<8x1024xf32>
    %2 = tpu.matmul %0, %1, %cst {dimension_numbers = #tpu.dot_dimension_numbers<[1], [0], [0], [1], [0, 0, 1, 1], [], []>} : vector<8x32xbf16>, vector<32x1024xbf16>, vector<8x1024xf32> -> vector<8x1024xf32>
    %cst_3 = arith.constant dense<0.000000e+00> : vector<1024xf32>
    %3 = vector.multi_reduction <add>, %2, %cst_3 [0] : vector<8x1024xf32> to vector<1024xf32>
    %4 = vector.shape_cast %3 : vector<1024xf32> to vector<1x1024xf32>
    %cst_4 = arith.constant 5.000000e-01 : f32
    %5 = vector.broadcast %cst_4 : f32 to vector<1x1024xf32>
    %6 = arith.mulf %4, %5 : vector<1x1024xf32>
    %7 = arith.mulf %2, %2 : vector<8x1024xf32>
    %cst_5 = arith.constant dense<0.000000e+00> : vector<1024xf32>
    %8 = vector.multi_reduction <add>, %7, %cst_5 [0] : vector<8x1024xf32> to vector<1024xf32>
    %9 = vector.shape_cast %8 : vector<1024xf32> to vector<1x1024xf32>
    %cst_6 = arith.constant 5.000000e-01 : f32
    %10 = vector.broadcast %cst_6 : f32 to vector<1x1024xf32>
    %11 = arith.mulf %9, %10 : vector<1x1024xf32>
    %12 = arith.mulf %6, %6 : vector<1x1024xf32>
    %13 = arith.subf %11, %12 : vector<1x1024xf32>
    %cst_7 = arith.constant 0.000000e+00 : f32
    %14 = vector.broadcast %cst_7 : f32 to vector<1x1024xf32>
    %15 = arith.maximumf %13, %14 : vector<1x1024xf32>
    %16 = vector.broadcast %6 : vector<1x1024xf32> to vector<8x1024xf32>
    %17 = arith.subf %2, %16 : vector<8x1024xf32>
    %cst_8 = arith.constant 9.99999974E-6 : f32
    %18 = vector.broadcast %cst_8 : f32 to vector<1x1024xf32>
    %19 = arith.addf %15, %18 : vector<1x1024xf32>
    %20 = math.rsqrt %19 : vector<1x1024xf32>
    %21 = vector.broadcast %20 : vector<1x1024xf32> to vector<8x1024xf32>
    %22 = arith.mulf %17, %21 : vector<8x1024xf32>
    %c0_9 = arith.constant 0 : index
    %c0_10 = arith.constant 0 : index
    %23 = vector.load %arg3[%c0_9, %c0_10] : memref<1x1024xf32, #tpu.memory_space<vmem>>, vector<1x1024xf32>
    %24 = vector.broadcast %23 : vector<1x1024xf32> to vector<8x1024xf32>
    %25 = arith.mulf %22, %24 : vector<8x1024xf32>
    %c0_11 = arith.constant 0 : index
    %c0_12 = arith.constant 0 : index
    %26 = vector.load %arg4[%c0_11, %c0_12] : memref<1x1024xf32, #tpu.memory_space<vmem>>, vector<1x1024xf32>
    %27 = vector.broadcast %26 : vector<1x1024xf32> to vector<8x1024xf32>
    %28 = arith.addf %25, %27 : vector<8x1024xf32>
    %cst_13 = arith.constant 0.000000e+00 : f32
    %29 = vector.broadcast %cst_13 : f32 to vector<8x1024xf32>
    %30 = arith.maximumf %28, %29 : vector<8x1024xf32>
    %31 = tpu.iota {dimensions = array<i32: 0>} : vector<8x1024xi32>
    %c2_i32 = arith.constant 2 : i32
    %32 = vector.broadcast %c2_i32 : i32 to vector<8x1024xi32>
    %33 = arith.cmpi slt, %31, %32 : vector<8x1024xi32>
    %cst_14 = arith.constant 0.000000e+00 : f32
    %34 = vector.broadcast %cst_14 : f32 to vector<8x1024xf32>
    %35 = arith.select %33, %30, %34 : vector<8x1024xi1>, vector<8x1024xf32>
    %36 = arith.truncf %35 : vector<8x1024xf32> to vector<8x1024xbf16>
    %c0_15 = arith.constant 0 : index
    %c0_16 = arith.constant 0 : index
    %37 = vector.load %arg5[%c0_15, %c0_16] : memref<8x1024xbf16, #tpu.memory_space<vmem>>, vector<8x1024xbf16>
    tpu.vector_store %arg5[%c0_15, %c0_16], %36 {strides = array<i32>} : memref<8x1024xbf16, #tpu.memory_space<vmem>>, vector<8x1024xbf16>,
    return
  }
  func.func @transform_0(%arg0: i32) -> (i32, i32) {
    %c0_i32 = arith.constant 0 : i32
    %c0_i32_0 = arith.constant 0 : i32
    %c0_i32_1 = arith.constant 0 : i32
    return %c0_i32, %c0_i32_0 : i32, i32
  }
  func.func @transform_1(%arg0: i32) -> (i32, i32) {
    %c0_i32 = arith.constant 0 : i32
    %c0_i32_0 = arith.constant 0 : i32
    return %c0_i32, %arg0 : i32, i32
  }
  func.func @transform_2(%arg0: i32) -> (i32, i32) {
    %c0_i32 = arith.constant 0 : i32
    %c0_i32_0 = arith.constant 0 : i32
    return %c0_i32, %arg0 : i32, i32
  }
  func.func @transform_3(%arg0: i32) -> (i32, i32) {
    %c0_i32 = arith.constant 0 : i32
    %c0_i32_0 = arith.constant 0 : i32
    return %c0_i32, %arg0 : i32, i32
  }
  func.func @transform_4(%arg0: i32) -> (i32, i32) {
    %c0_i32 = arith.constant 0 : i32
    %c0_i32_0 = arith.constant 0 : i32
    return %c0_i32, %arg0 : i32, i32
  }
}

module attributes {stable_mosaic.version = 11 : i64} {
  func.func @_matmul_stats_kernel(%arg0: i32, %arg1: memref<32x1152xbf16, #tpu.memory_space<vmem>>, %arg2: memref<1152x256xbf16, #tpu.memory_space<vmem>>, %arg3: memref<32x256xf32, #tpu.memory_space<vmem>>, %arg4: memref<1x2x256xf32, #tpu.memory_space<vmem>>) attributes {dimension_semantics = [#tpu.dimension_semantics<parallel>], iteration_bounds = array<i64: 1>, scalar_prefetch = 0 : i64, scratch_operands = 0 : i64, tpu.core_type = #tpu.core_type<tc>, window_params = [{transform_indices = @transform_0, window_bounds = array<i64: 32, 1152>}, {pipeline_mode = #tpu.pipeline_mode<synchronous>, transform_indices = @transform_1, window_bounds = array<i64: 1152, 256>}, {transform_indices = @transform_2, window_bounds = array<i64: 32, 256>}, {transform_indices = @transform_3, window_bounds = array<i64: 1, 2, 256>}]} {
    %c0 = arith.constant 0 : index
    %c0_0 = arith.constant 0 : index
    %0 = vector.load %arg1[%c0, %c0_0] : memref<32x1152xbf16, #tpu.memory_space<vmem>>, vector<32x1152xbf16>
    %c0_1 = arith.constant 0 : index
    %c0_2 = arith.constant 0 : index
    %1 = vector.load %arg2[%c0_1, %c0_2] : memref<1152x256xbf16, #tpu.memory_space<vmem>>, vector<1152x256xbf16>
    %cst = arith.constant dense<0.000000e+00> : vector<32x256xf32>
    %2 = tpu.matmul %0, %1, %cst {dimension_numbers = #tpu.dot_dimension_numbers<[1], [0], [0], [1], [0, 0, 1, 1], [], []>} : vector<32x1152xbf16>, vector<1152x256xbf16>, vector<32x256xf32> -> vector<32x256xf32>
    %c0_3 = arith.constant 0 : index
    %c0_4 = arith.constant 0 : index
    %3 = vector.load %arg3[%c0_3, %c0_4] : memref<32x256xf32, #tpu.memory_space<vmem>>, vector<32x256xf32>
    tpu.vector_store %arg3[%c0_3, %c0_4], %2 {strides = array<i32>} : memref<32x256xf32, #tpu.memory_space<vmem>>, vector<32x256xf32>,
    %cst_5 = arith.constant dense<0.000000e+00> : vector<256xf32>
    %4 = vector.multi_reduction <add>, %2, %cst_5 [0] : vector<32x256xf32> to vector<256xf32>
    %5 = vector.shape_cast %4 : vector<256xf32> to vector<1x256xf32>
    %6 = arith.mulf %2, %2 : vector<32x256xf32>
    %cst_6 = arith.constant dense<0.000000e+00> : vector<256xf32>
    %7 = vector.multi_reduction <add>, %6, %cst_6 [0] : vector<32x256xf32> to vector<256xf32>
    %8 = vector.shape_cast %7 : vector<256xf32> to vector<1x256xf32>
    %9 = vector.shape_cast %5 : vector<1x256xf32> to vector<1x1x256xf32>
    %10 = vector.shape_cast %8 : vector<1x256xf32> to vector<1x1x256xf32>
    %11 = tpu.concatenate %9, %10 in 1 : vector<1x1x256xf32>, vector<1x1x256xf32> -> vector<1x2x256xf32>
    %c0_7 = arith.constant 0 : index
    %c0_8 = arith.constant 0 : index
    %c0_9 = arith.constant 0 : index
    %12 = vector.load %arg4[%c0_7, %c0_8, %c0_9] : memref<1x2x256xf32, #tpu.memory_space<vmem>>, vector<1x2x256xf32>
    tpu.vector_store %arg4[%c0_7, %c0_8, %c0_9], %11 {strides = array<i32>} : memref<1x2x256xf32, #tpu.memory_space<vmem>>, vector<1x2x256xf32>,
    return
  }
  func.func @transform_0(%arg0: i32) -> (i32, i32) {
    %c0_i32 = arith.constant 0 : i32
    %c0_i32_0 = arith.constant 0 : i32
    return %arg0, %c0_i32 : i32, i32
  }
  func.func @transform_1(%arg0: i32) -> (i32, i32) {
    %c0_i32 = arith.constant 0 : i32
    %c0_i32_0 = arith.constant 0 : i32
    %c0_i32_1 = arith.constant 0 : i32
    return %c0_i32, %c0_i32_0 : i32, i32
  }
  func.func @transform_2(%arg0: i32) -> (i32, i32) {
    %c0_i32 = arith.constant 0 : i32
    %c0_i32_0 = arith.constant 0 : i32
    return %arg0, %c0_i32 : i32, i32
  }
  func.func @transform_3(%arg0: i32) -> (i32, i32, i32) {
    %c0_i32 = arith.constant 0 : i32
    %c0_i32_0 = arith.constant 0 : i32
    %c0_i32_1 = arith.constant 0 : i32
    return %arg0, %c0_i32, %c0_i32_0 : i32, i32, i32
  }
}

module attributes {stable_mosaic.version = 11 : i64} {
  func.func @_affine_relu_kernel(%arg0: i32, %arg1: memref<32x256xf32, #tpu.memory_space<vmem>>, %arg2: memref<1x256xf32, #tpu.memory_space<vmem>>, %arg3: memref<1x256xf32, #tpu.memory_space<vmem>>, %arg4: memref<32x256xbf16, #tpu.memory_space<vmem>>) attributes {dimension_semantics = [#tpu.dimension_semantics<parallel>], iteration_bounds = array<i64: 1>, scalar_prefetch = 0 : i64, scratch_operands = 0 : i64, tpu.core_type = #tpu.core_type<tc>, window_params = [{transform_indices = @transform_0, window_bounds = array<i64: 32, 256>}, {pipeline_mode = #tpu.pipeline_mode<synchronous>, transform_indices = @transform_1, window_bounds = array<i64: 1, 256>}, {pipeline_mode = #tpu.pipeline_mode<synchronous>, transform_indices = @transform_2, window_bounds = array<i64: 1, 256>}, {transform_indices = @transform_3, window_bounds = array<i64: 32, 256>}]} {
    %c0 = arith.constant 0 : index
    %c0_0 = arith.constant 0 : index
    %0 = vector.load %arg1[%c0, %c0_0] : memref<32x256xf32, #tpu.memory_space<vmem>>, vector<32x256xf32>
    %c0_1 = arith.constant 0 : index
    %c0_2 = arith.constant 0 : index
    %1 = vector.load %arg2[%c0_1, %c0_2] : memref<1x256xf32, #tpu.memory_space<vmem>>, vector<1x256xf32>
    %2 = vector.broadcast %1 : vector<1x256xf32> to vector<32x256xf32>
    %3 = arith.mulf %0, %2 : vector<32x256xf32>
    %c0_3 = arith.constant 0 : index
    %c0_4 = arith.constant 0 : index
    %4 = vector.load %arg3[%c0_3, %c0_4] : memref<1x256xf32, #tpu.memory_space<vmem>>, vector<1x256xf32>
    %5 = vector.broadcast %4 : vector<1x256xf32> to vector<32x256xf32>
    %6 = arith.addf %3, %5 : vector<32x256xf32>
    %cst = arith.constant 0.000000e+00 : f32
    %7 = vector.broadcast %cst : f32 to vector<32x256xf32>
    %8 = arith.maximumf %6, %7 : vector<32x256xf32>
    %9 = arith.truncf %8 : vector<32x256xf32> to vector<32x256xbf16>
    %c0_5 = arith.constant 0 : index
    %c0_6 = arith.constant 0 : index
    %10 = vector.load %arg4[%c0_5, %c0_6] : memref<32x256xbf16, #tpu.memory_space<vmem>>, vector<32x256xbf16>
    tpu.vector_store %arg4[%c0_5, %c0_6], %9 {strides = array<i32>} : memref<32x256xbf16, #tpu.memory_space<vmem>>, vector<32x256xbf16>,
    return
  }
  func.func @transform_0(%arg0: i32) -> (i32, i32) {
    %c0_i32 = arith.constant 0 : i32
    %c0_i32_0 = arith.constant 0 : i32
    return %arg0, %c0_i32 : i32, i32
  }
  func.func @transform_1(%arg0: i32) -> (i32, i32) {
    %c0_i32 = arith.constant 0 : i32
    %c0_i32_0 = arith.constant 0 : i32
    %c0_i32_1 = arith.constant 0 : i32
    return %c0_i32, %c0_i32_0 : i32, i32
  }
  func.func @transform_2(%arg0: i32) -> (i32, i32) {
    %c0_i32 = arith.constant 0 : i32
    %c0_i32_0 = arith.constant 0 : i32
    %c0_i32_1 = arith.constant 0 : i32
    return %c0_i32, %c0_i32_0 : i32, i32
  }
  func.func @transform_3(%arg0: i32) -> (i32, i32) {
    %c0_i32 = arith.constant 0 : i32
    %c0_i32_0 = arith.constant 0 : i32
    return %arg0, %c0_i32 : i32, i32
  }
}

module attributes {stable_mosaic.version = 11 : i64} {
  func.func @_matmul_bias_tanh_kernel(%arg0: i32, %arg1: memref<128x576xbf16, #tpu.memory_space<vmem>>, %arg2: memref<576x4xbf16, #tpu.memory_space<vmem>>, %arg3: memref<1x4xf32, #tpu.memory_space<vmem>>, %arg4: memref<128x4xf32, #tpu.memory_space<vmem>>) attributes {dimension_semantics = [#tpu.dimension_semantics<parallel>], iteration_bounds = array<i64: 1>, scalar_prefetch = 0 : i64, scratch_operands = 0 : i64, tpu.core_type = #tpu.core_type<tc>, window_params = [{transform_indices = @transform_0, window_bounds = array<i64: 128, 576>}, {pipeline_mode = #tpu.pipeline_mode<synchronous>, transform_indices = @transform_1, window_bounds = array<i64: 576, 4>}, {pipeline_mode = #tpu.pipeline_mode<synchronous>, transform_indices = @transform_2, window_bounds = array<i64: 1, 4>}, {transform_indices = @transform_3, window_bounds = array<i64: 128, 4>}]} {
    %c0 = arith.constant 0 : index
    %c0_0 = arith.constant 0 : index
    %0 = vector.load %arg1[%c0, %c0_0] : memref<128x576xbf16, #tpu.memory_space<vmem>>, vector<128x576xbf16>
    %c0_1 = arith.constant 0 : index
    %c0_2 = arith.constant 0 : index
    %1 = vector.load %arg2[%c0_1, %c0_2] : memref<576x4xbf16, #tpu.memory_space<vmem>>, vector<576x4xbf16>
    %cst = arith.constant dense<0.000000e+00> : vector<128x4xf32>
    %2 = tpu.matmul %0, %1, %cst {dimension_numbers = #tpu.dot_dimension_numbers<[1], [0], [0], [1], [0, 0, 1, 1], [], []>} : vector<128x576xbf16>, vector<576x4xbf16>, vector<128x4xf32> -> vector<128x4xf32>
    %c0_3 = arith.constant 0 : index
    %c0_4 = arith.constant 0 : index
    %3 = vector.load %arg3[%c0_3, %c0_4] : memref<1x4xf32, #tpu.memory_space<vmem>>, vector<1x4xf32>
    %4 = vector.broadcast %3 : vector<1x4xf32> to vector<128x4xf32>
    %5 = arith.addf %2, %4 : vector<128x4xf32>
    %6 = math.tanh %5 : vector<128x4xf32>
    %c0_5 = arith.constant 0 : index
    %c0_6 = arith.constant 0 : index
    %7 = vector.load %arg4[%c0_5, %c0_6] : memref<128x4xf32, #tpu.memory_space<vmem>>, vector<128x4xf32>
    tpu.vector_store %arg4[%c0_5, %c0_6], %6 {strides = array<i32>} : memref<128x4xf32, #tpu.memory_space<vmem>>, vector<128x4xf32>,
    return
  }
  func.func @transform_0(%arg0: i32) -> (i32, i32) {
    %c0_i32 = arith.constant 0 : i32
    %c0_i32_0 = arith.constant 0 : i32
    return %arg0, %c0_i32 : i32, i32
  }
  func.func @transform_1(%arg0: i32) -> (i32, i32) {
    %c0_i32 = arith.constant 0 : i32
    %c0_i32_0 = arith.constant 0 : i32
    %c0_i32_1 = arith.constant 0 : i32
    return %c0_i32, %c0_i32_0 : i32, i32
  }
  func.func @transform_2(%arg0: i32) -> (i32, i32) {
    %c0_i32 = arith.constant 0 : i32
    %c0_i32_0 = arith.constant 0 : i32
    %c0_i32_1 = arith.constant 0 : i32
    return %c0_i32, %c0_i32_0 : i32, i32
  }
  func.func @transform_3(%arg0: i32) -> (i32, i32) {
    %c0_i32 = arith.constant 0 : i32
    %c0_i32_0 = arith.constant 0 : i32
    return %arg0, %c0_i32 : i32, i32
  }
}

</mosaic_0001>

<bundles_post_ra>
// kernel: generator_forward.5
= control target key start
LH: loop header
LB: loop body
LE: loop exit
PB: predicated region body
PF: predicated region fallthrough
CT: control target
= control target key end

     0   :  { %9 = vsyncpa [#allocation3], 0  ;;  %s1038_s0 = inlined_call_operand.vmem [shape: bf16[8,32], index: 0, kind: input, shape index: {}]   ;;  %s1039_s1 = inlined_call_operand.hbm [shape: bf16[32,1024], index: 1, kind: input, shape index: {}]   ;;  %s1040_s2 = inlined_call_operand.hbm [shape: f32[1,1024], index: 2, kind: input, shape index: {}]   ;;  %s1041_s3 = inlined_call_operand.hbm [shape: f32[1,1024], index: 3, kind: input, shape index: {}]   ;;  %s1042_s4 = inlined_call_operand.vmem [shape: bf16[8,1024], index: 4, kind: output, shape index: {}]  }
   0x1   :  { %10 = vsyncpa [#allocation5], 0  ;;  %s777_s15 = smov [#allocation4]   ;;  %s778_s17 = smov [#allocation2]  }
   0x2   :  { %s31_s16 = sshll.u32 %s777_s15, 4  ;;  %s18_s18 = sshll.u32 %s778_s17, 4  ;;  %s32_s16 = int_to_ptr.vmem [resolvable:$true] %s31_s16  ;;  %s808_s18 = int_to_ptr.vmem [resolvable:$true] %s18_s18 }
   0x3   :  { %s707_s21 = scalar_lea.hbm %s1040_s2, 128 }
   0x4   :  { %p708_p0 = scmp.ne.s32.totalorder %s1040_s2, %s707_s21  ;;  %p711_p1 = scmp.lt.u32.totalorder %s707_s21, %s1040_s2 }
   0x6   :  { %p713_p2 = pnand %p711_p1, %p708_p0 }
   0x8   :  { %716 = shalt.err (!%p713_p2)
}
   0x9   :  { %s717_s26 = scalar_lea.vmem %s32_s16, 128  ;;  %p722_p4 = scmp.lt.s32.totalorder %s32_s16, %s32_s16 }
   0xa   :  { %p718_p3 = scmp.ne.s32.totalorder %s32_s16, %s717_s26  ;;  %p723_p5 = scmp.lt.s32.totalorder %s717_s26, %s717_s26 }
   0xc   :  { %p724_p6 = por %p723_p5, %p722_p4 }
   0xe   :  { %p725_p7 = pnand %p724_p6, %p718_p3 }
  0x10   :  { %728 = shalt.err (!%p725_p7)
}
  0x11   :  { %34 = dma.hbm_to_vmem [thread:$0]  %s1040_s2, 128, %s32_s16, [#allocation5]  }
  0x12   :  { %s729_s5 = scalar_lea.hbm %s1039_s1, 2048 }
  0x13   :  { %p730_p8 = scmp.ne.s32.totalorder %s1039_s1, %s729_s5  ;;  %p733_p9 = scmp.lt.u32.totalorder %s729_s5, %s1039_s1 }
  0x15   :  { %p735_p10 = pnand %p733_p9, %p730_p8 }
  0x17   :  { %738 = shalt.err (!%p735_p10)
}
  0x18   :  { %s739_s10 = scalar_lea.vmem %s808_s18, 2048  ;;  %p744_p12 = scmp.lt.s32.totalorder %s808_s18, %s808_s18 }
  0x19   :  { %p740_p11 = scmp.ne.s32.totalorder %s808_s18, %s739_s10  ;;  %p745_p13 = scmp.lt.s32.totalorder %s739_s10, %s739_s10 }
  0x1b   :  { %p746_p0 = por %p745_p13, %p744_p12 }
  0x1d   :  { %p747_p1 = pnand %p746_p0, %p740_p11 }
  0x1f   :  { %750 = shalt.err (!%p747_p1)
}
  0x20   :  { %s779_s2 = smov 512   ;;  %s780_s11 = smov 32  }
  0x21   :  { %24 = dma.hbm_to_vmem [thread:$0]  %s1039_s1, 2048, %s808_s18, [#allocation3], %s779_s2, %s779_s2, %s780_s11  }
  0x22   :  { %s781_s14 = smov [#allocation6]   ;;  %s751_s19 = scalar_lea.hbm %s1041_s3, 128 }
  0x23   :  { %s41_s15 = sshll.u32 %s781_s14, 4  ;;  %p752_p2 = scmp.ne.s32.totalorder %s1041_s3, %s751_s19  ;;  %s42_s15 = int_to_ptr.vmem [resolvable:$true] %s41_s15 }
  0x24   :  { %p755_p3 = scmp.lt.u32.totalorder %s751_s19, %s1041_s3 }
  0x26   :  { %p757_p4 = pnand %p755_p3, %p752_p2 }
  0x28   :  { %760 = shalt.err (!%p757_p4)
}
  0x29   :  { %s761_s24 = scalar_lea.vmem %s42_s15, 128  ;;  %p766_p6 = scmp.lt.s32.totalorder %s42_s15, %s42_s15 }
  0x2a   :  { %p762_p5 = scmp.ne.s32.totalorder %s42_s15, %s761_s24  ;;  %p767_p7 = scmp.lt.s32.totalorder %s761_s24, %s761_s24 }
  0x2c   :  { %p768_p8 = por %p767_p7, %p766_p6 }
  0x2e   :  { %p769_p9 = pnand %p768_p8, %p762_p5 }
  0x30   :  { %772 = shalt.err (!%p769_p9)
}
  0x31   :  { %44 = dma.hbm_to_vmem [thread:$0]  %s1041_s3, 128, %s42_s15, [#allocation5]  }
  0x32   :  { %773 = dma.done.wait [#allocation3], 2048  }
  0x33   :  { %774 = vsyncadd [#allocation3], 4294965248 }
  0x34   :  { %775 = dma.done.wait [#allocation5], 256  }
  0x35   :  { %776 = vsyncadd [#allocation5], 4294967040  ;;  %v782_v0 = vmov 0   ;;  %v56_v1 = vld [vmem:[#allocation2] sm:$0xff]  ;;  %v57_v3 = vld [vmem:[#allocation2 + $0x8] sm:$0xff]  ;;  %vm152_vm0 = vcmask 261120   ;;  %v498_v34 = vlaneseq }
  0x36   :  { %188 = vmatprep.mubr.bf16.mxu0 %v782_v0  ;;  %229 = vmatprep.mubr.bf16.mxu1 %v782_v0  ;;  %v60_v2 = vld [vmem:[#allocation2 + $0x20] sm:$0xff]  ;;  %v61_v5 = vld [vmem:[#allocation2 + $0x28] sm:$0xff]  ;;  %v58_v15 = vld [vmem:[#allocation2 + $0x10] sm:$0xff] }
  0x37   :  { %v658_v4 = vcombine.high %v56_v1, %v60_v2  ;;  %v657_v6 = vcombine.low %v56_v1, %v60_v2  ;;  %v64_v7 = vld [vmem:[#allocation2 + $0x40] sm:$0xff]  ;;  %v660_v9 = vcombine.high %v57_v3, %v61_v5  ;;  %v659_v10 = vcombine.low %v57_v3, %v61_v5  ;;  %v65_v12 = vld [vmem:[#allocation2 + $0x48] sm:$0xff]  ;;  %v62_v16 = vld [vmem:[#allocation2 + $0x30] sm:$0xff] }
  0x38   :  { %v68_v8 = vld [vmem:[#allocation2 + $0x60] sm:$0xff]  ;;  %v69_v13 = vld [vmem:[#allocation2 + $0x68] sm:$0xff]  ;;  %v59_v17 = vld [vmem:[#allocation2 + $0x18] sm:$0xff]  ;;  %v662_v21 = vcombine.high %v58_v15, %v62_v16  ;;  %v661_v28 = vcombine.low %v58_v15, %v62_v16  ;;  %v858_v35 = vshrl.u32 %v498_v34, 7 }
  0x39   :  { %v666_v11 = vcombine.high %v64_v7, %v68_v8  ;;  %156 = vmatprep.subr.bf16.mxu0 %v658_v4  ;;  %v668_v14 = vcombine.high %v65_v12, %v69_v13  ;;  %197 = vmatprep.subr.bf16.mxu1 %v660_v9  ;;  %v665_v18 = vcombine.low %v64_v7, %v68_v8  ;;  %v63_v19 = vld [vmem:[#allocation2 + $0x38] sm:$0xff]  ;;  %v66_v23 = vld [vmem:[#allocation2 + $0x50] sm:$0xff]  ;;  %v55_v27 = vld [vmem:[%s1038_s0] sm:$0xf] }
  0x3a   :  { %157 = vmatpush1.bf16.msra.mxu0 %v657_v6  ;;  %198 = vmatpush1.bf16.msra.mxu1 %v659_v10  ;;  %v667_v20 = vcombine.low %v65_v12, %v69_v13  ;;  %v664_v22 = vcombine.high %v59_v17, %v63_v19  ;;  %v70_v24 = vld [vmem:[#allocation2 + $0x70] sm:$0xff]  ;;  %v67_v25 = vld [vmem:[#allocation2 + $0x58] sm:$0xff]  ;;  %v663_v29 = vcombine.low %v59_v17, %v63_v19  ;;  %v500_v36 = vsub.s32 0, %v858_v35  ;;  %v863_v39 = vld [vmem:[#allocation4] sm:$0xff] }
  0x3b   :  { %158 = vmatprep.subr.bf16.mxu0 %v666_v11  ;;  %199 = vmatprep.subr.bf16.mxu1 %v668_v14  ;;  %v71_v26 = vld [vmem:[#allocation2 + $0x78] sm:$0xff]  ;;  %v670_v30 = vcombine.high %v66_v23, %v70_v24  ;;  %v669_v32 = vcombine.low %v66_v23, %v70_v24  ;;  %v508_v37 = vsub.s32 2, %v858_v35  ;;  %v504_v38 = vsub.s32 1, %v858_v35  ;;  %v865_v40 = vld [vmem:[#allocation6] sm:$0xff] }
  0x3c   :  { %v672_v31 = vcombine.high %v67_v25, %v71_v26  ;;  %v671_v33 = vcombine.low %v67_v25, %v71_v26  ;;  %v870_v42 = vrot.slane %v863_v39, %v500_v36  ;;  %v512_v45 = vsub.s32 3, %v858_v35 }
  0x3d   :  { %v873_v43 = vrot.slane %v863_v39, %v508_v37  ;;  %v878_v44 = vrot.slane %v863_v39, %v504_v38  ;;  %v885_v48 = vrot.slane %v865_v40, %v500_v36  ;;  %v890_v50 = vrot.slane %v865_v40, %v508_v37 }
  0x3e   :  { %159 = vmatpush1.bf16.msra.mxu0 %v665_v18  ;;  %200 = vmatpush1.bf16.msra.mxu1 %v667_v20  ;;  %vm606_vm1 = vcmp.lt.s32.totalorder %v858_v35, 2 }
  0x3f   :  { %238 = vmatprep.subr.bf16.mxu0 %v662_v21  ;;  %279 = vmatprep.subr.bf16.mxu1 %v664_v22 }
  0x41   :  { %673 = vmatmul.mubr.msk.bf16.vlgmr.msra.gmra.mrb[0].mxu0 %vm152_vm0, %v55_v27  ;;  %674 = vmatmul.mubr.msk.bf16.vlgmr.msra.gmra.mrb[0].mxu1 %vm152_vm0, %v55_v27 }
  0x42   :  { %239 = vmatpush1.bf16.msra.mxu0 %v661_v28  ;;  %280 = vmatpush1.bf16.msra.mxu1 %v663_v29 }
  0x43   :  { %240 = vmatprep.subr.bf16.mxu0 %v670_v30  ;;  %281 = vmatprep.subr.bf16.mxu1 %v672_v31 }
  0x44   :  { %270 = vmatprep.mubr.bf16.mxu0 %v782_v0  ;;  %311 = vmatprep.mubr.bf16.mxu1 %v782_v0 }
  0x46   :  { %241 = vmatpush1.bf16.msra.mxu0 %v669_v32  ;;  %282 = vmatpush1.bf16.msra.mxu1 %v671_v33 }
  0x49   :  { %675 = vmatmul.mubr.msk.bf16.vlgmr.msra.gmra.mrb[4].mxu0 %vm152_vm0, %v55_v27  ;;  %676 = vmatmul.mubr.msk.bf16.vlgmr.msra.gmra.mrb[4].mxu1 %vm152_vm0, %v55_v27 }
 0x114   :  { %v867_v41 = vpop.f32.mrb[0].mxu0  ;;  %v887_v49 = vpop.f32.mrb[0].mxu1 }
 0x115   :  { %v320_v46 = vrot.slane %v867_v41, 4  ;;  %v376_v47 = vmul.f32 %v867_v41, %v867_v41  ;;  %v892_v51 = vpop.f32.mrb[1].mxu0  ;;  %v332_v52 = vrot.slane %v887_v49, 4  ;;  %v378_v53 = vmul.f32 %v887_v49, %v887_v49  ;;  %v900_v56 = vpop.f32.mrb[1].mxu1 }
 0x116   :  { %v326_v54 = vrot.slane %v892_v51, 4  ;;  %v377_v55 = vmul.f32 %v892_v51, %v892_v51  ;;  %v194_v57 = vpop.f32.mrb[2].mxu0  ;;  %v338_v60 = vrot.slane %v900_v56, 4  ;;  %v379_v61 = vmul.f32 %v900_v56, %v900_v56  ;;  %v235_v62 = vpop.f32.mrb[2].mxu1 }
 0x117   :  { %v321_v58 = vadd.f32 %v320_v46, %v867_v41  ;;  %v384_v59 = vrot.slane %v376_v47, 4  ;;  %v195_v63 = vpop.f32.mrb[3].mxu0  ;;  %v333_v0 = vadd.f32 %v332_v52, %v887_v49  ;;  %v396_v1 = vrot.slane %v378_v53, 4  ;;  %v236_v4 = vpop.f32.mrb[3].mxu1 }
 0x118   :  { %v327_v2 = vadd.f32 %v326_v54, %v892_v51  ;;  %v390_v3 = vrot.slane %v377_v55, 4  ;;  %v339_v7 = vadd.f32 %v338_v60, %v900_v56  ;;  %v402_v8 = vrot.slane %v379_v61, 4 }
 0x119   :  { %v322_v5 = vrot.slane %v321_v58, 2  ;;  %v385_v6 = vadd.f32 %v384_v59, %v376_v47  ;;  %v334_v9 = vrot.slane %v333_v0, 2  ;;  %v397_v10 = vadd.f32 %v396_v1, %v378_v53 }
 0x11a   :  { %v328_v11 = vrot.slane %v327_v2, 2  ;;  %v391_v12 = vadd.f32 %v390_v3, %v377_v55  ;;  %v340_v15 = vrot.slane %v339_v7, 2  ;;  %v403_v16 = vadd.f32 %v402_v8, %v379_v61 }
 0x11b   :  { %v323_v13 = vadd.f32 %v322_v5, %v321_v58  ;;  %v386_v14 = vrot.slane %v385_v6, 2  ;;  %v335_v17 = vadd.f32 %v334_v9, %v333_v0  ;;  %v398_v18 = vrot.slane %v397_v10, 2 }
 0x11c   :  { %v329_v19 = vadd.f32 %v328_v11, %v327_v2  ;;  %v392_v20 = vrot.slane %v391_v12, 2  ;;  %v909_v21 = vpop.f32.mrb[4].mxu0  ;;  %v341_v24 = vadd.f32 %v340_v15, %v339_v7  ;;  %v404_v25 = vrot.slane %v403_v16, 2  ;;  %v911_v26 = vpop.f32.mrb[4].mxu1 }
 0x11d   :  { %v324_v22 = vrot.slane %v323_v13, 1  ;;  %v387_v23 = vadd.f32 %v386_v14, %v385_v6  ;;  %v913_v27 = vpop.f32.mrb[5].mxu0  ;;  %v336_v28 = vrot.slane %v335_v17, 1  ;;  %v399_v29 = vadd.f32 %v398_v18, %v397_v10  ;;  %v915_v32 = vpop.f32.mrb[5].mxu1 }
 0x11e   :  { %v330_v30 = vrot.slane %v329_v19, 1  ;;  %v393_v31 = vadd.f32 %v392_v20, %v391_v12  ;;  %v276_v33 = vpop.f32.mrb[6].mxu0  ;;  %v342_v37 = vrot.slane %v341_v24, 1  ;;  %v405_v46 = vadd.f32 %v404_v25, %v403_v16  ;;  %v317_v47 = vpop.f32.mrb[6].mxu1 }
 0x11f   :  { %v325_v34 = vadd.f32 %v324_v22, %v323_v13  ;;  %v388_v36 = vrot.slane %v387_v23, 1  ;;  %v277_v52 = vpop.f32.mrb[7].mxu0  ;;  %v337_v53 = vadd.f32 %v336_v28, %v335_v17  ;;  %v400_v54 = vrot.slane %v399_v29, 1  ;;  %v318_v58 = vpop.f32.mrb[7].mxu1 }
 0x120   :  { %v331_v55 = vadd.f32 %v330_v30, %v329_v19  ;;  %v394_v57 = vrot.slane %v393_v31, 1  ;;  %v343_v61 = vadd.f32 %v342_v37, %v341_v24  ;;  %v406_v62 = vrot.slane %v405_v46, 1 }
 0x121   :  { %v917_v59 = vmul.f32 0.5, %v325_v34  ;;  %v389_v60 = vadd.f32 %v388_v36, %v387_v23  ;;  %v919_v63 = vmul.f32 0.5, %v337_v53  ;;  %v401_v0 = vadd.f32 %v400_v54, %v399_v29 }
 0x122   :  { %v921_v1 = vmul.f32 0.5, %v331_v55  ;;  %v395_v2 = vadd.f32 %v394_v57, %v393_v31  ;;  %v928_v5 = vrot.slane %v865_v40, %v504_v38  ;;  %v930_v6 = vmul.f32 0.5, %v343_v61 }
 0x123   :  { %v432_v3 = vmul.f32 0.5, %v389_v60  ;;  %v440_v4 = vmul.f32 %v917_v59, %v917_v59  ;;  %v434_v7 = vmul.f32 0.5, %v401_v0  ;;  %v442_v8 = vmul.f32 %v919_v63, %v919_v63 }
 0x124   :  { %v433_v9 = vmul.f32 0.5, %v395_v2  ;;  %v937_v10 = vrot.slane %v863_v39, %v512_v45  ;;  %v441_v12 = vmul.f32 %v921_v1, %v921_v1  ;;  %v407_v13 = vadd.f32 %v406_v62, %v405_v46 }
 0x125   :  { %v448_v11 = vsub.f32 %v432_v3, %v440_v4  ;;  %v944_v38 = vrot.slane %v865_v40, %v512_v45  ;;  %v464_v14 = vsub.f32 %v867_v41, %v917_v59  ;;  %v450_v15 = vsub.f32 %v434_v7, %v442_v8 }
 0x126   :  { %v443_v16 = vmul.f32 %v930_v6, %v930_v6  ;;  %v344_v17 = vrot.slane %v909_v21, 4  ;;  %v449_v19 = vsub.f32 %v433_v9, %v441_v12  ;;  %v435_v20 = vmul.f32 0.5, %v407_v13 }
 0x127   :  { %v456_v18 = vmax.f32 %v448_v11, 0.0  ;;  %v380_v22 = vmul.f32 %v909_v21, %v909_v21  ;;  %v458_v23 = vmax.f32 %v450_v15, 0.0  ;;  %v356_v45 = vrot.slane %v911_v26, 4 }
 0x128   :  { %v345_v24 = vadd.f32 %v344_v17, %v909_v21  ;;  %v382_v25 = vmul.f32 %v911_v26, %v911_v26  ;;  %v457_v29 = vmax.f32 %v449_v19, 0.0  ;;  %v451_v30 = vsub.f32 %v435_v20, %v443_v16 }
 0x129   :  { %v472_v28 = vadd.f32 1e-05, %v456_v18  ;;  %v408_v31 = vrot.slane %v380_v22, 4  ;;  %v474_v33 = vadd.f32 1e-05, %v458_v23  ;;  %v357_v36 = vadd.f32 %v356_v45, %v911_v26 }
 0x12a   :  { %v346_v34 = vrot.slane %v345_v24, 2  ;;  %v420_v37 = vrot.slane %v382_v25, 4  ;;  %v473_v46 = vadd.f32 1e-05, %v457_v29  ;;  %v459_v47 = vmax.f32 %v451_v30, 0.0 }
 0x12b   :  { %691 = vrsqrt.f32 %v472_v28  ;;  %v409_v52 = vadd.f32 %v408_v31, %v380_v22  ;;  %v358_v54 = vrot.slane %v357_v36, 2  ;;  %v350_v60 = vrot.slane %v913_v27, 4 }
 0x12c   :  { %693 = vrsqrt.f32 %v474_v33  ;;  %v347_v53 = vadd.f32 %v346_v34, %v345_v24  ;;  %v421_v55 = vadd.f32 %v420_v37, %v382_v25  ;;  %v475_v57 = vadd.f32 1e-05, %v459_v47 }
 0x12d   :  { %695 = vrsqrt.f32 %v473_v46  ;;  %v410_v58 = vrot.slane %v409_v52, 2  ;;  %v359_v62 = vadd.f32 %v358_v54, %v357_v36  ;;  %v381_v2 = vmul.f32 %v913_v27, %v913_v27 }
 0x12e   :  { %v348_v61 = vrot.slane %v347_v53, 1  ;;  %v422_v0 = vrot.slane %v421_v55, 2  ;;  %697 = vrsqrt.f32 %v475_v57  ;;  %v351_v4 = vadd.f32 %v350_v60, %v913_v27 }
 0x12f   :  { %v411_v3 = vadd.f32 %v410_v58, %v409_v52  ;;  %v362_v7 = vrot.slane %v915_v32, 4  ;;  %v360_v9 = vrot.slane %v359_v62, 1  ;;  %v414_v12 = vrot.slane %v381_v2, 4 }
 0x130   :  { %v349_v8 = vadd.f32 %v348_v61, %v347_v53  ;;  %v423_v11 = vadd.f32 %v422_v0, %v421_v55  ;;  %v466_v13 = vsub.f32 %v887_v49, %v919_v63  ;;  %v352_v16 = vrot.slane %v351_v4, 2 }
 0x131   :  { %v412_v15 = vrot.slane %v411_v3, 1  ;;  %v363_v17 = vadd.f32 %v362_v7, %v915_v32  ;;  %v361_v19 = vadd.f32 %v360_v9, %v359_v62  ;;  %v415_v22 = vadd.f32 %v414_v12, %v381_v2 }
 0x132   :  { %v966_v18 = vmul.f32 0.5, %v349_v8  ;;  %v424_v20 = vrot.slane %v423_v11, 1  ;;  %v465_v23 = vsub.f32 %v892_v51, %v921_v1  ;;  %v353_v45 = vadd.f32 %v352_v16, %v351_v4 }
 0x133   :  { %v413_v24 = vadd.f32 %v412_v15, %v411_v3  ;;  %v364_v25 = vrot.slane %v363_v17, 2  ;;  %v973_v63 = vmul.f32 0.5, %v361_v19  ;;  %v383_v29 = vmul.f32 %v915_v32, %v915_v32 }
 0x134   :  { %v444_v49 = vmul.f32 %v966_v18, %v966_v18  ;;  %v425_v28 = vadd.f32 %v424_v20, %v423_v11  ;;  %v467_v31 = vsub.f32 %v900_v56, %v930_v6  ;;  %v354_v34 = vrot.slane %v353_v45, 1 }
 0x135   :  { %v692_v30 = vpop.eup %691  ;;  %v436_v33 = vmul.f32 0.5, %v413_v24  ;;  %v416_v36 = vrot.slane %v415_v22, 2  ;;  %v446_v46 = vmul.f32 %v973_v63, %v973_v63  ;;  %v365_v47 = vadd.f32 %v364_v25, %v363_v17 }
 0x136   :  { %v694_v51 = vpop.eup %693  ;;  %v488_v1 = vmul.f32 %v692_v30, %v464_v14  ;;  %v438_v37 = vmul.f32 0.5, %v425_v28  ;;  %v355_v55 = vadd.f32 %v354_v34, %v353_v45  ;;  %v426_v60 = vrot.slane %v383_v29, 4 }
 0x137   :  { %v696_v52 = vpop.eup %695  ;;  %v490_v53 = vmul.f32 %v694_v51, %v466_v13  ;;  %v452_v54 = vsub.f32 %v436_v33, %v444_v49  ;;  %v417_v57 = vadd.f32 %v416_v36, %v415_v22  ;;  %v366_v4 = vrot.slane %v365_v47, 1 }
 0x138   :  { %v538_v56 = vmul.f32 %v870_v42, %v488_v1  ;;  %v489_v6 = vmul.f32 %v696_v52, %v465_v23  ;;  %v454_v58 = vsub.f32 %v438_v37, %v446_v46  ;;  %v698_v61 = vpop.eup %697  ;;  %v373_v59 = vmul.f32 0.5, %v355_v55 }
 0x139   :  { %v540_v62 = vmul.f32 %v873_v43, %v490_v53  ;;  %v460_v41 = vmax.f32 %v452_v54, 0.0  ;;  %v418_v14 = vrot.slane %v417_v57, 1  ;;  %v491_v3 = vmul.f32 %v698_v61, %v467_v31 }
 0x13a   :  { %v588_v0 = vadd.f32 %v885_v48, %v538_v56  ;;  %v539_v2 = vmul.f32 %v878_v44, %v489_v6  ;;  %v445_v42 = vmul.f32 %v373_v59, %v373_v59  ;;  %v462_v43 = vmax.f32 %v454_v58, 0.0 }
 0x13b   :  { %v590_v7 = vadd.f32 %v890_v50, %v540_v62  ;;  %v476_v8 = vadd.f32 1e-05, %v460_v41  ;;  %v419_v9 = vadd.f32 %v418_v14, %v417_v57  ;;  %v541_v13 = vmul.f32 %v937_v10, %v491_v3 }
 0x13c   :  { %v596_v11 = vmax.f32 %v588_v0, 0.0  ;;  %v589_v12 = vadd.f32 %v928_v5, %v539_v2  ;;  %v367_v50 = vadd.f32 %v366_v4, %v365_v47  ;;  %v427_v20 = vadd.f32 %v426_v60, %v383_v29 }
 0x13d   :  { %v598_v15 = vmax.f32 %v590_v7, 0.0  ;;  %699 = vrsqrt.f32 %v476_v8  ;;  %v437_v16 = vmul.f32 0.5, %v419_v9  ;;  %v591_v17 = vadd.f32 %v944_v38, %v541_v13 }
 0x13e   :  { %v607_v48 = vsel %vm606_vm1, %v596_v11, 0.0  ;;  %v597_v44 = vmax.f32 %v589_v12, 0.0  ;;  %v478_v23 = vadd.f32 1e-05, %v462_v43  ;;  %v428_v25 = vrot.slane %v427_v20, 2 }
 0x13f   :  { %v453_v19 = vsub.f32 %v437_v16, %v445_v42  ;;  %v609_v22 = vsel %vm606_vm1, %v598_v15, 0.0  ;;  %v599_v10 = vmax.f32 %v591_v17, 0.0  ;;  %v516_v28 = vsub.s32 4, %v858_v35 }
 0x140   :  { %v608_v5 = vsel %vm606_vm1, %v597_v44, 0.0  ;;  %v375_v30 = vmul.f32 0.5, %v367_v50  ;;  %v429_v31 = vadd.f32 %v428_v25, %v427_v20  ;;  %701 = vrsqrt.f32 %v478_v23 }
 0x141   :  { %v681_v24 = vpack.c.bf16 %v608_v5, %v607_v48  ;;  %v461_v45 = vmax.f32 %v453_v19, 0.0  ;;  %v610_v49 = vsel %vm606_vm1, %v599_v10, 0.0  ;;  %v468_v34 = vsub.f32 %v909_v21, %v966_v18 }
 0x142   :  { %v682_v38 = vpack.c.bf16 %v610_v49, %v609_v22  ;;  %v430_v33 = vrot.slane %v429_v31, 1  ;;  %v517_v36 = vrot.slane %v863_v39, %v516_v28  ;;  %v447_v37 = vmul.f32 %v375_v30, %v375_v30 }
 0x143   :  { %647 = vst [vmem:[%s1042_s4] sm:$0xff] %v681_v24  ;;  %v477_v29 = vadd.f32 1e-05, %v461_v45  ;;  %v567_v53 = vrot.slane %v865_v40, %v516_v28  ;;  %v520_v54 = vsub.s32 5, %v858_v35  ;;  %v524_v58 = vsub.s32 6, %v858_v35 }
 0x144   :  { %648 = vst [vmem:[%s1042_s4 + $0x8] sm:$0xff] %v682_v38  ;;  %v431_v1 = vadd.f32 %v430_v33, %v429_v31  ;;  %v469_v21 = vsub.f32 %v913_v27, %v373_v59  ;;  %v470_v62 = vsub.f32 %v911_v26, %v973_v63  ;;  %v528_v42 = vsub.s32 7, %v858_v35 }
 0x145   :  { %703 = vrsqrt.f32 %v477_v29  ;;  %v521_v18 = vrot.slane %v863_v39, %v520_v54  ;;  %v571_v14 = vrot.slane %v865_v40, %v520_v54  ;;  %v525_v3 = vrot.slane %v863_v39, %v524_v58 }
 0x146   :  { %v439_v47 = vmul.f32 0.5, %v431_v1  ;;  %v575_v8 = vrot.slane %v865_v40, %v524_v58  ;;  %v471_v12 = vsub.f32 %v915_v32, %v375_v30  ;;  %v529_v13 = vrot.slane %v863_v39, %v528_v42 }
 0x147   :  { %v700_v51 = vpop.eup %699  ;;  %v579_v16 = vrot.slane %v865_v40, %v528_v42 }
 0x148   :  { %v492_v46 = vmul.f32 %v700_v51, %v468_v34  ;;  %v455_v55 = vsub.f32 %v439_v47, %v447_v37 }
 0x14a   :  { %v542_v52 = vmul.f32 %v517_v36, %v492_v46  ;;  %v463_v57 = vmax.f32 %v455_v55, 0.0  ;;  %v702_v56 = vpop.eup %701 }
 0x14b   :  { %v494_v2 = vmul.f32 %v702_v56, %v470_v62 }
 0x14c   :  { %v592_v6 = vadd.f32 %v567_v53, %v542_v52  ;;  %v479_v61 = vadd.f32 1e-05, %v463_v57 }
 0x14d   :  { %v544_v59 = vmul.f32 %v525_v3, %v494_v2 }
 0x14e   :  { %705 = vrsqrt.f32 %v479_v61  ;;  %v600_v0 = vmax.f32 %v592_v6, 0.0 }
 0x14f   :  { %v704_v60 = vpop.eup %703  ;;  %v594_v11 = vadd.f32 %v575_v8, %v544_v59 }
 0x150   :  { %v493_v41 = vmul.f32 %v704_v60, %v469_v21  ;;  %v611_v27 = vsel %vm606_vm1, %v600_v0, 0.0 }
 0x151   :  { %v602_v48 = vmax.f32 %v594_v11, 0.0 }
 0x152   :  { %v543_v4 = vmul.f32 %v521_v18, %v493_v41 }
 0x153   :  { %v613_v19 = vsel %vm606_vm1, %v602_v48, 0.0 }
 0x154   :  { %v593_v7 = vadd.f32 %v571_v14, %v543_v4 }
 0x156   :  { %v601_v9 = vmax.f32 %v593_v7, 0.0 }
 0x158   :  { %v612_v26 = vsel %vm606_vm1, %v601_v9, 0.0  ;;  %v706_v43 = vpop.eup %705 }
 0x159   :  { %v683_v63 = vpack.c.bf16 %v612_v26, %v611_v27  ;;  %v495_v15 = vmul.f32 %v706_v43, %v471_v12 }
 0x15b   :  { %649 = vst [vmem:[%s1042_s4 + $0x10] sm:$0xff] %v683_v63  ;;  %v545_v44 = vmul.f32 %v529_v13, %v495_v15 }
 0x15d   :  { %v595_v17 = vadd.f32 %v579_v16, %v545_v44 }
 0x15f   :  { %v603_v50 = vmax.f32 %v595_v17, 0.0 }
 0x161   :  { %v614_v32 = vsel %vm606_vm1, %v603_v50, 0.0 }
 0x162   :  { %v684_v20 = vpack.c.bf16 %v614_v32, %v613_v19 }
 0x164   :  { %650 = vst [vmem:[%s1042_s4 + $0x18] sm:$0xff] %v684_v20 }
 0x165   :  { %655 = vsyncpa [#allocation3], 1 }
 0x166   :  { %656 = vsyncpa [#allocation5], 1 }

// kernel: tile.13
= control target key start
LH: loop header
LB: loop body
LE: loop exit
PB: predicated region body
PF: predicated region fallthrough
CT: control target
= control target key end

     0   :  { %s22_s0 = inlined_call_operand.vmem [shape: f32[64], index: 0, kind: input, shape index: {}]   ;;  %s23_s1 = inlined_call_operand.vmem [shape: f32[4,64], index: 1, kind: output, shape index: {}]  }
   0x1   :  { %v4_v0 = vld [vmem:[%s22_s0] ss:$0 sm:$0xff] }
   0x2   :  { %5 = vst [vmem:[%s23_s1] sm:$0xf] %v4_v0 }

// kernel: tile.14
= control target key start
LH: loop header
LB: loop body
LE: loop exit
PB: predicated region body
PF: predicated region fallthrough
CT: control target
= control target key end

     0   :  { %s6_s8 = smov 3  ;;  %vm8_vm0 = vcmask 523264   ;;  %s30_s9 = smov 64   ;;  %vm15_vm1 = vcmask 1048064   ;;  %s50_s0 = inlined_call_operand.vmem [shape: f32[4,64], index: 0, kind: input, shape index: {}]   ;;  %s51_s1 = inlined_call_operand.vmem [shape: f32[1,256], index: 1, kind: output, shape index: {}]  }
   0x1   :  { %v4_v0 = vld [vmem:[%s50_s0] sm:$0xf]  ;;  %s11_s0 = smov 3 }
   0x2   :  { %5 = vst [vmem:[#allocation1] sm:$0xf] %v4_v0 }
   0x9   :  { %v12_v1 = vld [vmem:[#allocation1 + $0x1] ss:$2 sm:%s11_s0]   ;;  %v7_v2 = vld [vmem:[#allocation1] ss:$2 sm:%s6_s8]  }
   0xa   :  { %13 = vrot.lane.b32.xlu0 %v12_v1, %s30_s9  ;;  %9 = vst.msk [vmem:[#allocation0] ss:$8 sm:$0x3] %vm8_vm0, %v7_v2  }
  0x7c   :  { %v14_v3 = vpop.permute.xlu0 %13  }
  0x7d   :  { %16 = vst.msk [vmem:[#allocation0] ss:$8 sm:$0x3] %vm15_vm1, %v14_v3  }
  0x84   :  { %v20_v4 = vld [vmem:[#allocation0] sm:$0x1]  ;;  %v24_v5 = vld [vmem:[#allocation0 + $0x8] sm:$0x1] }
  0x85   :  { %22 = vst [vmem:[%s51_s1] sm:$0x1] %v20_v4  ;;  %28 = vst [vmem:[%s51_s1 + $0x1] sm:$0x1] %v24_v5 }

// kernel: generator_forward.8
= control target key start
LH: loop header
LB: loop body
LE: loop exit
PB: predicated region body
PF: predicated region fallthrough
CT: control target
= control target key end

     0   :  { %v24_v0 = vlaneseq  ;;  %s172_s1 = inlined_call_operand.vmem [shape: f32[1,256], index: 1, kind: input, shape index: {}]   ;;  %s173_s2 = inlined_call_operand.vmem [shape: f32[1,256], index: 2, kind: input, shape index: {}]   ;;  %s174_s0 = inlined_call_operand.vmem [shape: f32[32,256], index: 0, kind: input, shape index: {}]   ;;  %s175_s3 = inlined_call_operand.vmem [shape: bf16[32,256], index: 3, kind: output, shape index: {}]  }
   0x1   :  { %v22_v2 = vld [vmem:[%s172_s1] sm:$0x3]  ;;  %v15_v5 = vld [vmem:[%s174_s0 + $0x8] sm:$0xff]  ;;  %v16_v8 = vld [vmem:[%s174_s0 + $0x10] sm:$0xff] }
   0x2   :  { %v25_v1 = vshrl.u32 %v24_v0, 7  ;;  %v42_v3 = vld [vmem:[%s173_s2] sm:$0x3]  ;;  %v17_v9 = vld [vmem:[%s174_s0 + $0x18] sm:$0xff]  ;;  %v19_v15 = vld [vmem:[%s174_s0 + $0x28] sm:$0xff] }
   0x3   :  { %v14_v4 = vld [vmem:[%s174_s0] sm:$0xff]  ;;  %v20_v16 = vld [vmem:[%s174_s0 + $0x30] sm:$0xff]  ;;  %v21_v17 = vld [vmem:[%s174_s0 + $0x38] sm:$0xff] }
   0x4   :  { %v26_v6 = vsub.s32 0, %v25_v1  ;;  %v30_v7 = vsub.s32 1, %v25_v1  ;;  %v18_v10 = vld [vmem:[%s174_s0 + $0x20] sm:$0xff] }
   0x6   :  { %v27_v11 = vrot.slane %v22_v2, %v26_v6  ;;  %v31_v12 = vrot.slane %v22_v2, %v30_v7  ;;  %v47_v13 = vrot.slane %v42_v3, %v26_v6  ;;  %v51_v14 = vrot.slane %v42_v3, %v30_v7 }
   0x8   :  { %v34_v18 = vmul.f32 %v27_v11, %v14_v4  ;;  %v35_v19 = vmul.f32 %v31_v12, %v15_v5  ;;  %v36_v20 = vmul.f32 %v27_v11, %v16_v8  ;;  %v37_v21 = vmul.f32 %v31_v12, %v17_v9 }
   0x9   :  { %v38_v22 = vmul.f32 %v27_v11, %v18_v10  ;;  %v39_v23 = vmul.f32 %v31_v12, %v19_v15  ;;  %v40_v24 = vmul.f32 %v27_v11, %v20_v16  ;;  %v41_v25 = vmul.f32 %v31_v12, %v21_v17 }
   0xa   :  { %v54_v26 = vadd.f32 %v47_v13, %v34_v18  ;;  %v55_v27 = vadd.f32 %v51_v14, %v35_v19  ;;  %v56_v28 = vadd.f32 %v47_v13, %v36_v20  ;;  %v57_v29 = vadd.f32 %v51_v14, %v37_v21 }
   0xb   :  { %v58_v30 = vadd.f32 %v47_v13, %v38_v22  ;;  %v59_v31 = vadd.f32 %v51_v14, %v39_v23  ;;  %v60_v32 = vadd.f32 %v47_v13, %v40_v24  ;;  %v61_v33 = vadd.f32 %v51_v14, %v41_v25 }
   0xc   :  { %v62_v34 = vmax.f32 %v54_v26, 0.0  ;;  %v63_v35 = vmax.f32 %v55_v27, 0.0  ;;  %v64_v36 = vmax.f32 %v56_v28, 0.0  ;;  %v65_v37 = vmax.f32 %v57_v29, 0.0 }
   0xd   :  { %v66_v38 = vmax.f32 %v58_v30, 0.0  ;;  %v67_v39 = vmax.f32 %v59_v31, 0.0  ;;  %v68_v40 = vmax.f32 %v60_v32, 0.0  ;;  %v69_v41 = vmax.f32 %v61_v33, 0.0 }
   0xe   :  { %v106_v42 = vpack.c.bf16 %v63_v35, %v62_v34  ;;  %v107_v43 = vpack.c.bf16 %v65_v37, %v64_v36 }
   0xf   :  { %v108_v44 = vpack.c.bf16 %v67_v39, %v66_v38  ;;  %v109_v45 = vpack.c.bf16 %v69_v41, %v68_v40 }
  0x10   :  { %94 = vst [vmem:[%s175_s3] sm:$0xff] %v106_v42  ;;  %95 = vst [vmem:[%s175_s3 + $0x8] sm:$0xff] %v107_v43 }
  0x11   :  { %96 = vst [vmem:[%s175_s3 + $0x10] sm:$0xff] %v108_v44  ;;  %97 = vst [vmem:[%s175_s3 + $0x18] sm:$0xff] %v109_v45 }

// kernel: generator_forward.7
= control target key start
LH: loop header
LB: loop body
LE: loop exit
PB: predicated region body
PF: predicated region fallthrough
CT: control target
= control target key end

     0   :  { %vm1307_vm0 = vcmask 1040384   ;;  %s2318_s1 = inlined_call_operand.vmem [shape: bf16[1152,256], index: 1, kind: input, shape index: {}]   ;;  %s2319_s0 = inlined_call_operand.vmem [shape: bf16[32,1152], index: 0, kind: input, shape index: {}]   ;;  %s2320_s2 = inlined_call_operand.vmem [shape: f32[32,256], index: 2, kind: output, shape index: {0}]   ;;  %s2321_s3 = inlined_call_operand.vmem [shape: f32[1,2,256], index: 3, kind: output, shape index: {1}]  }
   0x1   :  { %v1542_v0 = vld [vmem:[%s2318_s1 + $0x4] ss:$8 sps:$4 sm:$0xff]   ;;  %v1546_v2 = vld [vmem:[%s2318_s1] ss:$8 sps:$4 sm:$0xff]   ;;  %v1548_v4 = vld [vmem:[%s2318_s1 + $0x14] ss:$8 sps:$4 sm:$0xff]  }
   0x2   :  { %v1544_v1 = vld [vmem:[%s2318_s1 + $0x204] ss:$8 sps:$4 sm:$0xff]   ;;  %990 = vmatprep.subr.bf16.mxu1 %v1542_v0  ;;  %v1547_v3 = vld [vmem:[%s2318_s1 + $0x200] ss:$8 sps:$4 sm:$0xff]   ;;  %v1550_v5 = vld [vmem:[%s2318_s1 + $0x214] ss:$8 sps:$4 sm:$0xff]  }
   0x3   :  { %1096 = vmatprep.subr.bf16.mxu0 %v1544_v1  ;;  %991 = vmatpush1.bf16.msra.mxu1 %v1546_v2  ;;  %v1552_v6 = vld [vmem:[%s2318_s1 + $0x10] ss:$8 sps:$4 sm:$0xff]   ;;  %v1554_v8 = vld [vmem:[%s2318_s1 + $0x24] ss:$8 sps:$4 sm:$0xff]   ;;  %v1558_v10 = vld [vmem:[%s2318_s1 + $0x20] ss:$8 sps:$4 sm:$0xff]  }
   0x4   :  { %1097 = vmatpush1.bf16.msra.mxu0 %v1547_v3  ;;  %992 = vmatprep.subr.bf16.mxu1 %v1548_v4  ;;  %v1553_v7 = vld [vmem:[%s2318_s1 + $0x210] ss:$8 sps:$4 sm:$0xff]   ;;  %v1556_v9 = vld [vmem:[%s2318_s1 + $0x224] ss:$8 sps:$4 sm:$0xff]   ;;  %v1559_v11 = vld [vmem:[%s2318_s1 + $0x220] ss:$8 sps:$4 sm:$0xff]  }
   0x5   :  { %1098 = vmatprep.subr.bf16.mxu0 %v1550_v5  ;;  %v1560_v12 = vld [vmem:[%s2318_s1 + $0x34] ss:$8 sps:$4 sm:$0xff]   ;;  %v1564_v14 = vld [vmem:[%s2318_s1 + $0x30] ss:$8 sps:$4 sm:$0xff]   ;;  %v1566_v16 = vld [vmem:[%s2318_s1 + $0x44] ss:$8 sps:$4 sm:$0xff]  }
   0x6   :  { %v1562_v13 = vld [vmem:[%s2318_s1 + $0x234] ss:$8 sps:$4 sm:$0xff]   ;;  %v1565_v15 = vld [vmem:[%s2318_s1 + $0x230] ss:$8 sps:$4 sm:$0xff]   ;;  %v1568_v17 = vld [vmem:[%s2318_s1 + $0x244] ss:$8 sps:$4 sm:$0xff]  }
   0x7   :  { %993 = vmatpush1.bf16.msra.mxu1 %v1552_v6  ;;  %v1570_v18 = vld [vmem:[%s2318_s1 + $0x40] ss:$8 sps:$4 sm:$0xff]   ;;  %v1572_v20 = vld [vmem:[%s2318_s1 + $0x54] ss:$8 sps:$4 sm:$0xff]   ;;  %v1576_v22 = vld [vmem:[%s2318_s1 + $0x50] ss:$8 sps:$4 sm:$0xff]  }
   0x8   :  { %1099 = vmatpush1.bf16.msra.mxu0 %v1553_v7  ;;  %994 = vmatprep.subr.bf16.mxu1 %v1554_v8  ;;  %v1571_v19 = vld [vmem:[%s2318_s1 + $0x240] ss:$8 sps:$4 sm:$0xff]   ;;  %v1574_v21 = vld [vmem:[%s2318_s1 + $0x254] ss:$8 sps:$4 sm:$0xff]   ;;  %v1577_v23 = vld [vmem:[%s2318_s1 + $0x250] ss:$8 sps:$4 sm:$0xff]  }
   0x9   :  { %1100 = vmatprep.subr.bf16.mxu0 %v1556_v9  ;;  %v1578_v24 = vld [vmem:[%s2318_s1 + $0x64] ss:$8 sps:$4 sm:$0xff]   ;;  %v1582_v26 = vld [vmem:[%s2318_s1 + $0x60] ss:$8 sps:$4 sm:$0xff]   ;;  %v1584_v28 = vld [vmem:[%s2318_s1 + $0x74] ss:$8 sps:$4 sm:$0xff]  }
   0xa   :  { %v1580_v25 = vld [vmem:[%s2318_s1 + $0x264] ss:$8 sps:$4 sm:$0xff]   ;;  %v1583_v27 = vld [vmem:[%s2318_s1 + $0x260] ss:$8 sps:$4 sm:$0xff]   ;;  %v1586_v29 = vld [vmem:[%s2318_s1 + $0x274] ss:$8 sps:$4 sm:$0xff]  }
   0xb   :  { %995 = vmatpush1.bf16.msra.mxu1 %v1558_v10  ;;  %v1588_v30 = vld [vmem:[%s2318_s1 + $0x70] ss:$8 sps:$4 sm:$0xff]   ;;  %v1590_v32 = vld [vmem:[%s2318_s1 + $0x84] ss:$8 sps:$4 sm:$0xff]   ;;  %v1594_v34 = vld [vmem:[%s2318_s1 + $0x80] ss:$8 sps:$4 sm:$0xff]  }
   0xc   :  { %1101 = vmatpush1.bf16.msra.mxu0 %v1559_v11  ;;  %996 = vmatprep.subr.bf16.mxu1 %v1560_v12  ;;  %v1589_v31 = vld [vmem:[%s2318_s1 + $0x270] ss:$8 sps:$4 sm:$0xff]   ;;  %v1592_v33 = vld [vmem:[%s2318_s1 + $0x284] ss:$8 sps:$4 sm:$0xff]   ;;  %v1595_v35 = vld [vmem:[%s2318_s1 + $0x280] ss:$8 sps:$4 sm:$0xff]  }
   0xd   :  { %1102 = vmatprep.subr.bf16.mxu0 %v1562_v13  ;;  %v1596_v36 = vld [vmem:[%s2318_s1 + $0x94] ss:$8 sps:$4 sm:$0xff]   ;;  %v1600_v38 = vld [vmem:[%s2318_s1 + $0x90] ss:$8 sps:$4 sm:$0xff]   ;;  %v1602_v40 = vld [vmem:[%s2318_s1 + $0xa4] ss:$8 sps:$4 sm:$0xff]  }
   0xe   :  { %v1598_v37 = vld [vmem:[%s2318_s1 + $0x294] ss:$8 sps:$4 sm:$0xff]   ;;  %v1601_v39 = vld [vmem:[%s2318_s1 + $0x290] ss:$8 sps:$4 sm:$0xff]   ;;  %v1604_v41 = vld [vmem:[%s2318_s1 + $0x2a4] ss:$8 sps:$4 sm:$0xff]  }
   0xf   :  { %997 = vmatpush1.bf16.msra.mxu1 %v1564_v14  ;;  %v1606_v42 = vld [vmem:[%s2318_s1 + $0xa0] ss:$8 sps:$4 sm:$0xff]   ;;  %v1608_v44 = vld [vmem:[%s2318_s1 + $0xb4] ss:$8 sps:$4 sm:$0xff]   ;;  %v1612_v46 = vld [vmem:[%s2318_s1 + $0xb0] ss:$8 sps:$4 sm:$0xff]  }
  0x10   :  { %1103 = vmatpush1.bf16.msra.mxu0 %v1565_v15  ;;  %998 = vmatprep.subr.bf16.mxu1 %v1566_v16  ;;  %v1607_v43 = vld [vmem:[%s2318_s1 + $0x2a0] ss:$8 sps:$4 sm:$0xff]   ;;  %v1610_v45 = vld [vmem:[%s2318_s1 + $0x2b4] ss:$8 sps:$4 sm:$0xff]   ;;  %v1613_v47 = vld [vmem:[%s2318_s1 + $0x2b0] ss:$8 sps:$4 sm:$0xff]  }
  0x11   :  { %1104 = vmatprep.subr.bf16.mxu0 %v1568_v17  ;;  %v1640_v48 = vld [vmem:[%s2319_s0 + $0x4] ss:$36 sps:$4 sm:$0xff]   ;;  %v1646_v51 = vld [vmem:[%s2319_s0 + $0x14] ss:$36 sps:$4 sm:$0xff]  }
  0x12   :  { %v1614_v49 = vld [vmem:[%s2318_s1 + $0xc4] ss:$8 sps:$4 sm:$0xff]   ;;  %1022 = vmatprep.mubr.bf16.mxu1 %v1640_v48  ;;  %v1618_v52 = vld [vmem:[%s2318_s1 + $0xc0] ss:$8 sps:$4 sm:$0xff]   ;;  %v1620_v54 = vld [vmem:[%s2318_s1 + $0xd4] ss:$8 sps:$4 sm:$0xff]   ;;  %1128 = vmatprep.mubr.bf16.mxu0 %v1646_v51 }
  0x13   :  { %999 = vmatpush1.bf16.msra.mxu1 %v1570_v18  ;;  %v1616_v50 = vld [vmem:[%s2318_s1 + $0x2c4] ss:$8 sps:$4 sm:$0xff]   ;;  %v1619_v53 = vld [vmem:[%s2318_s1 + $0x2c0] ss:$8 sps:$4 sm:$0xff]   ;;  %v1622_v55 = vld [vmem:[%s2318_s1 + $0x2d4] ss:$8 sps:$4 sm:$0xff]  }
  0x14   :  { %1105 = vmatpush1.bf16.msra.mxu0 %v1571_v19  ;;  %1000 = vmatprep.subr.bf16.mxu1 %v1572_v20  ;;  %v1624_v56 = vld [vmem:[%s2318_s1 + $0xd0] ss:$8 sps:$4 sm:$0xff]   ;;  %v1626_v58 = vld [vmem:[%s2318_s1 + $0xe4] ss:$8 sps:$4 sm:$0xff]   ;;  %v1630_v60 = vld [vmem:[%s2318_s1 + $0xe0] ss:$8 sps:$4 sm:$0xff]  }
  0x15   :  { %1106 = vmatprep.subr.bf16.mxu0 %v1574_v21  ;;  %v1625_v57 = vld [vmem:[%s2318_s1 + $0x2d0] ss:$8 sps:$4 sm:$0xff]   ;;  %v1628_v59 = vld [vmem:[%s2318_s1 + $0x2e4] ss:$8 sps:$4 sm:$0xff]   ;;  %v1631_v61 = vld [vmem:[%s2318_s1 + $0x2e0] ss:$8 sps:$4 sm:$0xff]  }
  0x16   :  { %v1632_v62 = vld [vmem:[%s2318_s1 + $0xf4] ss:$8 sps:$4 sm:$0xff]   ;;  %v1636_v0 = vld [vmem:[%s2318_s1 + $0xf0] ss:$8 sps:$4 sm:$0xff]   ;;  %v1643_v2 = vld [vmem:[%s2318_s1 + $0x104] ss:$8 sps:$4 sm:$0xff]  }
  0x17   :  { %1001 = vmatpush1.bf16.msra.mxu1 %v1576_v22  ;;  %v1634_v63 = vld [vmem:[%s2318_s1 + $0x2f4] ss:$8 sps:$4 sm:$0xff]   ;;  %v1637_v1 = vld [vmem:[%s2318_s1 + $0x2f0] ss:$8 sps:$4 sm:$0xff]   ;;  %v1649_v3 = vld [vmem:[%s2318_s1 + $0x304] ss:$8 sps:$4 sm:$0xff]  }
  0x18   :  { %1107 = vmatpush1.bf16.msra.mxu0 %v1577_v23  ;;  %1002 = vmatprep.subr.bf16.mxu1 %v1578_v24  ;;  %v1638_v4 = vld [vmem:[%s2319_s0] ss:$36 sps:$4 sm:$0xff]   ;;  %v1644_v6 = vld [vmem:[%s2319_s0 + $0x10] ss:$36 sps:$4 sm:$0xff]  }
  0x19   :  { %1108 = vmatprep.subr.bf16.mxu0 %v1580_v25  ;;  %v1641_v5 = vld [vmem:[%s2318_s1 + $0x100] ss:$8 sps:$4 sm:$0xff]   ;;  %v1652_v8 = vld [vmem:[%s2318_s1 + $0x114] ss:$8 sps:$4 sm:$0xff]   ;;  %v1650_v10 = vld [vmem:[%s2318_s1 + $0x110] ss:$8 sps:$4 sm:$0xff]  }
  0x1a   :  { %v1647_v7 = vld [vmem:[%s2318_s1 + $0x300] ss:$8 sps:$4 sm:$0xff]   ;;  %v1655_v9 = vld [vmem:[%s2318_s1 + $0x314] ss:$8 sps:$4 sm:$0xff]   ;;  %v1653_v11 = vld [vmem:[%s2318_s1 + $0x310] ss:$8 sps:$4 sm:$0xff]  }
  0x1b   :  { %1003 = vmatpush1.bf16.msra.mxu1 %v1582_v26  ;;  %v1658_v12 = vld [vmem:[%s2318_s1 + $0x124] ss:$8 sps:$4 sm:$0xff]   ;;  %v1656_v14 = vld [vmem:[%s2318_s1 + $0x120] ss:$8 sps:$4 sm:$0xff]   ;;  %v1664_v16 = vld [vmem:[%s2318_s1 + $0x134] ss:$8 sps:$4 sm:$0xff]  }
  0x1c   :  { %1109 = vmatpush1.bf16.msra.mxu0 %v1583_v27  ;;  %1004 = vmatprep.subr.bf16.mxu1 %v1584_v28  ;;  %v1661_v13 = vld [vmem:[%s2318_s1 + $0x324] ss:$8 sps:$4 sm:$0xff]   ;;  %v1659_v15 = vld [vmem:[%s2318_s1 + $0x320] ss:$8 sps:$4 sm:$0xff]   ;;  %v1667_v17 = vld [vmem:[%s2318_s1 + $0x334] ss:$8 sps:$4 sm:$0xff]  }
  0x1d   :  { %1110 = vmatprep.subr.bf16.mxu0 %v1586_v29  ;;  %v1662_v18 = vld [vmem:[%s2318_s1 + $0x130] ss:$8 sps:$4 sm:$0xff]   ;;  %v1670_v20 = vld [vmem:[%s2318_s1 + $0x144] ss:$8 sps:$4 sm:$0xff]   ;;  %v1668_v22 = vld [vmem:[%s2318_s1 + $0x140] ss:$8 sps:$4 sm:$0xff]  }
  0x1e   :  { %v1665_v19 = vld [vmem:[%s2318_s1 + $0x330] ss:$8 sps:$4 sm:$0xff]   ;;  %v1673_v21 = vld [vmem:[%s2318_s1 + $0x344] ss:$8 sps:$4 sm:$0xff]   ;;  %v1671_v23 = vld [vmem:[%s2318_s1 + $0x340] ss:$8 sps:$4 sm:$0xff]  }
  0x1f   :  { %1005 = vmatpush1.bf16.msra.mxu1 %v1588_v30  ;;  %v1676_v24 = vld [vmem:[%s2318_s1 + $0x154] ss:$8 sps:$4 sm:$0xff]   ;;  %v1674_v26 = vld [vmem:[%s2318_s1 + $0x150] ss:$8 sps:$4 sm:$0xff]   ;;  %v1682_v28 = vld [vmem:[%s2318_s1 + $0x164] ss:$8 sps:$4 sm:$0xff]  }
  0x20   :  { %1111 = vmatpush1.bf16.msra.mxu0 %v1589_v31  ;;  %1006 = vmatprep.subr.bf16.mxu1 %v1590_v32  ;;  %v1679_v25 = vld [vmem:[%s2318_s1 + $0x354] ss:$8 sps:$4 sm:$0xff]   ;;  %v1677_v27 = vld [vmem:[%s2318_s1 + $0x350] ss:$8 sps:$4 sm:$0xff]   ;;  %v1732_v31 = vld [vmem:[%s2319_s0 + $0x48] ss:$36 sps:$4 sm:$0xff]  }
  0x21   :  { %1112 = vmatprep.subr.bf16.mxu0 %v1592_v33  ;;  %v1728_v29 = vld [vmem:[%s2319_s0 + $0x4c] ss:$36 sps:$4 sm:$0xff]   ;;  %v1730_v30 = vld [vmem:[%s2319_s0 + $0x5c] ss:$36 sps:$4 sm:$0xff]  }
  0x22   :  { %v1685_v32 = vld [vmem:[%s2318_s1 + $0x364] ss:$8 sps:$4 sm:$0xff]   ;;  %v1736_v33 = vld [vmem:[%s2319_s0 + $0x58] ss:$36 sps:$4 sm:$0xff]  }
  0x23   :  { %1007 = vmatpush1.bf16.msra.mxu1 %v1594_v34  ;;  %v1680_v34 = vld [vmem:[%s2318_s1 + $0x160] ss:$8 sps:$4 sm:$0xff]   ;;  %v1698_v48 = vld [vmem:[%s2318_s1 + $0x190] ss:$8 sps:$4 sm:$0xff]   ;;  %v1709_v51 = vld [vmem:[%s2318_s1 + $0x3a4] ss:$8 sps:$4 sm:$0xff]  }
  0x24   :  { %1113 = vmatpush1.bf16.msra.mxu0 %v1595_v35  ;;  %1008 = vmatprep.subr.bf16.mxu1 %v1596_v36  ;;  %v1683_v35 = vld [vmem:[%s2318_s1 + $0x360] ss:$8 sps:$4 sm:$0xff]   ;;  %v1688_v36 = vld [vmem:[%s2318_s1 + $0x174] ss:$8 sps:$4 sm:$0xff]  }
  0x25   :  { %1114 = vmatprep.subr.bf16.mxu0 %v1598_v37  ;;  %v1691_v37 = vld [vmem:[%s2318_s1 + $0x374] ss:$8 sps:$4 sm:$0xff]  }
  0x27   :  { %1009 = vmatpush1.bf16.msra.mxu1 %v1600_v38  ;;  %v1686_v38 = vld [vmem:[%s2318_s1 + $0x170] ss:$8 sps:$4 sm:$0xff]  }
  0x28   :  { %1115 = vmatpush1.bf16.msra.mxu0 %v1601_v39  ;;  %1010 = vmatprep.subr.bf16.mxu1 %v1602_v40  ;;  %v1689_v39 = vld [vmem:[%s2318_s1 + $0x370] ss:$8 sps:$4 sm:$0xff]   ;;  %v1694_v40 = vld [vmem:[%s2318_s1 + $0x184] ss:$8 sps:$4 sm:$0xff]  }
  0x29   :  { %1116 = vmatprep.subr.bf16.mxu0 %v1604_v41  ;;  %v1748_v41 = vld [vmem:[%s2319_s0 + $0xc] ss:$36 sps:$4 sm:$0xff]  }
  0x2b   :  { %1011 = vmatpush1.bf16.msra.mxu1 %v1606_v42  ;;  %v1697_v42 = vld [vmem:[%s2318_s1 + $0x384] ss:$8 sps:$4 sm:$0xff]  }
  0x2c   :  { %1117 = vmatpush1.bf16.msra.mxu0 %v1607_v43  ;;  %1012 = vmatprep.subr.bf16.mxu1 %v1608_v44  ;;  %v1751_v43 = vld [vmem:[%s2319_s0 + $0x1c] ss:$36 sps:$4 sm:$0xff]  }
  0x2d   :  { %1118 = vmatprep.subr.bf16.mxu0 %v1610_v45  ;;  %v1692_v44 = vld [vmem:[%s2318_s1 + $0x180] ss:$8 sps:$4 sm:$0xff]  }
  0x2e   :  { %v1695_v45 = vld [vmem:[%s2318_s1 + $0x380] ss:$8 sps:$4 sm:$0xff]  }
  0x2f   :  { %1013 = vmatpush1.bf16.msra.mxu1 %v1612_v46  ;;  %v1700_v46 = vld [vmem:[%s2318_s1 + $0x194] ss:$8 sps:$4 sm:$0xff]  }
  0x30   :  { %1119 = vmatpush1.bf16.msra.mxu0 %v1613_v47  ;;  %1014 = vmatprep.subr.bf16.mxu1 %v1614_v49  ;;  %v1703_v47 = vld [vmem:[%s2318_s1 + $0x394] ss:$8 sps:$4 sm:$0xff]   ;;  %v1701_v49 = vld [vmem:[%s2318_s1 + $0x390] ss:$8 sps:$4 sm:$0xff]  }
  0x31   :  { %1120 = vmatprep.subr.bf16.mxu0 %v1616_v50  ;;  %v1706_v50 = vld [vmem:[%s2318_s1 + $0x1a4] ss:$8 sps:$4 sm:$0xff]  }
  0x33   :  { %1015 = vmatpush1.bf16.msra.mxu1 %v1618_v52  ;;  %v1704_v52 = vld [vmem:[%s2318_s1 + $0x1a0] ss:$8 sps:$4 sm:$0xff]  }
  0x34   :  { %1121 = vmatpush1.bf16.msra.mxu0 %v1619_v53  ;;  %1016 = vmatprep.subr.bf16.mxu1 %v1620_v54  ;;  %v1707_v53 = vld [vmem:[%s2318_s1 + $0x3a0] ss:$8 sps:$4 sm:$0xff]   ;;  %v1712_v54 = vld [vmem:[%s2318_s1 + $0x1b4] ss:$8 sps:$4 sm:$0xff]  }
  0x35   :  { %1122 = vmatprep.subr.bf16.mxu0 %v1622_v55  ;;  %v1715_v55 = vld [vmem:[%s2318_s1 + $0x3b4] ss:$8 sps:$4 sm:$0xff]  }
  0x37   :  { %1017 = vmatpush1.bf16.msra.mxu1 %v1624_v56  ;;  %v1710_v56 = vld [vmem:[%s2318_s1 + $0x1b0] ss:$8 sps:$4 sm:$0xff]  }
  0x38   :  { %1123 = vmatpush1.bf16.msra.mxu0 %v1625_v57  ;;  %1018 = vmatprep.subr.bf16.mxu1 %v1626_v58  ;;  %v1713_v57 = vld [vmem:[%s2318_s1 + $0x3b0] ss:$8 sps:$4 sm:$0xff]   ;;  %v1718_v58 = vld [vmem:[%s2318_s1 + $0x1c4] ss:$8 sps:$4 sm:$0xff]  }
  0x39   :  { %1124 = vmatprep.subr.bf16.mxu0 %v1628_v59  ;;  %v1721_v59 = vld [vmem:[%s2318_s1 + $0x3c4] ss:$8 sps:$4 sm:$0xff]  }
  0x3b   :  { %1019 = vmatpush1.bf16.msra.mxu1 %v1630_v60  ;;  %v1716_v60 = vld [vmem:[%s2318_s1 + $0x1c0] ss:$8 sps:$4 sm:$0xff]  }
  0x3c   :  { %1125 = vmatpush1.bf16.msra.mxu0 %v1631_v61  ;;  %1020 = vmatprep.subr.bf16.mxu1 %v1632_v62  ;;  %v1719_v61 = vld [vmem:[%s2318_s1 + $0x3c0] ss:$8 sps:$4 sm:$0xff]   ;;  %v1724_v62 = vld [vmem:[%s2318_s1 + $0x1d4] ss:$8 sps:$4 sm:$0xff]  }
  0x3d   :  { %1126 = vmatprep.subr.bf16.mxu0 %v1634_v63  ;;  %v1727_v63 = vld [vmem:[%s2318_s1 + $0x3d4] ss:$8 sps:$4 sm:$0xff]  }
  0x3f   :  { %1021 = vmatpush1.bf16.msra.mxu1 %v1636_v0  ;;  %v1722_v0 = vld [vmem:[%s2318_s1 + $0x1d0] ss:$8 sps:$4 sm:$0xff]  }
  0x40   :  { %1127 = vmatpush1.bf16.msra.mxu0 %v1637_v1  ;;  %1043 = vmatprep.subr.bf16.mxu1 %v1643_v2  ;;  %v1725_v1 = vld [vmem:[%s2318_s1 + $0x3d0] ss:$8 sps:$4 sm:$0xff]   ;;  %v1735_v2 = vld [vmem:[%s2318_s1 + $0x1e4] ss:$8 sps:$4 sm:$0xff]  }
  0x41   :  { %1149 = vmatprep.subr.bf16.mxu0 %v1649_v3  ;;  %v1739_v3 = vld [vmem:[%s2318_s1 + $0x3e4] ss:$8 sps:$4 sm:$0xff]  }
  0x42   :  { %1023 = vmatmul.mubr.bf16.vlgmr.msra.gmra.mrb[0].mxu1 %v1638_v4  ;;  %v1733_v4 = vld [vmem:[%s2318_s1 + $0x1e0] ss:$8 sps:$4 sm:$0xff]  }
  0x43   :  { %1129 = vmatmul.mubr.bf16.vlgmr.msra.gmra.mrb[0].mxu0 %v1644_v6  ;;  %1044 = vmatpush1.bf16.msra.mxu1 %v1641_v5  ;;  %v1737_v5 = vld [vmem:[%s2318_s1 + $0x3e0] ss:$8 sps:$4 sm:$0xff]   ;;  %v1742_v6 = vld [vmem:[%s2318_s1 + $0x1f4] ss:$8 sps:$4 sm:$0xff]  }
  0x44   :  { %1150 = vmatpush1.bf16.msra.mxu0 %v1647_v7  ;;  %1045 = vmatprep.subr.bf16.mxu1 %v1652_v8  ;;  %v1745_v7 = vld [vmem:[%s2318_s1 + $0x3f4] ss:$8 sps:$4 sm:$0xff]   ;;  %v1740_v8 = vld [vmem:[%s2318_s1 + $0x1f0] ss:$8 sps:$4 sm:$0xff]  }
  0x45   :  { %1151 = vmatprep.subr.bf16.mxu0 %v1655_v9  ;;  %1032 = vmatprep.mubr.bf16.mxu1 %v1728_v29  ;;  %v1743_v9 = vld [vmem:[%s2318_s1 + $0x3f0] ss:$8 sps:$4 sm:$0xff]   ;;  %v1778_v29 = vld [vmem:[%s2318_s1 + $0x464] ss:$8 sps:$4 sm:$0xff]  }
  0x46   :  { %1138 = vmatprep.mubr.bf16.mxu0 %v1730_v30  ;;  %v1776_v30 = vld [vmem:[%s2318_s1 + $0x460] ss:$8 sps:$4 sm:$0xff]  }
  0x47   :  { %1046 = vmatpush1.bf16.msra.mxu1 %v1650_v10  ;;  %v1754_v10 = vld [vmem:[%s2318_s1 + $0x404] ss:$8 sps:$4 sm:$0xff]  }
  0x48   :  { %1152 = vmatpush1.bf16.msra.mxu0 %v1653_v11  ;;  %1047 = vmatprep.subr.bf16.mxu1 %v1658_v12  ;;  %v1746_v11 = vld [vmem:[%s2319_s0 + $0x8] ss:$36 sps:$4 sm:$0xff]   ;;  %v1749_v12 = vld [vmem:[%s2319_s0 + $0x18] ss:$36 sps:$4 sm:$0xff]  }
  0x49   :  { %1153 = vmatprep.subr.bf16.mxu0 %v1661_v13  ;;  %v1752_v13 = vld [vmem:[%s2318_s1 + $0x400] ss:$8 sps:$4 sm:$0xff]  }
  0x4a   :  { %1033 = vmatmul.mubr.bf16.gmra.mrb[4].mxu1 %v1732_v31  ;;  %v1781_v31 = vld [vmem:[%s2318_s1 + $0x474] ss:$8 sps:$4 sm:$0xff]  }
  0x4b   :  { %1048 = vmatpush1.bf16.msra.mxu1 %v1656_v14  ;;  %1139 = vmatmul.mubr.bf16.gmra.mrb[4].mxu0 %v1736_v33  ;;  %v1757_v14 = vld [vmem:[%s2318_s1 + $0x414] ss:$8 sps:$4 sm:$0xff]   ;;  %v1782_v33 = vld [vmem:[%s2319_s0 + $0x20] ss:$36 sps:$4 sm:$0xff]  }
  0x4c   :  { %1154 = vmatpush1.bf16.msra.mxu0 %v1659_v15  ;;  %1049 = vmatprep.subr.bf16.mxu1 %v1664_v16  ;;  %v1758_v15 = vld [vmem:[%s2319_s0 + $0x54] ss:$36 sps:$4 sm:$0xff]   ;;  %v1760_v16 = vld [vmem:[%s2319_s0 + $0x64] ss:$36 sps:$4 sm:$0xff]  }
  0x4d   :  { %1155 = vmatprep.subr.bf16.mxu0 %v1667_v17  ;;  %1075 = vmatprep.mubr.bf16.mxu1 %v1748_v41  ;;  %v1755_v17 = vld [vmem:[%s2318_s1 + $0x410] ss:$8 sps:$4 sm:$0xff]  }
  0x4e   :  { %1181 = vmatprep.mubr.bf16.mxu0 %v1751_v43 }
  0x4f   :  { %1050 = vmatpush1.bf16.msra.mxu1 %v1662_v18  ;;  %v1766_v18 = vld [vmem:[%s2318_s1 + $0x424] ss:$8 sps:$4 sm:$0xff]  }
  0x50   :  { %1156 = vmatpush1.bf16.msra.mxu0 %v1665_v19  ;;  %1051 = vmatprep.subr.bf16.mxu1 %v1670_v20  ;;  %v1762_v19 = vld [vmem:[%s2319_s0 + $0x50] ss:$36 sps:$4 sm:$0xff]   ;;  %v1763_v20 = vld [vmem:[%s2319_s0 + $0x60] ss:$36 sps:$4 sm:$0xff]  }
  0x51   :  { %1157 = vmatprep.subr.bf16.mxu0 %v1673_v21  ;;  %v1764_v21 = vld [vmem:[%s2318_s1 + $0x420] ss:$8 sps:$4 sm:$0xff]  }
  0x53   :  { %1052 = vmatpush1.bf16.msra.mxu1 %v1668_v22  ;;  %v1769_v22 = vld [vmem:[%s2318_s1 + $0x434] ss:$8 sps:$4 sm:$0xff]  }
  0x54   :  { %1158 = vmatpush1.bf16.msra.mxu0 %v1671_v23  ;;  %1053 = vmatprep.subr.bf16.mxu1 %v1676_v24  ;;  %v1767_v23 = vld [vmem:[%s2318_s1 + $0x430] ss:$8 sps:$4 sm:$0xff]   ;;  %v1772_v24 = vld [vmem:[%s2318_s1 + $0x444] ss:$8 sps:$4 sm:$0xff]  }
  0x55   :  { %1159 = vmatprep.subr.bf16.mxu0 %v1679_v25  ;;  %v1784_v25 = vmov 0  }
  0x57   :  { %1054 = vmatpush1.bf16.msra.mxu1 %v1674_v26  ;;  %v1770_v26 = vld [vmem:[%s2318_s1 + $0x440] ss:$8 sps:$4 sm:$0xff]  }
  0x58   :  { %1160 = vmatpush1.bf16.msra.mxu0 %v1677_v27  ;;  %1055 = vmatprep.subr.bf16.mxu1 %v1682_v28  ;;  %v1775_v27 = vld [vmem:[%s2318_s1 + $0x454] ss:$8 sps:$4 sm:$0xff]   ;;  %v1773_v28 = vld [vmem:[%s2318_s1 + $0x450] ss:$8 sps:$4 sm:$0xff]  }
  0x59   :  { %1161 = vmatprep.subr.bf16.mxu0 %v1685_v32  ;;  %v1779_v32 = vld [vmem:[%s2318_s1 + $0x470] ss:$8 sps:$4 sm:$0xff]  }
  0x5b   :  { %1056 = vmatpush1.bf16.msra.mxu1 %v1680_v34  ;;  %v1783_v34 = vld [vmem:[%s2319_s0 + $0x68] ss:$36 sps:$4 sm:$0xff]  }
  0x5c   :  { %1162 = vmatpush1.bf16.msra.mxu0 %v1683_v35  ;;  %1057 = vmatprep.subr.bf16.mxu1 %v1688_v36 }
  0x5d   :  { %1163 = vmatprep.subr.bf16.mxu0 %v1691_v37 }
  0x5f   :  { %1058 = vmatpush1.bf16.msra.mxu1 %v1686_v38 }
  0x60   :  { %1164 = vmatpush1.bf16.msra.mxu0 %v1689_v39  ;;  %1059 = vmatprep.subr.bf16.mxu1 %v1694_v40 }
  0x61   :  { %1165 = vmatprep.subr.bf16.mxu0 %v1697_v42 }
  0x63   :  { %1060 = vmatpush1.bf16.msra.mxu1 %v1692_v44 }
  0x64   :  { %1166 = vmatpush1.bf16.msra.mxu0 %v1695_v45  ;;  %1061 = vmatprep.subr.bf16.mxu1 %v1700_v46 }
  0x65   :  { %1167 = vmatprep.subr.bf16.mxu0 %v1703_v47 }
  0x67   :  { %1062 = vmatpush1.bf16.msra.mxu1 %v1698_v48 }
  0x68   :  { %1168 = vmatpush1.bf16.msra.mxu0 %v1701_v49  ;;  %1063 = vmatprep.subr.bf16.mxu1 %v1706_v50 }
  0x69   :  { %1169 = vmatprep.subr.bf16.mxu0 %v1709_v51 }
  0x6b   :  { %1064 = vmatpush1.bf16.msra.mxu1 %v1704_v52 }
  0x6c   :  { %1170 = vmatpush1.bf16.msra.mxu0 %v1707_v53  ;;  %1065 = vmatprep.subr.bf16.mxu1 %v1712_v54 }
  0x6d   :  { %1171 = vmatprep.subr.bf16.mxu0 %v1715_v55 }
  0x6f   :  { %1066 = vmatpush1.bf16.msra.mxu1 %v1710_v56 }
  0x70   :  { %1172 = vmatpush1.bf16.msra.mxu0 %v1713_v57  ;;  %1067 = vmatprep.subr.bf16.mxu1 %v1718_v58 }
  0x71   :  { %1173 = vmatprep.subr.bf16.mxu0 %v1721_v59 }
  0x73   :  { %1068 = vmatpush1.bf16.msra.mxu1 %v1716_v60 }
  0x74   :  { %1174 = vmatpush1.bf16.msra.mxu0 %v1719_v61  ;;  %1069 = vmatprep.subr.bf16.mxu1 %v1724_v62 }
  0x75   :  { %1175 = vmatprep.subr.bf16.mxu0 %v1727_v63 }
  0x77   :  { %1070 = vmatpush1.bf16.msra.mxu1 %v1722_v0 }
  0x78   :  { %1176 = vmatpush1.bf16.msra.mxu0 %v1725_v1  ;;  %1071 = vmatprep.subr.bf16.mxu1 %v1735_v2 }
  0x79   :  { %1177 = vmatprep.subr.bf16.mxu0 %v1739_v3 }
  0x7b   :  { %1072 = vmatpush1.bf16.msra.mxu1 %v1733_v4 }
  0x7c   :  { %1178 = vmatpush1.bf16.msra.mxu0 %v1737_v5  ;;  %1073 = vmatprep.subr.bf16.mxu1 %v1742_v6 }
  0x7d   :  { %1179 = vmatprep.subr.bf16.mxu0 %v1745_v7 }
  0x7f   :  { %1074 = vmatpush1.bf16.msra.mxu1 %v1740_v8 }
  0x80   :  { %1180 = vmatpush1.bf16.msra.mxu0 %v1743_v9  ;;  %1493 = vmatprep.subr.bf16.mxu1 %v1754_v10 }
  0x81   :  { %1202 = vmatprep.subr.bf16.mxu0 %v1754_v10 }
  0x82   :  { %1076 = vmatmul.mubr.bf16.vlgmr.msra.gmra.mrb[0].mxu1 %v1746_v11 }
  0x83   :  { %1182 = vmatmul.mubr.bf16.vlgmr.msra.gmra.mrb[0].mxu0 %v1749_v12  ;;  %1501 = vmatpush1.bf16.msra.mxu1 %v1752_v13 }
  0x84   :  { %1203 = vmatpush1.bf16.msra.mxu0 %v1752_v13  ;;  %1494 = vmatprep.subr.bf16.mxu1 %v1757_v14 }
  0x85   :  { %1204 = vmatprep.subr.bf16.mxu0 %v1757_v14  ;;  %1085 = vmatprep.mubr.bf16.mxu1 %v1758_v15 }
  0x86   :  { %1191 = vmatprep.mubr.bf16.mxu0 %v1760_v16 }
  0x87   :  { %1502 = vmatpush1.bf16.msra.mxu1 %v1755_v17 }
  0x88   :  { %1205 = vmatpush1.bf16.msra.mxu0 %v1755_v17  ;;  %1495 = vmatprep.subr.bf16.mxu1 %v1766_v18 }
  0x89   :  { %1206 = vmatprep.subr.bf16.mxu0 %v1766_v18 }
  0x8a   :  { %1086 = vmatmul.mubr.bf16.gmra.mrb[4].mxu1 %v1762_v19 }
  0x8b   :  { %1192 = vmatmul.mubr.bf16.gmra.mrb[4].mxu0 %v1763_v20  ;;  %1503 = vmatpush1.bf16.msra.mxu1 %v1764_v21 }
  0x8c   :  { %1207 = vmatpush1.bf16.msra.mxu0 %v1764_v21  ;;  %1496 = vmatprep.subr.bf16.mxu1 %v1769_v22 }
  0x8d   :  { %1208 = vmatprep.subr.bf16.mxu0 %v1769_v22  ;;  %1234 = vmatprep.mubr.bf16.mxu0 %v1784_v25 }
  0x8e   :  { %1244 = vmatprep.mubr.bf16.mxu1 %v1784_v25 }
  0x8f   :  { %1504 = vmatpush1.bf16.msra.mxu1 %v1767_v23 }
  0x90   :  { %1209 = vmatpush1.bf16.msra.mxu0 %v1767_v23  ;;  %1497 = vmatprep.subr.bf16.mxu1 %v1772_v24 }
  0x91   :  { %1210 = vmatprep.subr.bf16.mxu0 %v1772_v24 }
  0x93   :  { %1505 = vmatpush1.bf16.msra.mxu1 %v1770_v26 }
  0x94   :  { %1211 = vmatpush1.bf16.msra.mxu0 %v1770_v26  ;;  %1498 = vmatprep.subr.bf16.mxu1 %v1775_v27 }
  0x95   :  { %1212 = vmatprep.subr.bf16.mxu0 %v1775_v27 }
  0x97   :  { %1506 = vmatpush1.bf16.msra.mxu1 %v1773_v28 }
  0x98   :  { %1213 = vmatpush1.bf16.msra.mxu0 %v1773_v28  ;;  %1499 = vmatprep.subr.bf16.mxu1 %v1778_v29 }
  0x99   :  { %1214 = vmatprep.subr.bf16.mxu0 %v1778_v29 }
  0x9b   :  { %1507 = vmatpush1.bf16.msra.mxu1 %v1776_v30 }
  0x9c   :  { %1215 = vmatpush1.bf16.msra.mxu0 %v1776_v30  ;;  %1500 = vmatprep.subr.bf16.mxu1 %v1781_v31 }
  0x9d   :  { %1216 = vmatprep.subr.bf16.mxu0 %v1781_v31 }
  0x9f   :  { %1508 = vmatpush1.bf16.msra.mxu1 %v1779_v32 }
  0xa0   :  { %1217 = vmatpush1.bf16.msra.mxu0 %v1779_v32 }
  0xa2   :  { %1245 = vmatmul.mubr.bf16.vlgmr.msra.gmra.mrb[8].mxu1 %v1783_v34 }
  0xa3   :  { %1235 = vmatmul.mubr.bf16.vlgmr.msra.gmra.mrb[0].mxu0 %v1782_v33 }
 0x155   :  { %v1077_v35 = vpop.f32.mrb[0].mxu1 }
 0x156   :  { %v1079_v36 = vpop.f32.mrb[1].mxu1 }
 0x157   :  { %v1081_v37 = vpop.f32.mrb[2].mxu1 }
 0x158   :  { %v1083_v38 = vpop.f32.mrb[3].mxu1 }
 0x15d   :  { %v1087_v39 = vpop.f32.mrb[4].mxu1 }
 0x15e   :  { %v1193_v40 = vpop.f32.mrb[4].mxu0  ;;  %v1089_v42 = vpop.f32.mrb[5].mxu1 }
 0x15f   :  { %v1513_v41 = vadd.f32 %v1193_v40, %v1087_v39  ;;  %v1195_v43 = vpop.f32.mrb[5].mxu0  ;;  %v1091_v45 = vpop.f32.mrb[6].mxu1 }
 0x160   :  { %v1515_v44 = vadd.f32 %v1195_v43, %v1089_v42  ;;  %v1197_v46 = vpop.f32.mrb[6].mxu0  ;;  %v1093_v48 = vpop.f32.mrb[7].mxu1 }
 0x161   :  { %v1517_v47 = vadd.f32 %v1197_v46, %v1091_v45  ;;  %v1199_v49 = vpop.f32.mrb[7].mxu0 }
 0x162   :  { %v1519_v50 = vadd.f32 %v1199_v49, %v1093_v48 }
 0x175   :  { %v1246_v52 = vpop.f32.mrb[8].mxu1 }
 0x176   :  { %v1236_v51 = vpop.f32.mrb[0].mxu0  ;;  %v1514_v54 = vadd.f32 %v1513_v41, %v1246_v52  ;;  %v1248_v56 = vpop.f32.mrb[9].mxu1 }
 0x177   :  { %v1509_v53 = vadd.f32 %v1236_v51, %v1077_v35  ;;  %v1238_v55 = vpop.f32.mrb[1].mxu0  ;;  %v1516_v58 = vadd.f32 %v1515_v44, %v1248_v56  ;;  %v1250_v60 = vpop.f32.mrb[10].mxu1 }
 0x178   :  { %v1510_v57 = vadd.f32 %v1238_v55, %v1079_v36  ;;  %v1240_v59 = vpop.f32.mrb[2].mxu0  ;;  %1259 = vst [vmem:[%s2320_s2 + $0x20] sm:$0xff] %v1514_v54  ;;  %v1518_v62 = vadd.f32 %v1517_v47, %v1250_v60  ;;  %v1252_v0 = vpop.f32.mrb[11].mxu1  ;;  %v1285_v9 = vmul.f32 %v1514_v54, %v1514_v54 }
 0x179   :  { %1255 = vst [vmem:[%s2320_s2] sm:$0xff] %v1509_v53  ;;  %v1511_v61 = vadd.f32 %v1240_v59, %v1081_v37  ;;  %v1242_v63 = vpop.f32.mrb[3].mxu0  ;;  %1260 = vst [vmem:[%s2320_s2 + $0x28] sm:$0xff] %v1516_v58  ;;  %v1520_v2 = vadd.f32 %v1519_v50, %v1252_v0  ;;  %v1281_v3 = vmul.f32 %v1509_v53, %v1509_v53 }
 0x17a   :  { %1256 = vst [vmem:[%s2320_s2 + $0x8] sm:$0xff] %v1510_v57  ;;  %v1512_v1 = vadd.f32 %v1242_v63, %v1083_v38  ;;  %1261 = vst [vmem:[%s2320_s2 + $0x30] sm:$0xff] %v1518_v62  ;;  %v1282_v6 = vmul.f32 %v1510_v57, %v1510_v57  ;;  %v1286_v12 = vmul.f32 %v1516_v58, %v1516_v58 }
 0x17b   :  { %1257 = vst [vmem:[%s2320_s2 + $0x10] sm:$0xff] %v1511_v61  ;;  %v1263_v4 = vadd.f32 %v1511_v61, %v1509_v53  ;;  %v1283_v5 = vmul.f32 %v1511_v61, %v1511_v61  ;;  %1262 = vst [vmem:[%s2320_s2 + $0x38] sm:$0xff] %v1520_v2  ;;  %v1287_v16 = vmul.f32 %v1518_v62, %v1518_v62 }
 0x17c   :  { %1258 = vst [vmem:[%s2320_s2 + $0x18] sm:$0xff] %v1512_v1  ;;  %v1272_v7 = vadd.f32 %v1512_v1, %v1510_v57  ;;  %v1284_v8 = vmul.f32 %v1512_v1, %v1512_v1  ;;  %v1288_v19 = vmul.f32 %v1520_v2, %v1520_v2 }
 0x17d   :  { %v1289_v10 = vadd.f32 %v1283_v5, %v1281_v3  ;;  %v1264_v11 = vadd.f32 %v1514_v54, %v1263_v4 }
 0x17e   :  { %v1298_v13 = vadd.f32 %v1284_v8, %v1282_v6  ;;  %v1273_v14 = vadd.f32 %v1516_v58, %v1272_v7 }
 0x17f   :  { %v1265_v15 = vadd.f32 %v1518_v62, %v1264_v11  ;;  %v1290_v17 = vadd.f32 %v1289_v10, %v1285_v9 }
 0x180   :  { %v1274_v18 = vadd.f32 %v1520_v2, %v1273_v14  ;;  %v1299_v20 = vadd.f32 %v1298_v13, %v1286_v12 }
 0x181   :  { %v1266_v21 = vrot.slane %v1265_v15, 4  ;;  %v1291_v22 = vadd.f32 %v1290_v17, %v1287_v16 }
 0x182   :  { %v1275_v23 = vrot.slane %v1274_v18, 4  ;;  %v1300_v24 = vadd.f32 %v1299_v20, %v1288_v19 }
 0x183   :  { %v1267_v25 = vadd.f32 %v1266_v21, %v1265_v15  ;;  %v1292_v26 = vrot.slane %v1291_v22, 4 }
 0x184   :  { %v1276_v27 = vadd.f32 %v1275_v23, %v1274_v18  ;;  %v1301_v28 = vrot.slane %v1300_v24, 4 }
 0x185   :  { %v1268_v29 = vrot.slane %v1267_v25, 2  ;;  %v1293_v30 = vadd.f32 %v1292_v26, %v1291_v22 }
 0x186   :  { %v1277_v31 = vrot.slane %v1276_v27, 2  ;;  %v1302_v32 = vadd.f32 %v1301_v28, %v1300_v24 }
 0x187   :  { %v1269_v33 = vadd.f32 %v1268_v29, %v1267_v25  ;;  %v1294_v34 = vrot.slane %v1293_v30, 2 }
 0x188   :  { %v1278_v35 = vadd.f32 %v1277_v31, %v1276_v27  ;;  %v1303_v36 = vrot.slane %v1302_v32, 2 }
 0x189   :  { %v1270_v37 = vrot.slane %v1269_v33, 1  ;;  %v1295_v38 = vadd.f32 %v1294_v34, %v1293_v30 }
 0x18a   :  { %v1279_v39 = vrot.slane %v1278_v35, 1  ;;  %v1304_v40 = vadd.f32 %v1303_v36, %v1302_v32 }
 0x18b   :  { %v1296_v41 = vrot.slane %v1295_v38, 1  ;;  %v1271_v43 = vadd.f32 %v1270_v37, %v1269_v33 }
 0x18c   :  { %v1305_v42 = vrot.slane %v1304_v40, 1  ;;  %v1280_v45 = vadd.f32 %v1279_v39, %v1278_v35 }
 0x18d   :  { %v1297_v44 = vadd.f32 %v1296_v41, %v1295_v38 }
 0x18e   :  { %v1306_v46 = vadd.f32 %v1305_v42, %v1304_v40 }
 0x18f   :  { %v1308_v47 = vsel %vm1307_vm0, %v1271_v43, %v1297_v44 }
 0x190   :  { %v1309_v48 = vsel %vm1307_vm0, %v1280_v45, %v1306_v46 }
 0x191   :  { %v1312_v49 = vcombine.low %v1308_v47, %v1309_v48 }
 0x193   :  { %1492 = vst.sshfl [vmem:[%s2321_s3] sm:$0x33 pattern:$0x76325410] %v1312_v49 }

// kernel: generator_forward.6
= control target key start
LH: loop header
LB: loop body
LE: loop exit
PB: predicated region body
PF: predicated region fallthrough
CT: control target
= control target key end

     0   :  { %9 = vsyncpa [#allocation3], 0  ;;  %s6375_s0 = inlined_call_operand.vmem [shape: bf16[8,1024], index: 0, kind: input, shape index: {}]   ;;  %s6376_s1 = inlined_call_operand.hbm [shape: bf16[1024,2048], index: 1, kind: input, shape index: {}]   ;;  %s6377_s2 = inlined_call_operand.hbm [shape: f32[1,2048], index: 2, kind: input, shape index: {}]   ;;  %s6378_s3 = inlined_call_operand.hbm [shape: f32[1,2048], index: 3, kind: input, shape index: {}]   ;;  %s6379_s4 = inlined_call_operand.vmem [shape: bf16[8,2048], index: 4, kind: output, shape index: {}]  }
   0x1   :  { %11 = vsyncpa [#allocation3 + $0x1], 0 }
   0x2   :  { %12 = vsyncpa [#allocation5], 0 }
   0x3   :  { %14 = vsyncpa [#allocation5 + $0x1], 0  ;;  %s5333_s15 = smov 0   ;;  %s5335_s16 = smov 0  }
   0x4   :  { %s5337_s17 = smov 0   ;;  %s5339_s18 = smov 0  }
   0x5 LB: > { %s5352_s19 = sadd.s32 4294967295, %s5300_s18   ;;  %s5355_s20 = sadd.s32 1, %s5300_s18   ;;  %s5300_s18 = sphi %s5339_s18, %s6393_s18   ;;  %s5296_s17 = sphi %s5337_s17, %s6392_s17   ;;  %s5292_s16 = sphi %s5335_s16, %s6391_s16   ;;  %s5288_s15 = sphi %s5333_s15, %s6390_s15  }
   0x6   : > { %s45_s21 = ssub.s32 %s5300_s18, %s5355_s20  ;;  %s48_s22 = sadd.s32 1, %s5296_s17 }
   0x7   : > { %p46_p0 = scmp.eq.s32.totalorder %s45_s21, 0  ;;  %p55_p1 = scmp.ne.s32.totalorder %s5296_s17, %s5292_s16 }
   0x8   : > { %p56_p2 = scmp.eq.s32.totalorder %s5300_s18, 0  ;;  %p61_p3 = scmp.ne.s32.totalorder %s5292_s16, %s5288_s15 }
   0x9   : > { %s5365_s23 = scalar_select %p46_p0, %s5296_s17, %s48_s22  }
   0xa   : > { %p57_p4 = por %p56_p2, %p55_p1  ;;  %p62_p5 = scmp.eq.s32.totalorder %s5352_s19, 0 }
   0xb   : > { %p5112_p6 = scmp.lt.s32.totalorder %s5300_s18, 2  ;;  %s5374_s25 = sand.u32 1, %s5296_s17  }
   0xc   : > { %p5369_p7 = por %p62_p5, %p61_p3  ;;  %s4500_s26 = sshll.u32 %s5374_s25, 12 }
   0xd   : > { %p5377_p8 = pnand %p5112_p6, %p57_p4  ;;  %s170_s28 = scalar_lea.vmem [#allocation2], %s4500_s26 }
   0xe   : > { %s6382_s24 = scalar_select %p5369_p7, 1, 0 }
   0xf   : > { %s6383_s27 = scalar_select %p5377_p8, 1, 0 }
  0x10   : > { %s177_s29 = sshll.u32 %s170_s28, 4  ;;  %s187_s30 = sand.u32 1, %s5300_s18   ;;  %s5382_s29 = int_to_ptr.vmem [resolvable:$true] %s177_s29 }
  0x11   : > { %s4503_s5 = sshll.u32 %s5374_s25, 3  ;;  %s5042_s6 = sshll.u32 %s5300_s18, 7 }
  0x12   : > { %s5391_s9 = scalar_lea.hbm %s6377_s2, %s5042_s6  ;;  %s191_s10 = scalar_lea.vmem [#allocation4], %s4503_s5 }
  0x13   : > { %s199_s11 = sshll.u32 %s191_s10, 4  ;;  %s5397_s12 = scalar_lea.sflag [#allocation5], %s187_s30  ;;  %s5395_s11 = int_to_ptr.vmem [resolvable:$true] %s199_s11 }
  0x14   : > { %s5172_s13 = scalar_lea.hbm %s5391_s9, 128  ;;  %p5403_p10 = pneg %p5377_p8 }
  0x15   : > { %p5173_p9 = scmp.ne.s32.totalorder %s5391_s9, %s5172_s13  ;;  %s5177_s22 = scalar_lea.hbm %s6377_s2, 256 }
  0x16   : > { %p5178_p13 = scmp.lt.u32.totalorder %s5391_s9, %s6377_s2  ;;  %p5179_p0 = scmp.lt.u32.totalorder %s5177_s22, %s5172_s13 }
  0x17   : > { %p5175_p11 = pnand %p5403_p10, %p5173_p9  ;;  %p5181_p2 = scmp.lt.u32.totalorder %s5172_s13, %s5391_s9 }
  0x18   : > { %p5180_p1 = por %p5179_p0, %p5178_p13 }
  0x19   : > { %p5176_p12 = pneg %p5175_p11 }
  0x1a   : > { %p5182_p3 = por %p5181_p2, %p5180_p1 }
  0x1c   : > { %p5183_p4 = pnand %p5182_p3, %p5176_p12 }
  0x1e   : > { %5186 = shalt.err (!%p5183_p4)
}
  0x1f   : > { %s5187_s30 = scalar_lea.vmem %s5395_s11, 128  ;;  %s5302_s7 = smov [#allocation4]  }
  0x20   : > { %p5188_p5 = scmp.ne.s32.totalorder %s5395_s11, %s5187_s30  ;;  %s5192_s8 = sshll.u32 %s5302_s7, 4  ;;  %s5193_s8 = int_to_ptr.vmem [resolvable:$false] %s5192_s8 }
  0x21   : > { %s5194_s10 = scalar_lea.vmem %s5193_s8, 256  ;;  %p5195_p11 = scmp.lt.s32.totalorder %s5395_s11, %s5193_s8 }
  0x22   : > { %p5190_p6 = pnand %p5188_p5, %p5403_p10  ;;  %p5196_p7 = scmp.lt.s32.totalorder %s5194_s10, %s5187_s30 }
  0x24   : > { %p5191_p9 = pneg %p5190_p6  ;;  %p5197_p13 = por %p5196_p7, %p5195_p11 }
  0x26   : > { %p5198_p0 = pnand %p5197_p13, %p5191_p9 }
  0x28   : > { %5201 = shalt.err (!%p5198_p0)
}
  0x29   : > { %5108 = dma.hbm_to_vmem [thread:$0]  (!%p5377_p8), %s5391_s9, 128, %s5395_s11, %s5397_s12  }
  0x2a   : > { %s5432_s21 = scalar_lea.hbm %s6378_s3, %s5042_s6  ;;  %p4509_p7 = scmp.ge.s32.totalorder %s5300_s18, 1 }
  0x2b   : > { %p223_p12 = scmp.lt.s32.totalorder %s5300_s18, 3  ;;  %s5041_s22 = sshll.u32 %s5300_s18, 9 }
  0x2c   : > { %s5440_s30 = scalar_lea.hbm %s6376_s1, %s5041_s22  ;;  %s5448_s11 = scalar_lea.vmem [#allocation6], %s4503_s5 }
  0x2d   : > { %p5442_p1 = pnand %p4509_p7, %p223_p12  ;;  %s218_s6 = sshll.u32 %s5448_s11, 4  ;;  %s219_s6 = int_to_ptr.vmem [resolvable:$true] %s218_s6 }
  0x2e   : > { %s167_s7 = scalar_lea.sflag [#allocation3], %s5374_s25  ;;  %s5202_s18 = scalar_lea.hbm %s5440_s30, 65536 }
  0x2f   : > { %s6385_s9 = scalar_select %p5442_p1, 1, 0 }
  0x30   : > { %p5203_p2 = scmp.ne.s32.totalorder %s5440_s30, %s5202_s18  ;;  %s5207_s13 = scalar_lea.hbm %s6376_s1, 131072 }
  0x31   : > { %p5208_p5 = scmp.lt.u32.totalorder %s5440_s30, %s6376_s1  ;;  %p5209_p6 = scmp.lt.u32.totalorder %s5207_s13, %s5202_s18 }
  0x32   : > { %p5205_p3 = pnand %p5203_p2, %p5403_p10  ;;  %p5211_p11 = scmp.lt.u32.totalorder %s5202_s18, %s5440_s30 }
  0x33   : > { %p5210_p9 = por %p5209_p6, %p5208_p5 }
  0x34   : > { %p5206_p4 = pneg %p5205_p3 }
  0x35   : > { %p5212_p13 = por %p5211_p11, %p5210_p9 }
  0x37   : > { %p5213_p0 = pnand %p5212_p13, %p5206_p4 }
  0x39   : > { %5216 = shalt.err (!%p5213_p0)
}
  0x3a   : > { %s5217_s5 = scalar_lea.vmem %s5382_s29, 65536  ;;  %s5303_s26 = smov [#allocation2]  }
  0x3b   : > { %p5218_p7 = scmp.ne.s32.totalorder %s5382_s29, %s5217_s5  ;;  %s5222_s28 = sshll.u32 %s5303_s26, 4  ;;  %s5223_s28 = int_to_ptr.vmem [resolvable:$false] %s5222_s28 }
  0x3c   : > { %s5224_s8 = scalar_lea.vmem %s5223_s28, 131072  ;;  %p5225_p3 = scmp.lt.s32.totalorder %s5382_s29, %s5223_s28 }
  0x3d   : > { %p5220_p12 = pnand %p5218_p7, %p5403_p10  ;;  %p5226_p1 = scmp.lt.s32.totalorder %s5224_s8, %s5217_s5 }
  0x3f   : > { %p5221_p2 = pneg %p5220_p12  ;;  %p5227_p5 = por %p5226_p1, %p5225_p3 }
  0x41   : > { %p5228_p6 = pnand %p5227_p5, %p5221_p2 }
  0x43   : > { %5231 = shalt.err (!%p5228_p6)
}
  0x44   : > { %s5304_s18 = smov 1024   ;;  %s5305_s10 = smov 512  }
  0x45   : > { %s5306_s13 = smov 32   ;;  %s5232_s15 = scalar_lea.hbm %s5432_s21, 128 }
  0x46   : > { %5105 = dma.hbm_to_vmem [thread:$0]  (!%p5377_p8), %s5440_s30, 65536, %s5382_s29, %s167_s7, %s5304_s18, %s5305_s10, %s5306_s13  }
  0x47   : > { %p5233_p1 = scmp.ne.s32.totalorder %s5432_s21, %s5232_s15  ;;  %s5237_s26 = scalar_lea.hbm %s6378_s3, 256 }
  0x48   : > { %p5238_p11 = scmp.lt.u32.totalorder %s5432_s21, %s6378_s3  ;;  %p5239_p13 = scmp.lt.u32.totalorder %s5237_s26, %s5232_s15 }
  0x49   : > { %p5235_p4 = pnand %p5233_p1, %p5403_p10  ;;  %p5241_p7 = scmp.lt.u32.totalorder %s5232_s15, %s5432_s21 }
  0x4a   : > { %p5240_p0 = por %p5239_p13, %p5238_p11 }
  0x4b   : > { %p5236_p9 = pneg %p5235_p4 }
  0x4c   : > { %p5242_p12 = por %p5241_p7, %p5240_p0 }
  0x4e   : > { %p5243_p2 = pnand %p5242_p12, %p5236_p9 }
  0x50   : > { %5246 = shalt.err (!%p5243_p2)
}
  0x51   : > { %s5247_s25 = scalar_lea.vmem %s219_s6, 128  ;;  %s5307_s29 = smov [#allocation6]  }
  0x52   : > { %p5248_p3 = scmp.ne.s32.totalorder %s219_s6, %s5247_s25  ;;  %s5252_s30 = sshll.u32 %s5307_s29, 4  ;;  %s5253_s30 = int_to_ptr.vmem [resolvable:$false] %s5252_s30 }
  0x53   : > { %s5254_s11 = scalar_lea.vmem %s5253_s30, 256  ;;  %p5255_p1 = scmp.lt.s32.totalorder %s219_s6, %s5253_s30 }
  0x54   : > { %p5250_p5 = pnand %p5248_p3, %p5403_p10  ;;  %p5256_p4 = scmp.lt.s32.totalorder %s5254_s11, %s5247_s25 }
  0x56   : > { %p5251_p6 = pneg %p5250_p5  ;;  %p5257_p8 = por %p5256_p4, %p5255_p1 }
  0x58   : > { %p5258_p11 = pnand %p5257_p8, %p5251_p6 }
  0x5a   : > { %5261 = shalt.err (!%p5258_p11)
}
  0x5b   : > { %p6386_p13 = scmp.ne.s32.totalorder %s6383_s27, 0  ;;  %p6387_p9 = scmp.ne.s32.totalorder %s6385_s9, 0 }
  0x5c   : > { %s5498_s14 = sand.u32 (!%p6387_p9), 1, %s5292_s16   ;;  %p6388_p8 = scmp.ne.s32.totalorder (!%p6387_p9), %s6382_s24, 0 }
  0x5d   : > { %5111 = dma.hbm_to_vmem [thread:$0]  (!%p6386_p13), %s5432_s21, 128, %s219_s6, %s5397_s12  }
  0x5e   : > { %227 = sbr.rel (%p6387_p9) target bundleno = 881 (0x371), region = 36  ;;  %s4510_s7 = sshll.u32 (!%p6387_p9), %s5498_s14, 12 }
  0x5f   : > { %s230_s18 = scalar_lea.sflag (!%p6387_p9), [#allocation3], %s5498_s14  ;;  %s5502_s10 = scalar_lea.vmem (!%p6387_p9), [#allocation2], %s4510_s7 }
  0x65   : > { %5279 = dma.done.wait (%p6388_p8), %s230_s18, 65536  }
  0x66   : > { %5281 = vsyncadd (%p6388_p8), %s230_s18, 4294901760  ;;  %s238_s27 = sand.u32 1, %s5352_s19   ;;  %s4511_s12 = sshll.u32 %s5498_s14, 3 }
  0x67   : > { %s239_s21 = scalar_lea.sflag [#allocation5], %s238_s27  ;;  %s5512_s9 = scalar_lea.vmem [#allocation4], %s4511_s12 }
  0x68   : > { %5283 = dma.done.wait (%p6388_p8), %s239_s21, 256  }
  0x69   : > { %5285 = vsyncadd (%p6388_p8), %s239_s21, 4294967040  ;;  %v299_v0 = vld [vmem:[%s5502_s10] sm:$0xff]  ;;  %v300_v2 = vld [vmem:[%s5502_s10 + $0x8] sm:$0xff]  ;;  %s251_s8 = scalar_lea.vmem [#allocation6], %s4511_s12  ;;  %s4513_s25 = sshll.u32 %s5352_s19, 3 }
  0x6a   : > { %v303_v1 = vld [vmem:[%s5502_s10 + $0x20] sm:$0xff]  ;;  %v304_v4 = vld [vmem:[%s5502_s10 + $0x28] sm:$0xff]  ;;  %p6277_p10 = scmp.lt.s32.totalorder %s4513_s25, 15 }
  0x6b   : > { %v4524_v3 = vcombine.high %v299_v0, %v303_v1  ;;  %v4523_v5 = vcombine.low %v299_v0, %v303_v1  ;;  %v307_v6 = vld [vmem:[%s5502_s10 + $0x40] sm:$0xff]  ;;  %v4526_v8 = vcombine.high %v300_v2, %v304_v4  ;;  %v4525_v9 = vcombine.low %v300_v2, %v304_v4  ;;  %v308_v11 = vld [vmem:[%s5502_s10 + $0x48] sm:$0xff] }
  0x6c   : > { %v311_v7 = vld [vmem:[%s5502_s10 + $0x60] sm:$0xff]  ;;  %v312_v12 = vld [vmem:[%s5502_s10 + $0x68] sm:$0xff]  ;;  %s6395_s25 = smov (!%p6277_p10, %s4513_s25), 15 }
  0x6d   : > { %v4532_v10 = vcombine.high %v307_v6, %v311_v7  ;;  %v315_v13 = vld [vmem:[%s5502_s10 + $0x80] sm:$0xff]  ;;  %3399 = vmatprep.subr.bf16.mxu0 %v4524_v3  ;;  %v4534_v14 = vcombine.high %v308_v11, %v312_v12  ;;  %v316_v16 = vld [vmem:[%s5502_s10 + $0x88] sm:$0xff]  ;;  %3563 = vmatprep.subr.bf16.mxu1 %v4526_v8  ;;  %v4531_v18 = vcombine.low %v307_v6, %v311_v7  ;;  %s4514_s19 = sshll.u32 %s6395_s25, 2 }
  0x6e   : > { %v319_v15 = vld [vmem:[%s5502_s10 + $0xa0] sm:$0xff]  ;;  %v320_v17 = vld [vmem:[%s5502_s10 + $0xa8] sm:$0xff]  ;;  %3400 = vmatpush1.bf16.msra.mxu0 %v4523_v5  ;;  %3564 = vmatpush1.bf16.msra.mxu1 %v4525_v9  ;;  %v4533_v19 = vcombine.low %v308_v11, %v312_v12  ;;  %s6302_s14 = scalar_lea.vmem %s6379_s4, %s4514_s19 }
  0x6f   : > { %3401 = vmatprep.subr.bf16.mxu0 %v4532_v10  ;;  %v4540_v20 = vcombine.high %v315_v13, %v319_v15  ;;  %3565 = vmatprep.subr.bf16.mxu1 %v4534_v14  ;;  %v4542_v21 = vcombine.high %v316_v16, %v320_v17  ;;  %v323_v22 = vld [vmem:[%s5502_s10 + $0xc0] sm:$0xff]  ;;  %v324_v24 = vld [vmem:[%s5502_s10 + $0xc8] sm:$0xff]  ;;  %v4539_v26 = vcombine.low %v315_v13, %v319_v15 }
  0x70   : > { %v327_v23 = vld [vmem:[%s5502_s10 + $0xe0] sm:$0xff]  ;;  %v328_v25 = vld [vmem:[%s5502_s10 + $0xe8] sm:$0xff]  ;;  %v4541_v27 = vcombine.low %v316_v16, %v320_v17 }
  0x71   : > { %v4548_v28 = vcombine.high %v323_v22, %v327_v23  ;;  %v4550_v29 = vcombine.high %v324_v24, %v328_v25  ;;  %v331_v30 = vld [vmem:[%s5502_s10 + $0x100] sm:$0xff]  ;;  %v332_v32 = vld [vmem:[%s5502_s10 + $0x108] sm:$0xff]  ;;  %v4547_v34 = vcombine.low %v323_v22, %v327_v23  ;;  %v4549_v35 = vcombine.low %v324_v24, %v328_v25 }
  0x72   : > { %3402 = vmatpush1.bf16.msra.mxu0 %v4531_v18  ;;  %3566 = vmatpush1.bf16.msra.mxu1 %v4533_v19  ;;  %v335_v31 = vld [vmem:[%s5502_s10 + $0x120] sm:$0xff]  ;;  %v336_v33 = vld [vmem:[%s5502_s10 + $0x128] sm:$0xff] }
  0x73   : > { %3403 = vmatprep.subr.bf16.mxu0 %v4540_v20  ;;  %3567 = vmatprep.subr.bf16.mxu1 %v4542_v21  ;;  %v4556_v36 = vcombine.high %v331_v30, %v335_v31  ;;  %v4558_v37 = vcombine.high %v332_v32, %v336_v33  ;;  %v339_v38 = vld [vmem:[%s5502_s10 + $0x140] sm:$0xff]  ;;  %v340_v40 = vld [vmem:[%s5502_s10 + $0x148] sm:$0xff]  ;;  %v4555_v42 = vcombine.low %v331_v30, %v335_v31 }
  0x74   : > { %v343_v39 = vld [vmem:[%s5502_s10 + $0x160] sm:$0xff]  ;;  %v344_v41 = vld [vmem:[%s5502_s10 + $0x168] sm:$0xff]  ;;  %v4557_v43 = vcombine.low %v332_v32, %v336_v33 }
  0x75   : > { %v4564_v44 = vcombine.high %v339_v38, %v343_v39  ;;  %v4566_v45 = vcombine.high %v340_v40, %v344_v41  ;;  %v347_v46 = vld [vmem:[%s5502_s10 + $0x180] sm:$0xff]  ;;  %v348_v48 = vld [vmem:[%s5502_s10 + $0x188] sm:$0xff]  ;;  %v4563_v50 = vcombine.low %v339_v38, %v343_v39  ;;  %v4565_v51 = vcombine.low %v340_v40, %v344_v41 }
  0x76   : > { %3404 = vmatpush1.bf16.msra.mxu0 %v4539_v26  ;;  %3568 = vmatpush1.bf16.msra.mxu1 %v4541_v27  ;;  %v351_v47 = vld [vmem:[%s5502_s10 + $0x1a0] sm:$0xff]  ;;  %v352_v49 = vld [vmem:[%s5502_s10 + $0x1a8] sm:$0xff] }
  0x77   : > { %3405 = vmatprep.subr.bf16.mxu0 %v4548_v28  ;;  %3569 = vmatprep.subr.bf16.mxu1 %v4550_v29  ;;  %v4572_v52 = vcombine.high %v347_v46, %v351_v47  ;;  %v5549_v53 = vld [vmem:[%s6375_s0] sm:$0xff]  ;;  %v4574_v54 = vcombine.high %v348_v48, %v352_v49  ;;  %v356_v58 = vld [vmem:[%s5502_s10 + $0x1c8] sm:$0xff]  ;;  %v4571_v60 = vcombine.low %v347_v46, %v351_v47 }
  0x78   : > { %v355_v55 = vld [vmem:[%s5502_s10 + $0x1c0] sm:$0xff]  ;;  %v5555_v57 = vcombine.high %v5549_v53, %v5549_v53  ;;  %v360_v59 = vld [vmem:[%s5502_s10 + $0x1e8] sm:$0xff]  ;;  %v4573_v61 = vcombine.low %v348_v48, %v352_v49 }
  0x79   : > { %v359_v56 = vld [vmem:[%s5502_s10 + $0x1e0] sm:$0xff]  ;;  %v4582_v63 = vcombine.high %v356_v58, %v360_v59  ;;  %v364_v2 = vld [vmem:[%s5502_s10 + $0x208] sm:$0xff]  ;;  %v4581_v5 = vcombine.low %v356_v58, %v360_v59 }
  0x7a   : > { %3406 = vmatpush1.bf16.msra.mxu0 %v4547_v34  ;;  %3570 = vmatpush1.bf16.msra.mxu1 %v4549_v35  ;;  %v4580_v62 = vcombine.high %v355_v55, %v359_v56  ;;  %v363_v0 = vld [vmem:[%s5502_s10 + $0x200] sm:$0xff]  ;;  %v368_v3 = vld [vmem:[%s5502_s10 + $0x228] sm:$0xff]  ;;  %v4579_v4 = vcombine.low %v355_v55, %v359_v56 }
  0x7b   : > { %3407 = vmatprep.subr.bf16.mxu0 %v4556_v36  ;;  %3571 = vmatprep.subr.bf16.mxu1 %v4558_v37  ;;  %v367_v1 = vld [vmem:[%s5502_s10 + $0x220] sm:$0xff]  ;;  %v4590_v7 = vcombine.high %v364_v2, %v368_v3  ;;  %v372_v10 = vld [vmem:[%s5502_s10 + $0x248] sm:$0xff]  ;;  %v4589_v13 = vcombine.low %v364_v2, %v368_v3 }
  0x7c   : > { %3431 = vmatprep.mubr.bf16.mxu0 %v5555_v57  ;;  %3595 = vmatprep.mubr.bf16.mxu1 %v5555_v57  ;;  %v4588_v6 = vcombine.high %v363_v0, %v367_v1  ;;  %v371_v8 = vld [vmem:[%s5502_s10 + $0x240] sm:$0xff]  ;;  %v376_v11 = vld [vmem:[%s5502_s10 + $0x268] sm:$0xff]  ;;  %v4587_v12 = vcombine.low %v363_v0, %v367_v1 }
  0x7d   : > { %v375_v9 = vld [vmem:[%s5502_s10 + $0x260] sm:$0xff]  ;;  %v4598_v15 = vcombine.high %v372_v10, %v376_v11  ;;  %v380_v18 = vld [vmem:[%s5502_s10 + $0x288] sm:$0xff]  ;;  %v4597_v21 = vcombine.low %v372_v10, %v376_v11 }
  0x7e   : > { %3408 = vmatpush1.bf16.msra.mxu0 %v4555_v42  ;;  %3572 = vmatpush1.bf16.msra.mxu1 %v4557_v43  ;;  %v4596_v14 = vcombine.high %v371_v8, %v375_v9  ;;  %v379_v16 = vld [vmem:[%s5502_s10 + $0x280] sm:$0xff]  ;;  %v384_v19 = vld [vmem:[%s5502_s10 + $0x2a8] sm:$0xff]  ;;  %v4595_v20 = vcombine.low %v371_v8, %v375_v9 }
  0x7f   : > { %3409 = vmatprep.subr.bf16.mxu0 %v4564_v44  ;;  %3573 = vmatprep.subr.bf16.mxu1 %v4566_v45  ;;  %v383_v17 = vld [vmem:[%s5502_s10 + $0x2a0] sm:$0xff]  ;;  %v4606_v23 = vcombine.high %v380_v18, %v384_v19  ;;  %v388_v26 = vld [vmem:[%s5502_s10 + $0x2c8] sm:$0xff]  ;;  %v4605_v29 = vcombine.low %v380_v18, %v384_v19 }
  0x80   : > { %v4604_v22 = vcombine.high %v379_v16, %v383_v17  ;;  %v387_v24 = vld [vmem:[%s5502_s10 + $0x2c0] sm:$0xff]  ;;  %v392_v27 = vld [vmem:[%s5502_s10 + $0x2e8] sm:$0xff]  ;;  %v4603_v28 = vcombine.low %v379_v16, %v383_v17 }
  0x81   : > { %v391_v25 = vld [vmem:[%s5502_s10 + $0x2e0] sm:$0xff]  ;;  %v4614_v31 = vcombine.high %v388_v26, %v392_v27  ;;  %v396_v34 = vld [vmem:[%s5502_s10 + $0x308] sm:$0xff]  ;;  %v4613_v37 = vcombine.low %v388_v26, %v392_v27 }
  0x82   : > { %3410 = vmatpush1.bf16.msra.mxu0 %v4563_v50  ;;  %3574 = vmatpush1.bf16.msra.mxu1 %v4565_v51  ;;  %v4612_v30 = vcombine.high %v387_v24, %v391_v25  ;;  %v395_v32 = vld [vmem:[%s5502_s10 + $0x300] sm:$0xff]  ;;  %v400_v35 = vld [vmem:[%s5502_s10 + $0x328] sm:$0xff]  ;;  %v4611_v36 = vcombine.low %v387_v24, %v391_v25 }
  0x83   : > { %3411 = vmatprep.subr.bf16.mxu0 %v4572_v52  ;;  %3575 = vmatprep.subr.bf16.mxu1 %v4574_v54  ;;  %v399_v33 = vld [vmem:[%s5502_s10 + $0x320] sm:$0xff]  ;;  %v4622_v39 = vcombine.high %v396_v34, %v400_v35  ;;  %v404_v42 = vld [vmem:[%s5502_s10 + $0x348] sm:$0xff]  ;;  %v4621_v45 = vcombine.low %v396_v34, %v400_v35 }
  0x84   : > { %v4620_v38 = vcombine.high %v395_v32, %v399_v33  ;;  %v403_v40 = vld [vmem:[%s5502_s10 + $0x340] sm:$0xff]  ;;  %v408_v43 = vld [vmem:[%s5502_s10 + $0x368] sm:$0xff]  ;;  %v4619_v44 = vcombine.low %v395_v32, %v399_v33 }
  0x85   : > { %v407_v41 = vld [vmem:[%s5502_s10 + $0x360] sm:$0xff]  ;;  %v4630_v47 = vcombine.high %v404_v42, %v408_v43  ;;  %v412_v50 = vld [vmem:[%s5502_s10 + $0x388] sm:$0xff]  ;;  %v4629_v54 = vcombine.low %v404_v42, %v408_v43 }
  0x86   : > { %3412 = vmatpush1.bf16.msra.mxu0 %v4571_v60  ;;  %3576 = vmatpush1.bf16.msra.mxu1 %v4573_v61  ;;  %v4628_v46 = vcombine.high %v403_v40, %v407_v41  ;;  %v411_v48 = vld [vmem:[%s5502_s10 + $0x380] sm:$0xff]  ;;  %v416_v51 = vld [vmem:[%s5502_s10 + $0x3a8] sm:$0xff]  ;;  %v4627_v52 = vcombine.low %v403_v40, %v407_v41 }
  0x87   : > { %3413 = vmatprep.subr.bf16.mxu0 %v4580_v62  ;;  %3577 = vmatprep.subr.bf16.mxu1 %v4582_v63  ;;  %v415_v49 = vld [vmem:[%s5502_s10 + $0x3a0] sm:$0xff]  ;;  %v4638_v56 = vcombine.high %v412_v50, %v416_v51  ;;  %v420_v60 = vld [vmem:[%s5502_s10 + $0x3c8] sm:$0xff]  ;;  %v4637_v63 = vcombine.low %v412_v50, %v416_v51 }
  0x88   : > { %v4636_v55 = vcombine.high %v411_v48, %v415_v49  ;;  %v419_v58 = vld [vmem:[%s5502_s10 + $0x3c0] sm:$0xff]  ;;  %v424_v61 = vld [vmem:[%s5502_s10 + $0x3e8] sm:$0xff]  ;;  %v4635_v62 = vcombine.low %v411_v48, %v415_v49 }
  0x89   : > { %v423_v59 = vld [vmem:[%s5502_s10 + $0x3e0] sm:$0xff]  ;;  %v4646_v1 = vcombine.high %v420_v60, %v424_v61 }
  0x8a   : > { %3414 = vmatpush1.bf16.msra.mxu0 %v4579_v4  ;;  %3578 = vmatpush1.bf16.msra.mxu1 %v4581_v5  ;;  %v4644_v0 = vcombine.high %v419_v58, %v423_v59  ;;  %v427_v2 = vld [vmem:[%s5502_s10 + $0x400] sm:$0xff]  ;;  %v428_v4 = vld [vmem:[%s5502_s10 + $0x408] sm:$0xff] }
  0x8b   : > { %3415 = vmatprep.subr.bf16.mxu0 %v4588_v6  ;;  %3579 = vmatprep.subr.bf16.mxu1 %v4590_v7  ;;  %v431_v3 = vld [vmem:[%s5502_s10 + $0x420] sm:$0xff]  ;;  %v432_v5 = vld [vmem:[%s5502_s10 + $0x428] sm:$0xff]  ;;  %v4643_v6 = vcombine.low %v419_v58, %v423_v59  ;;  %v4645_v7 = vcombine.low %v420_v60, %v424_v61 }
  0x8c   : > { %v4652_v8 = vcombine.high %v427_v2, %v431_v3  ;;  %v4654_v9 = vcombine.high %v428_v4, %v432_v5  ;;  %v435_v10 = vld [vmem:[%s5502_s10 + $0x440] sm:$0xff]  ;;  %v4651_v16 = vcombine.low %v427_v2, %v431_v3  ;;  %v4653_v17 = vcombine.low %v428_v4, %v432_v5 }
  0x8d   : > { %v439_v11 = vld [vmem:[%s5502_s10 + $0x460] sm:$0xff] }
  0x8e   : > { %3416 = vmatpush1.bf16.msra.mxu0 %v4587_v12  ;;  %3580 = vmatpush1.bf16.msra.mxu1 %v4589_v13  ;;  %v5601_v12 = vcombine.low %v5549_v53, %v5549_v53  ;;  %v436_v13 = vld [vmem:[%s5502_s10 + $0x448] sm:$0xff]  ;;  %v4660_v18 = vcombine.high %v435_v10, %v439_v11  ;;  %v443_v53 = vld [vmem:[%s5502_s10 + $0x480] sm:$0xff]  ;;  %v4659_v24 = vcombine.low %v435_v10, %v439_v11 }
  0x8f   : > { %3417 = vmatprep.subr.bf16.mxu0 %v4596_v14  ;;  %3581 = vmatprep.subr.bf16.mxu1 %v4598_v15  ;;  %v440_v14 = vld [vmem:[%s5502_s10 + $0x468] sm:$0xff] }
  0x90   : > { %v5608_v15 = vld [vmem:[%s6375_s0 + $0x8] sm:$0xff]  ;;  %v4662_v19 = vcombine.high %v436_v13, %v440_v14  ;;  %v4661_v25 = vcombine.low %v436_v13, %v440_v14 }
  0x92   : > { %3418 = vmatpush1.bf16.msra.mxu0 %v4595_v20  ;;  %3582 = vmatpush1.bf16.msra.mxu1 %v4597_v21  ;;  %v447_v20 = vld [vmem:[%s5502_s10 + $0x4a0] sm:$0xff]  ;;  %v5614_v21 = vcombine.high %v5608_v15, %v5608_v15 }
  0x93   : > { %3419 = vmatprep.subr.bf16.mxu0 %v4604_v22  ;;  %3583 = vmatprep.subr.bf16.mxu1 %v4606_v23  ;;  %v444_v22 = vld [vmem:[%s5502_s10 + $0x488] sm:$0xff]  ;;  %v4668_v26 = vcombine.high %v443_v53, %v447_v20  ;;  %v4667_v32 = vcombine.low %v443_v53, %v447_v20 }
  0x94   : > { %v448_v23 = vld [vmem:[%s5502_s10 + $0x4a8] sm:$0xff] }
  0x95   : > { %v4670_v27 = vcombine.high %v444_v22, %v448_v23  ;;  %v4669_v33 = vcombine.low %v444_v22, %v448_v23 }
  0x96   : > { %3420 = vmatpush1.bf16.msra.mxu0 %v4603_v28  ;;  %3584 = vmatpush1.bf16.msra.mxu1 %v4605_v29  ;;  %v451_v28 = vld [vmem:[%s5502_s10 + $0x4c0] sm:$0xff] }
  0x97   : > { %3421 = vmatprep.subr.bf16.mxu0 %v4612_v30  ;;  %3585 = vmatprep.subr.bf16.mxu1 %v4614_v31  ;;  %v455_v29 = vld [vmem:[%s5502_s10 + $0x4e0] sm:$0xff]  ;;  %v452_v30 = vld [vmem:[%s5502_s10 + $0x4c8] sm:$0xff] }
  0x98   : > { %v456_v31 = vld [vmem:[%s5502_s10 + $0x4e8] sm:$0xff]  ;;  %v4676_v34 = vcombine.high %v451_v28, %v455_v29  ;;  %v4675_v40 = vcombine.low %v451_v28, %v455_v29 }
  0x99   : > { %v4678_v35 = vcombine.high %v452_v30, %v456_v31  ;;  %v4677_v41 = vcombine.low %v452_v30, %v456_v31 }
  0x9a   : > { %3422 = vmatpush1.bf16.msra.mxu0 %v4611_v36  ;;  %3586 = vmatpush1.bf16.msra.mxu1 %v4613_v37  ;;  %v459_v36 = vld [vmem:[%s5502_s10 + $0x500] sm:$0xff] }
  0x9b   : > { %3423 = vmatprep.subr.bf16.mxu0 %v4620_v38  ;;  %3587 = vmatprep.subr.bf16.mxu1 %v4622_v39  ;;  %v463_v37 = vld [vmem:[%s5502_s10 + $0x520] sm:$0xff]  ;;  %v460_v38 = vld [vmem:[%s5502_s10 + $0x508] sm:$0xff] }
  0x9c   : > { %v464_v39 = vld [vmem:[%s5502_s10 + $0x528] sm:$0xff]  ;;  %v4684_v42 = vcombine.high %v459_v36, %v463_v37  ;;  %v4683_v48 = vcombine.low %v459_v36, %v463_v37 }
  0x9d   : > { %v4686_v43 = vcombine.high %v460_v38, %v464_v39  ;;  %v4685_v49 = vcombine.low %v460_v38, %v464_v39 }
  0x9e   : > { %3424 = vmatpush1.bf16.msra.mxu0 %v4619_v44  ;;  %3588 = vmatpush1.bf16.msra.mxu1 %v4621_v45  ;;  %v467_v44 = vld [vmem:[%s5502_s10 + $0x540] sm:$0xff] }
  0x9f   : > { %3425 = vmatprep.subr.bf16.mxu0 %v4628_v46  ;;  %3589 = vmatprep.subr.bf16.mxu1 %v4630_v47  ;;  %v471_v45 = vld [vmem:[%s5502_s10 + $0x560] sm:$0xff]  ;;  %v468_v46 = vld [vmem:[%s5502_s10 + $0x548] sm:$0xff] }
  0xa0   : > { %v472_v47 = vld [vmem:[%s5502_s10 + $0x568] sm:$0xff]  ;;  %v4692_v50 = vcombine.high %v467_v44, %v471_v45  ;;  %v4691_v58 = vcombine.low %v467_v44, %v471_v45 }
  0xa1   : > { %v4694_v51 = vcombine.high %v468_v46, %v472_v47  ;;  %v4693_v59 = vcombine.low %v468_v46, %v472_v47 }
  0xa2   : > { %3426 = vmatpush1.bf16.msra.mxu0 %v4627_v52  ;;  %3590 = vmatpush1.bf16.msra.mxu1 %v4629_v54  ;;  %v475_v52 = vld [vmem:[%s5502_s10 + $0x580] sm:$0xff] }
  0xa3   : > { %3427 = vmatprep.subr.bf16.mxu0 %v4636_v55  ;;  %3591 = vmatprep.subr.bf16.mxu1 %v4638_v56  ;;  %v479_v54 = vld [vmem:[%s5502_s10 + $0x5a0] sm:$0xff]  ;;  %v476_v55 = vld [vmem:[%s5502_s10 + $0x588] sm:$0xff] }
  0xa4   : > { %v480_v56 = vld [vmem:[%s5502_s10 + $0x5a8] sm:$0xff]  ;;  %v4700_v60 = vcombine.high %v475_v52, %v479_v54  ;;  %v4699_v2 = vcombine.low %v475_v52, %v479_v54 }
  0xa5   : > { %v4702_v61 = vcombine.high %v476_v55, %v480_v56  ;;  %v4701_v3 = vcombine.low %v476_v55, %v480_v56 }
  0xa6   : > { %3428 = vmatpush1.bf16.msra.mxu0 %v4635_v62  ;;  %3592 = vmatpush1.bf16.msra.mxu1 %v4637_v63  ;;  %v483_v62 = vld [vmem:[%s5502_s10 + $0x5c0] sm:$0xff] }
  0xa7   : > { %3429 = vmatprep.subr.bf16.mxu0 %v4644_v0  ;;  %3593 = vmatprep.subr.bf16.mxu1 %v4646_v1  ;;  %v487_v63 = vld [vmem:[%s5502_s10 + $0x5e0] sm:$0xff]  ;;  %v484_v0 = vld [vmem:[%s5502_s10 + $0x5c8] sm:$0xff] }
  0xa8   : > { %v488_v1 = vld [vmem:[%s5502_s10 + $0x5e8] sm:$0xff]  ;;  %v4708_v4 = vcombine.high %v483_v62, %v487_v63  ;;  %v4707_v10 = vcombine.low %v483_v62, %v487_v63 }
  0xa9   : > { %v4710_v5 = vcombine.high %v484_v0, %v488_v1  ;;  %v4709_v11 = vcombine.low %v484_v0, %v488_v1 }
  0xaa   : > { %3430 = vmatpush1.bf16.msra.mxu0 %v4643_v6  ;;  %3594 = vmatpush1.bf16.msra.mxu1 %v4645_v7  ;;  %v491_v6 = vld [vmem:[%s5502_s10 + $0x600] sm:$0xff] }
  0xab   : > { %3440 = vmatprep.subr.bf16.mxu0 %v4652_v8  ;;  %3604 = vmatprep.subr.bf16.mxu1 %v4654_v9  ;;  %v495_v7 = vld [vmem:[%s5502_s10 + $0x620] sm:$0xff]  ;;  %v492_v8 = vld [vmem:[%s5502_s10 + $0x608] sm:$0xff] }
  0xac   : > { %v496_v9 = vld [vmem:[%s5502_s10 + $0x628] sm:$0xff]  ;;  %v4716_v13 = vcombine.high %v491_v6, %v495_v7  ;;  %v4715_v53 = vcombine.low %v491_v6, %v495_v7 }
  0xad   : > { %3432 = vmatmul.mubr.bf16.vlgmr.msra.gmra.mrb[0].mxu0 %v5601_v12  ;;  %3596 = vmatmul.mubr.bf16.vlgmr.msra.gmra.mrb[0].mxu1 %v5601_v12  ;;  %v4718_v14 = vcombine.high %v492_v8, %v496_v9  ;;  %v4717_v20 = vcombine.low %v492_v8, %v496_v9 }
  0xae   : > { %3441 = vmatpush1.bf16.msra.mxu0 %v4651_v16  ;;  %3605 = vmatpush1.bf16.msra.mxu1 %v4653_v17  ;;  %v499_v16 = vld [vmem:[%s5502_s10 + $0x640] sm:$0xff] }
  0xaf   : > { %3442 = vmatprep.subr.bf16.mxu0 %v4660_v18  ;;  %3606 = vmatprep.subr.bf16.mxu1 %v4662_v19  ;;  %v503_v17 = vld [vmem:[%s5502_s10 + $0x660] sm:$0xff]  ;;  %v500_v18 = vld [vmem:[%s5502_s10 + $0x648] sm:$0xff] }
  0xb0   : > { %3472 = vmatprep.mubr.bf16.mxu0 %v5614_v21  ;;  %3636 = vmatprep.mubr.bf16.mxu1 %v5614_v21  ;;  %v504_v19 = vld [vmem:[%s5502_s10 + $0x668] sm:$0xff]  ;;  %v4724_v22 = vcombine.high %v499_v16, %v503_v17  ;;  %v4723_v28 = vcombine.low %v499_v16, %v503_v17 }
  0xb1   : > { %v4726_v23 = vcombine.high %v500_v18, %v504_v19  ;;  %v4725_v29 = vcombine.low %v500_v18, %v504_v19 }
  0xb2   : > { %3443 = vmatpush1.bf16.msra.mxu0 %v4659_v24  ;;  %3607 = vmatpush1.bf16.msra.mxu1 %v4661_v25  ;;  %v507_v24 = vld [vmem:[%s5502_s10 + $0x680] sm:$0xff] }
  0xb3   : > { %3444 = vmatprep.subr.bf16.mxu0 %v4668_v26  ;;  %3608 = vmatprep.subr.bf16.mxu1 %v4670_v27  ;;  %v511_v25 = vld [vmem:[%s5502_s10 + $0x6a0] sm:$0xff]  ;;  %v508_v26 = vld [vmem:[%s5502_s10 + $0x688] sm:$0xff] }
  0xb4   : > { %v512_v27 = vld [vmem:[%s5502_s10 + $0x6a8] sm:$0xff]  ;;  %v4732_v30 = vcombine.high %v507_v24, %v511_v25  ;;  %v4731_v36 = vcombine.low %v507_v24, %v511_v25  ;;  %v5689_v25 = vld [vmem:[%s6375_s0 + $0x10] sm:$0xff] }
  0xb5   : > { %v4734_v31 = vcombine.high %v508_v26, %v512_v27  ;;  %v4733_v37 = vcombine.low %v508_v26, %v512_v27  ;;  %v568_v24 = vld [vmem:[%s5502_s10 + $0x868] sm:$0xff] }
  0xb6   : > { %3445 = vmatpush1.bf16.msra.mxu0 %v4667_v32  ;;  %3609 = vmatpush1.bf16.msra.mxu1 %v4669_v33  ;;  %v515_v32 = vld [vmem:[%s5502_s10 + $0x6c0] sm:$0xff] }
  0xb7   : > { %3446 = vmatprep.subr.bf16.mxu0 %v4676_v34  ;;  %3610 = vmatprep.subr.bf16.mxu1 %v4678_v35  ;;  %v519_v33 = vld [vmem:[%s5502_s10 + $0x6e0] sm:$0xff]  ;;  %v516_v34 = vld [vmem:[%s5502_s10 + $0x6c8] sm:$0xff] }
  0xb8   : > { %v520_v35 = vld [vmem:[%s5502_s10 + $0x6e8] sm:$0xff]  ;;  %v4740_v38 = vcombine.high %v515_v32, %v519_v33  ;;  %v4739_v44 = vcombine.low %v515_v32, %v519_v33 }
  0xb9   : > { %v4742_v39 = vcombine.high %v516_v34, %v520_v35  ;;  %v4741_v45 = vcombine.low %v516_v34, %v520_v35  ;;  %v572_v32 = vld [vmem:[%s5502_s10 + $0x888] sm:$0xff] }
  0xba   : > { %3447 = vmatpush1.bf16.msra.mxu0 %v4675_v40  ;;  %3611 = vmatpush1.bf16.msra.mxu1 %v4677_v41  ;;  %v523_v40 = vld [vmem:[%s5502_s10 + $0x700] sm:$0xff]  ;;  %v576_v33 = vld [vmem:[%s5502_s10 + $0x8a8] sm:$0xff] }
  0xbb   : > { %3448 = vmatprep.subr.bf16.mxu0 %v4684_v42  ;;  %3612 = vmatprep.subr.bf16.mxu1 %v4686_v43  ;;  %v527_v41 = vld [vmem:[%s5502_s10 + $0x720] sm:$0xff]  ;;  %v524_v42 = vld [vmem:[%s5502_s10 + $0x708] sm:$0xff] }
  0xbc   : > { %v528_v43 = vld [vmem:[%s5502_s10 + $0x728] sm:$0xff]  ;;  %v4748_v46 = vcombine.high %v523_v40, %v527_v41  ;;  %v4747_v52 = vcombine.low %v523_v40, %v527_v41 }
  0xbd   : > { %v4750_v47 = vcombine.high %v524_v42, %v528_v43  ;;  %v4749_v54 = vcombine.low %v524_v42, %v528_v43  ;;  %v580_v40 = vld [vmem:[%s5502_s10 + $0x8c8] sm:$0xff]  ;;  %v4797_v43 = vcombine.low %v572_v32, %v576_v33 }
  0xbe   : > { %3449 = vmatpush1.bf16.msra.mxu0 %v4683_v48  ;;  %3613 = vmatpush1.bf16.msra.mxu1 %v4685_v49  ;;  %v531_v48 = vld [vmem:[%s5502_s10 + $0x740] sm:$0xff]  ;;  %v584_v41 = vld [vmem:[%s5502_s10 + $0x8e8] sm:$0xff] }
  0xbf   : > { %3450 = vmatprep.subr.bf16.mxu0 %v4692_v50  ;;  %3614 = vmatprep.subr.bf16.mxu1 %v4694_v51  ;;  %v535_v49 = vld [vmem:[%s5502_s10 + $0x760] sm:$0xff]  ;;  %v532_v50 = vld [vmem:[%s5502_s10 + $0x748] sm:$0xff] }
  0xc0   : > { %v536_v51 = vld [vmem:[%s5502_s10 + $0x768] sm:$0xff]  ;;  %v4756_v55 = vcombine.high %v531_v48, %v535_v49  ;;  %v4755_v62 = vcombine.low %v531_v48, %v535_v49 }
  0xc1   : > { %v4758_v56 = vcombine.high %v532_v50, %v536_v51  ;;  %v4757_v63 = vcombine.low %v532_v50, %v536_v51  ;;  %v588_v48 = vld [vmem:[%s5502_s10 + $0x908] sm:$0xff]  ;;  %v4805_v51 = vcombine.low %v580_v40, %v584_v41 }
  0xc2   : > { %3451 = vmatpush1.bf16.msra.mxu0 %v4691_v58  ;;  %3615 = vmatpush1.bf16.msra.mxu1 %v4693_v59  ;;  %v539_v58 = vld [vmem:[%s5502_s10 + $0x780] sm:$0xff]  ;;  %v592_v49 = vld [vmem:[%s5502_s10 + $0x928] sm:$0xff] }
  0xc3   : > { %3452 = vmatprep.subr.bf16.mxu0 %v4700_v60  ;;  %3616 = vmatprep.subr.bf16.mxu1 %v4702_v61  ;;  %v543_v59 = vld [vmem:[%s5502_s10 + $0x7a0] sm:$0xff]  ;;  %v540_v60 = vld [vmem:[%s5502_s10 + $0x788] sm:$0xff] }
  0xc4   : > { %v544_v61 = vld [vmem:[%s5502_s10 + $0x7a8] sm:$0xff]  ;;  %v4764_v0 = vcombine.high %v539_v58, %v543_v59  ;;  %v4763_v6 = vcombine.low %v539_v58, %v543_v59 }
  0xc5   : > { %v4766_v1 = vcombine.high %v540_v60, %v544_v61  ;;  %v4765_v7 = vcombine.low %v540_v60, %v544_v61  ;;  %v596_v58 = vld [vmem:[%s5502_s10 + $0x948] sm:$0xff]  ;;  %v4813_v61 = vcombine.low %v588_v48, %v592_v49 }
  0xc6   : > { %3453 = vmatpush1.bf16.msra.mxu0 %v4699_v2  ;;  %3617 = vmatpush1.bf16.msra.mxu1 %v4701_v3  ;;  %v547_v2 = vld [vmem:[%s5502_s10 + $0x7c0] sm:$0xff]  ;;  %v600_v59 = vld [vmem:[%s5502_s10 + $0x968] sm:$0xff] }
  0xc7   : > { %3454 = vmatprep.subr.bf16.mxu0 %v4708_v4  ;;  %3618 = vmatprep.subr.bf16.mxu1 %v4710_v5  ;;  %v551_v3 = vld [vmem:[%s5502_s10 + $0x7e0] sm:$0xff]  ;;  %v548_v4 = vld [vmem:[%s5502_s10 + $0x7c8] sm:$0xff] }
  0xc8   : > { %v552_v5 = vld [vmem:[%s5502_s10 + $0x7e8] sm:$0xff]  ;;  %v4772_v8 = vcombine.high %v547_v2, %v551_v3  ;;  %v4771_v16 = vcombine.low %v547_v2, %v551_v3 }
  0xc9   : > { %v4774_v9 = vcombine.high %v548_v4, %v552_v5  ;;  %v4773_v17 = vcombine.low %v548_v4, %v552_v5  ;;  %v604_v2 = vld [vmem:[%s5502_s10 + $0x988] sm:$0xff]  ;;  %v4821_v5 = vcombine.low %v596_v58, %v600_v59 }
  0xca   : > { %3455 = vmatpush1.bf16.msra.mxu0 %v4707_v10  ;;  %3619 = vmatpush1.bf16.msra.mxu1 %v4709_v11  ;;  %v555_v10 = vld [vmem:[%s5502_s10 + $0x800] sm:$0xff]  ;;  %v608_v3 = vld [vmem:[%s5502_s10 + $0x9a8] sm:$0xff] }
  0xcb   : > { %3456 = vmatprep.subr.bf16.mxu0 %v4716_v13  ;;  %3620 = vmatprep.subr.bf16.mxu1 %v4718_v14  ;;  %v559_v11 = vld [vmem:[%s5502_s10 + $0x820] sm:$0xff]  ;;  %v556_v13 = vld [vmem:[%s5502_s10 + $0x808] sm:$0xff] }
  0xcc   : > { %v560_v14 = vld [vmem:[%s5502_s10 + $0x828] sm:$0xff]  ;;  %v4780_v18 = vcombine.high %v555_v10, %v559_v11  ;;  %v4779_v26 = vcombine.low %v555_v10, %v559_v11 }
  0xcd   : > { %v4782_v19 = vcombine.high %v556_v13, %v560_v14  ;;  %v4781_v27 = vcombine.low %v556_v13, %v560_v14  ;;  %v612_v10 = vld [vmem:[%s5502_s10 + $0x9c8] sm:$0xff]  ;;  %v4829_v14 = vcombine.low %v604_v2, %v608_v3 }
  0xce   : > { %3457 = vmatpush1.bf16.msra.mxu0 %v4715_v53  ;;  %3621 = vmatpush1.bf16.msra.mxu1 %v4717_v20  ;;  %v563_v53 = vld [vmem:[%s5502_s10 + $0x840] sm:$0xff]  ;;  %v616_v11 = vld [vmem:[%s5502_s10 + $0x9e8] sm:$0xff] }
  0xcf   : > { %3458 = vmatprep.subr.bf16.mxu0 %v4724_v22  ;;  %3622 = vmatprep.subr.bf16.mxu1 %v4726_v23  ;;  %v567_v20 = vld [vmem:[%s5502_s10 + $0x860] sm:$0xff]  ;;  %v5682_v22 = vcombine.low %v5608_v15, %v5608_v15  ;;  %v564_v23 = vld [vmem:[%s5502_s10 + $0x848] sm:$0xff] }
  0xd0   : > { %v571_v15 = vld [vmem:[%s5502_s10 + $0x880] sm:$0xff]  ;;  %v4787_v34 = vcombine.low %v563_v53, %v567_v20  ;;  %v4789_v35 = vcombine.low %v564_v23, %v568_v24 }
  0xd2   : > { %3459 = vmatpush1.bf16.msra.mxu0 %v4723_v28  ;;  %3623 = vmatpush1.bf16.msra.mxu1 %v4725_v29  ;;  %v4788_v28 = vcombine.high %v563_v53, %v567_v20  ;;  %v4790_v29 = vcombine.high %v564_v23, %v568_v24  ;;  %v620_v53 = vld [vmem:[%s5502_s10 + $0xa08] sm:$0xff]  ;;  %v4837_v24 = vcombine.low %v612_v10, %v616_v11 }
  0xd3   : > { %3460 = vmatprep.subr.bf16.mxu0 %v4732_v30  ;;  %3624 = vmatprep.subr.bf16.mxu1 %v4734_v31  ;;  %v575_v30 = vld [vmem:[%s5502_s10 + $0x8a0] sm:$0xff]  ;;  %v5695_v31 = vcombine.high %v5689_v25, %v5689_v25  ;;  %v624_v20 = vld [vmem:[%s5502_s10 + $0xa28] sm:$0xff] }
  0xd4   : > { %v4795_v42 = vcombine.low %v571_v15, %v575_v30 }
  0xd6   : > { %3461 = vmatpush1.bf16.msra.mxu0 %v4731_v36  ;;  %3625 = vmatpush1.bf16.msra.mxu1 %v4733_v37  ;;  %v4796_v36 = vcombine.high %v571_v15, %v575_v30  ;;  %v4798_v37 = vcombine.high %v572_v32, %v576_v33  ;;  %v628_v15 = vld [vmem:[%s5502_s10 + $0xa48] sm:$0xff]  ;;  %v4845_v33 = vcombine.low %v620_v53, %v624_v20 }
  0xd7   : > { %3462 = vmatprep.subr.bf16.mxu0 %v4740_v38  ;;  %3626 = vmatprep.subr.bf16.mxu1 %v4742_v39  ;;  %v579_v38 = vld [vmem:[%s5502_s10 + $0x8c0] sm:$0xff]  ;;  %v632_v30 = vld [vmem:[%s5502_s10 + $0xa68] sm:$0xff] }
  0xd8   : > { %v583_v39 = vld [vmem:[%s5502_s10 + $0x8e0] sm:$0xff] }
  0xd9   : > { %v4803_v50 = vcombine.low %v579_v38, %v583_v39 }
  0xda   : > { %3463 = vmatpush1.bf16.msra.mxu0 %v4739_v44  ;;  %3627 = vmatpush1.bf16.msra.mxu1 %v4741_v45  ;;  %v4804_v44 = vcombine.high %v579_v38, %v583_v39  ;;  %v4806_v45 = vcombine.high %v580_v40, %v584_v41  ;;  %v636_v38 = vld [vmem:[%s5502_s10 + $0xa88] sm:$0xff]  ;;  %v4853_v41 = vcombine.low %v628_v15, %v632_v30 }
  0xdb   : > { %3464 = vmatprep.subr.bf16.mxu0 %v4748_v46  ;;  %3628 = vmatprep.subr.bf16.mxu1 %v4750_v47  ;;  %v587_v46 = vld [vmem:[%s5502_s10 + $0x900] sm:$0xff]  ;;  %v640_v39 = vld [vmem:[%s5502_s10 + $0xaa8] sm:$0xff] }
  0xdc   : > { %v591_v47 = vld [vmem:[%s5502_s10 + $0x920] sm:$0xff] }
  0xdd   : > { %v4811_v60 = vcombine.low %v587_v46, %v591_v47 }
  0xde   : > { %3465 = vmatpush1.bf16.msra.mxu0 %v4747_v52  ;;  %3629 = vmatpush1.bf16.msra.mxu1 %v4749_v54  ;;  %v4812_v52 = vcombine.high %v587_v46, %v591_v47  ;;  %v4814_v54 = vcombine.high %v588_v48, %v592_v49  ;;  %v644_v46 = vld [vmem:[%s5502_s10 + $0xac8] sm:$0xff]  ;;  %v4861_v49 = vcombine.low %v636_v38, %v640_v39 }
  0xdf   : > { %3466 = vmatprep.subr.bf16.mxu0 %v4756_v55  ;;  %3630 = vmatprep.subr.bf16.mxu1 %v4758_v56  ;;  %v595_v55 = vld [vmem:[%s5502_s10 + $0x940] sm:$0xff]  ;;  %v648_v47 = vld [vmem:[%s5502_s10 + $0xae8] sm:$0xff] }
  0xe0   : > { %v599_v56 = vld [vmem:[%s5502_s10 + $0x960] sm:$0xff] }
  0xe1   : > { %v4819_v4 = vcombine.low %v595_v55, %v599_v56 }
  0xe2   : > { %3467 = vmatpush1.bf16.msra.mxu0 %v4755_v62  ;;  %3631 = vmatpush1.bf16.msra.mxu1 %v4757_v63  ;;  %v4820_v62 = vcombine.high %v595_v55, %v599_v56  ;;  %v4822_v63 = vcombine.high %v596_v58, %v600_v59  ;;  %v652_v55 = vld [vmem:[%s5502_s10 + $0xb08] sm:$0xff]  ;;  %v4869_v59 = vcombine.low %v644_v46, %v648_v47 }
  0xe3   : > { %3468 = vmatprep.subr.bf16.mxu0 %v4764_v0  ;;  %3632 = vmatprep.subr.bf16.mxu1 %v4766_v1  ;;  %v603_v0 = vld [vmem:[%s5502_s10 + $0x980] sm:$0xff]  ;;  %v656_v56 = vld [vmem:[%s5502_s10 + $0xb28] sm:$0xff] }
  0xe4   : > { %v607_v1 = vld [vmem:[%s5502_s10 + $0x9a0] sm:$0xff] }
  0xe5   : > { %v4827_v13 = vcombine.low %v603_v0, %v607_v1 }
  0xe6   : > { %3469 = vmatpush1.bf16.msra.mxu0 %v4763_v6  ;;  %3633 = vmatpush1.bf16.msra.mxu1 %v4765_v7  ;;  %v4828_v6 = vcombine.high %v603_v0, %v607_v1  ;;  %v4830_v7 = vcombine.high %v604_v2, %v608_v3  ;;  %v660_v0 = vld [vmem:[%s5502_s10 + $0xb48] sm:$0xff]  ;;  %v4877_v3 = vcombine.low %v652_v55, %v656_v56 }
  0xe7   : > { %3470 = vmatprep.subr.bf16.mxu0 %v4772_v8  ;;  %3634 = vmatprep.subr.bf16.mxu1 %v4774_v9  ;;  %v611_v8 = vld [vmem:[%s5502_s10 + $0x9c0] sm:$0xff]  ;;  %v664_v1 = vld [vmem:[%s5502_s10 + $0xb68] sm:$0xff] }
  0xe8   : > { %v615_v9 = vld [vmem:[%s5502_s10 + $0x9e0] sm:$0xff] }
  0xe9   : > { %v4835_v23 = vcombine.low %v611_v8, %v615_v9 }
  0xea   : > { %3471 = vmatpush1.bf16.msra.mxu0 %v4771_v16  ;;  %3635 = vmatpush1.bf16.msra.mxu1 %v4773_v17  ;;  %v4836_v16 = vcombine.high %v611_v8, %v615_v9  ;;  %v4838_v17 = vcombine.high %v612_v10, %v616_v11  ;;  %v668_v8 = vld [vmem:[%s5502_s10 + $0xb88] sm:$0xff]  ;;  %v4885_v11 = vcombine.low %v660_v0, %v664_v1 }
  0xeb   : > { %3481 = vmatprep.subr.bf16.mxu0 %v4780_v18  ;;  %3645 = vmatprep.subr.bf16.mxu1 %v4782_v19  ;;  %v619_v18 = vld [vmem:[%s5502_s10 + $0xa00] sm:$0xff]  ;;  %v672_v9 = vld [vmem:[%s5502_s10 + $0xba8] sm:$0xff] }
  0xec   : > { %v623_v19 = vld [vmem:[%s5502_s10 + $0xa20] sm:$0xff] }
  0xed   : > { %3473 = vmatmul.mubr.bf16.vlgmr.msra.gmra.mrb[0].mxu0 %v5682_v22  ;;  %3637 = vmatmul.mubr.bf16.vlgmr.msra.gmra.mrb[0].mxu1 %v5682_v22  ;;  %v4843_v32 = vcombine.low %v619_v18, %v623_v19 }
  0xee   : > { %3482 = vmatpush1.bf16.msra.mxu0 %v4779_v26  ;;  %3646 = vmatpush1.bf16.msra.mxu1 %v4781_v27  ;;  %v4844_v26 = vcombine.high %v619_v18, %v623_v19  ;;  %v4846_v27 = vcombine.high %v620_v53, %v624_v20  ;;  %v676_v18 = vld [vmem:[%s5502_s10 + $0xbc8] sm:$0xff]  ;;  %v4893_v20 = vcombine.low %v668_v8, %v672_v9 }
  0xef   : > { %3483 = vmatprep.subr.bf16.mxu0 %v4788_v28  ;;  %3647 = vmatprep.subr.bf16.mxu1 %v4790_v29  ;;  %v627_v28 = vld [vmem:[%s5502_s10 + $0xa40] sm:$0xff]  ;;  %v680_v19 = vld [vmem:[%s5502_s10 + $0xbe8] sm:$0xff] }
  0xf0   : > { %3513 = vmatprep.mubr.bf16.mxu0 %v5695_v31  ;;  %3677 = vmatprep.mubr.bf16.mxu1 %v5695_v31  ;;  %v631_v29 = vld [vmem:[%s5502_s10 + $0xa60] sm:$0xff] }
  0xf1   : > { %v4851_v40 = vcombine.low %v627_v28, %v631_v29 }
  0xf2   : > { %3484 = vmatpush1.bf16.msra.mxu0 %v4787_v34  ;;  %3648 = vmatpush1.bf16.msra.mxu1 %v4789_v35  ;;  %v4852_v34 = vcombine.high %v627_v28, %v631_v29  ;;  %v4854_v35 = vcombine.high %v628_v15, %v632_v30  ;;  %v684_v28 = vld [vmem:[%s5502_s10 + $0xc08] sm:$0xff]  ;;  %v4901_v30 = vcombine.low %v676_v18, %v680_v19 }
  0xf3   : > { %3485 = vmatprep.subr.bf16.mxu0 %v4796_v36  ;;  %3649 = vmatprep.subr.bf16.mxu1 %v4798_v37  ;;  %v635_v36 = vld [vmem:[%s5502_s10 + $0xa80] sm:$0xff]  ;;  %v688_v29 = vld [vmem:[%s5502_s10 + $0xc28] sm:$0xff] }
  0xf4   : > { %v639_v37 = vld [vmem:[%s5502_s10 + $0xaa0] sm:$0xff] }
  0xf5   : > { %v4859_v48 = vcombine.low %v635_v36, %v639_v37 }
  0xf6   : > { %3486 = vmatpush1.bf16.msra.mxu0 %v4795_v42  ;;  %3650 = vmatpush1.bf16.msra.mxu1 %v4797_v43  ;;  %v4860_v42 = vcombine.high %v635_v36, %v639_v37  ;;  %v4862_v43 = vcombine.high %v636_v38, %v640_v39  ;;  %v5763_v36 = vcombine.low %v5689_v25, %v5689_v25  ;;  %v692_v37 = vld [vmem:[%s5502_s10 + $0xc48] sm:$0xff]  ;;  %v5770_v39 = vld [vmem:[%s6375_s0 + $0x18] sm:$0xff]  ;;  %v699_v25 = vld [vmem:[%s5502_s10 + $0xc80] sm:$0xff] }
  0xf7   : > { %3487 = vmatprep.subr.bf16.mxu0 %v4804_v44  ;;  %3651 = vmatprep.subr.bf16.mxu1 %v4806_v45  ;;  %v643_v44 = vld [vmem:[%s5502_s10 + $0xac0] sm:$0xff]  ;;  %v696_v38 = vld [vmem:[%s5502_s10 + $0xc68] sm:$0xff] }
  0xf8   : > { %v647_v45 = vld [vmem:[%s5502_s10 + $0xae0] sm:$0xff] }
  0xf9   : > { %v4867_v58 = vcombine.low %v643_v44, %v647_v45 }
  0xfa   : > { %3488 = vmatpush1.bf16.msra.mxu0 %v4803_v50  ;;  %3652 = vmatpush1.bf16.msra.mxu1 %v4805_v51  ;;  %v4868_v50 = vcombine.high %v643_v44, %v647_v45  ;;  %v4870_v51 = vcombine.high %v644_v46, %v648_v47  ;;  %v703_v44 = vld [vmem:[%s5502_s10 + $0xca0] sm:$0xff]  ;;  %v5776_v45 = vcombine.high %v5770_v39, %v5770_v39  ;;  %v700_v46 = vld [vmem:[%s5502_s10 + $0xc88] sm:$0xff] }
  0xfb   : > { %3489 = vmatprep.subr.bf16.mxu0 %v4812_v52  ;;  %3653 = vmatprep.subr.bf16.mxu1 %v4814_v54  ;;  %v651_v52 = vld [vmem:[%s5502_s10 + $0xb00] sm:$0xff]  ;;  %v704_v47 = vld [vmem:[%s5502_s10 + $0xca8] sm:$0xff] }
  0xfc   : > { %v655_v54 = vld [vmem:[%s5502_s10 + $0xb20] sm:$0xff] }
  0xfd   : > { %v4875_v2 = vcombine.low %v651_v52, %v655_v54 }
  0xfe   : > { %3490 = vmatpush1.bf16.msra.mxu0 %v4811_v60  ;;  %3654 = vmatpush1.bf16.msra.mxu1 %v4813_v61  ;;  %v4876_v60 = vcombine.high %v651_v52, %v655_v54  ;;  %v4878_v61 = vcombine.high %v652_v55, %v656_v56  ;;  %v707_v52 = vld [vmem:[%s5502_s10 + $0xcc0] sm:$0xff]  ;;  %v708_v55 = vld [vmem:[%s5502_s10 + $0xcc8] sm:$0xff] }
  0xff   : > { %3491 = vmatprep.subr.bf16.mxu0 %v4820_v62  ;;  %3655 = vmatprep.subr.bf16.mxu1 %v4822_v63  ;;  %v659_v62 = vld [vmem:[%s5502_s10 + $0xb40] sm:$0xff]  ;;  %v712_v56 = vld [vmem:[%s5502_s10 + $0xce8] sm:$0xff] }
 0x100   : > { %v663_v63 = vld [vmem:[%s5502_s10 + $0xb60] sm:$0xff] }
 0x101   : > { %v4883_v10 = vcombine.low %v659_v62, %v663_v63  ;;  %v711_v54 = vld [vmem:[%s5502_s10 + $0xce0] sm:$0xff] }
 0x102   : > { %3492 = vmatpush1.bf16.msra.mxu0 %v4819_v4  ;;  %3656 = vmatpush1.bf16.msra.mxu1 %v4821_v5  ;;  %v4884_v4 = vcombine.high %v659_v62, %v663_v63  ;;  %v4886_v5 = vcombine.high %v660_v0, %v664_v1  ;;  %v715_v62 = vld [vmem:[%s5502_s10 + $0xd00] sm:$0xff]  ;;  %v716_v0 = vld [vmem:[%s5502_s10 + $0xd08] sm:$0xff] }
 0x103   : > { %3493 = vmatprep.subr.bf16.mxu0 %v4828_v6  ;;  %3657 = vmatprep.subr.bf16.mxu1 %v4830_v7  ;;  %v667_v6 = vld [vmem:[%s5502_s10 + $0xb80] sm:$0xff]  ;;  %v720_v1 = vld [vmem:[%s5502_s10 + $0xd28] sm:$0xff] }
 0x104   : > { %v671_v7 = vld [vmem:[%s5502_s10 + $0xba0] sm:$0xff] }
 0x105   : > { %v4891_v53 = vcombine.low %v667_v6, %v671_v7  ;;  %v719_v63 = vld [vmem:[%s5502_s10 + $0xd20] sm:$0xff] }
 0x106   : > { %3494 = vmatpush1.bf16.msra.mxu0 %v4827_v13  ;;  %3658 = vmatpush1.bf16.msra.mxu1 %v4829_v14  ;;  %v4892_v13 = vcombine.high %v667_v6, %v671_v7  ;;  %v4894_v14 = vcombine.high %v668_v8, %v672_v9  ;;  %v723_v6 = vld [vmem:[%s5502_s10 + $0xd40] sm:$0xff]  ;;  %v724_v8 = vld [vmem:[%s5502_s10 + $0xd48] sm:$0xff] }
 0x107   : > { %3495 = vmatprep.subr.bf16.mxu0 %v4836_v16  ;;  %3659 = vmatprep.subr.bf16.mxu1 %v4838_v17  ;;  %v675_v16 = vld [vmem:[%s5502_s10 + $0xbc0] sm:$0xff]  ;;  %v728_v9 = vld [vmem:[%s5502_s10 + $0xd68] sm:$0xff] }
 0x108   : > { %v679_v17 = vld [vmem:[%s5502_s10 + $0xbe0] sm:$0xff] }
 0x109   : > { %v4899_v15 = vcombine.low %v675_v16, %v679_v17  ;;  %v727_v7 = vld [vmem:[%s5502_s10 + $0xd60] sm:$0xff] }
 0x10a   : > { %3496 = vmatpush1.bf16.msra.mxu0 %v4835_v23  ;;  %3660 = vmatpush1.bf16.msra.mxu1 %v4837_v24  ;;  %v4900_v23 = vcombine.high %v675_v16, %v679_v17  ;;  %v4902_v24 = vcombine.high %v676_v18, %v680_v19  ;;  %v731_v16 = vld [vmem:[%s5502_s10 + $0xd80] sm:$0xff]  ;;  %v732_v18 = vld [vmem:[%s5502_s10 + $0xd88] sm:$0xff] }
 0x10b   : > { %3497 = vmatprep.subr.bf16.mxu0 %v4844_v26  ;;  %3661 = vmatprep.subr.bf16.mxu1 %v4846_v27  ;;  %v683_v26 = vld [vmem:[%s5502_s10 + $0xc00] sm:$0xff]  ;;  %v736_v19 = vld [vmem:[%s5502_s10 + $0xda8] sm:$0xff] }
 0x10c   : > { %v687_v27 = vld [vmem:[%s5502_s10 + $0xc20] sm:$0xff] }
 0x10d   : > { %v735_v17 = vld [vmem:[%s5502_s10 + $0xda0] sm:$0xff] }
 0x10e   : > { %3498 = vmatpush1.bf16.msra.mxu0 %v4843_v32  ;;  %3662 = vmatpush1.bf16.msra.mxu1 %v4845_v33  ;;  %v4908_v32 = vcombine.high %v683_v26, %v687_v27  ;;  %v4910_v33 = vcombine.high %v684_v28, %v688_v29 }
 0x10f   : > { %3499 = vmatprep.subr.bf16.mxu0 %v4852_v34  ;;  %3663 = vmatprep.subr.bf16.mxu1 %v4854_v35  ;;  %v691_v34 = vld [vmem:[%s5502_s10 + $0xc40] sm:$0xff] }
 0x110   : > { %v695_v35 = vld [vmem:[%s5502_s10 + $0xc60] sm:$0xff] }
 0x112   : > { %3500 = vmatpush1.bf16.msra.mxu0 %v4851_v40  ;;  %3664 = vmatpush1.bf16.msra.mxu1 %v4853_v41  ;;  %v4907_v40 = vcombine.low %v683_v26, %v687_v27  ;;  %v4909_v41 = vcombine.low %v684_v28, %v688_v29  ;;  %v739_v26 = vld [vmem:[%s5502_s10 + $0xdc0] sm:$0xff]  ;;  %v740_v28 = vld [vmem:[%s5502_s10 + $0xdc8] sm:$0xff] }
 0x113   : > { %3501 = vmatprep.subr.bf16.mxu0 %v4860_v42  ;;  %3665 = vmatprep.subr.bf16.mxu1 %v4862_v43  ;;  %v4916_v42 = vcombine.high %v691_v34, %v695_v35  ;;  %v4918_v43 = vcombine.high %v692_v37, %v696_v38  ;;  %v743_v27 = vld [vmem:[%s5502_s10 + $0xde0] sm:$0xff]  ;;  %v744_v29 = vld [vmem:[%s5502_s10 + $0xde8] sm:$0xff] }
 0x116   : > { %3502 = vmatpush1.bf16.msra.mxu0 %v4859_v48  ;;  %3666 = vmatpush1.bf16.msra.mxu1 %v4861_v49  ;;  %v4915_v48 = vcombine.low %v691_v34, %v695_v35  ;;  %v4917_v49 = vcombine.low %v692_v37, %v696_v38  ;;  %v747_v34 = vld [vmem:[%s5502_s10 + $0xe00] sm:$0xff]  ;;  %v748_v37 = vld [vmem:[%s5502_s10 + $0xe08] sm:$0xff] }
 0x117   : > { %3503 = vmatprep.subr.bf16.mxu0 %v4868_v50  ;;  %3667 = vmatprep.subr.bf16.mxu1 %v4870_v51  ;;  %v4924_v50 = vcombine.high %v699_v25, %v703_v44  ;;  %v4926_v51 = vcombine.high %v700_v46, %v704_v47  ;;  %v751_v35 = vld [vmem:[%s5502_s10 + $0xe20] sm:$0xff]  ;;  %v752_v38 = vld [vmem:[%s5502_s10 + $0xe28] sm:$0xff] }
 0x11a   : > { %3504 = vmatpush1.bf16.msra.mxu0 %v4867_v58  ;;  %3668 = vmatpush1.bf16.msra.mxu1 %v4869_v59  ;;  %v4923_v58 = vcombine.low %v699_v25, %v703_v44  ;;  %v4925_v59 = vcombine.low %v700_v46, %v704_v47  ;;  %v755_v25 = vld [vmem:[%s5502_s10 + $0xe40] sm:$0xff]  ;;  %v756_v46 = vld [vmem:[%s5502_s10 + $0xe48] sm:$0xff] }
 0x11b   : > { %3505 = vmatprep.subr.bf16.mxu0 %v4876_v60  ;;  %3669 = vmatprep.subr.bf16.mxu1 %v4878_v61  ;;  %v4932_v60 = vcombine.high %v707_v52, %v711_v54  ;;  %v4934_v61 = vcombine.high %v708_v55, %v712_v56  ;;  %v759_v44 = vld [vmem:[%s5502_s10 + $0xe60] sm:$0xff]  ;;  %v760_v47 = vld [vmem:[%s5502_s10 + $0xe68] sm:$0xff] }
 0x11e   : > { %3506 = vmatpush1.bf16.msra.mxu0 %v4875_v2  ;;  %3670 = vmatpush1.bf16.msra.mxu1 %v4877_v3  ;;  %v4931_v2 = vcombine.low %v707_v52, %v711_v54  ;;  %v4933_v3 = vcombine.low %v708_v55, %v712_v56  ;;  %v763_v52 = vld [vmem:[%s5502_s10 + $0xe80] sm:$0xff]  ;;  %v764_v55 = vld [vmem:[%s5502_s10 + $0xe88] sm:$0xff] }
 0x11f   : > { %3507 = vmatprep.subr.bf16.mxu0 %v4884_v4  ;;  %3671 = vmatprep.subr.bf16.mxu1 %v4886_v5  ;;  %v4940_v4 = vcombine.high %v715_v62, %v719_v63  ;;  %v4942_v5 = vcombine.high %v716_v0, %v720_v1  ;;  %v767_v54 = vld [vmem:[%s5502_s10 + $0xea0] sm:$0xff]  ;;  %v768_v56 = vld [vmem:[%s5502_s10 + $0xea8] sm:$0xff] }
 0x122   : > { %3508 = vmatpush1.bf16.msra.mxu0 %v4883_v10  ;;  %3672 = vmatpush1.bf16.msra.mxu1 %v4885_v11  ;;  %v4939_v10 = vcombine.low %v715_v62, %v719_v63  ;;  %v4941_v11 = vcombine.low %v716_v0, %v720_v1  ;;  %v771_v62 = vld [vmem:[%s5502_s10 + $0xec0] sm:$0xff]  ;;  %v772_v0 = vld [vmem:[%s5502_s10 + $0xec8] sm:$0xff] }
 0x123   : > { %3509 = vmatprep.subr.bf16.mxu0 %v4892_v13  ;;  %3673 = vmatprep.subr.bf16.mxu1 %v4894_v14  ;;  %v4948_v13 = vcombine.high %v723_v6, %v727_v7  ;;  %v4950_v14 = vcombine.high %v724_v8, %v728_v9  ;;  %v775_v63 = vld [vmem:[%s5502_s10 + $0xee0] sm:$0xff]  ;;  %v776_v1 = vld [vmem:[%s5502_s10 + $0xee8] sm:$0xff] }
 0x126   : > { %3510 = vmatpush1.bf16.msra.mxu0 %v4891_v53  ;;  %3674 = vmatpush1.bf16.msra.mxu1 %v4893_v20  ;;  %v4947_v53 = vcombine.low %v723_v6, %v727_v7  ;;  %v4949_v20 = vcombine.low %v724_v8, %v728_v9  ;;  %v779_v6 = vld [vmem:[%s5502_s10 + $0xf00] sm:$0xff]  ;;  %v780_v8 = vld [vmem:[%s5502_s10 + $0xf08] sm:$0xff] }
 0x127   : > { %3511 = vmatprep.subr.bf16.mxu0 %v4900_v23  ;;  %3675 = vmatprep.subr.bf16.mxu1 %v4902_v24  ;;  %v4956_v23 = vcombine.high %v731_v16, %v735_v17  ;;  %v4958_v24 = vcombine.high %v732_v18, %v736_v19  ;;  %v783_v7 = vld [vmem:[%s5502_s10 + $0xf20] sm:$0xff]  ;;  %v784_v9 = vld [vmem:[%s5502_s10 + $0xf28] sm:$0xff] }
 0x12a   : > { %3512 = vmatpush1.bf16.msra.mxu0 %v4899_v15  ;;  %3676 = vmatpush1.bf16.msra.mxu1 %v4901_v30  ;;  %v4955_v15 = vcombine.low %v731_v16, %v735_v17  ;;  %v4957_v30 = vcombine.low %v732_v18, %v736_v19  ;;  %v787_v16 = vld [vmem:[%s5502_s10 + $0xf40] sm:$0xff]  ;;  %v788_v18 = vld [vmem:[%s5502_s10 + $0xf48] sm:$0xff] }
 0x12b   : > { %3522 = vmatprep.subr.bf16.mxu0 %v4908_v32  ;;  %3686 = vmatprep.subr.bf16.mxu1 %v4910_v33  ;;  %v4964_v32 = vcombine.high %v739_v26, %v743_v27  ;;  %v4966_v33 = vcombine.high %v740_v28, %v744_v29  ;;  %v791_v17 = vld [vmem:[%s5502_s10 + $0xf60] sm:$0xff]  ;;  %v792_v19 = vld [vmem:[%s5502_s10 + $0xf68] sm:$0xff] }
 0x12d   : > { %3514 = vmatmul.mubr.bf16.vlgmr.msra.gmra.mrb[0].mxu0 %v5763_v36  ;;  %3678 = vmatmul.mubr.bf16.vlgmr.msra.gmra.mrb[0].mxu1 %v5763_v36 }
 0x12e   : > { %3523 = vmatpush1.bf16.msra.mxu0 %v4907_v40  ;;  %3687 = vmatpush1.bf16.msra.mxu1 %v4909_v41  ;;  %v4963_v40 = vcombine.low %v739_v26, %v743_v27  ;;  %v4965_v41 = vcombine.low %v740_v28, %v744_v29  ;;  %v795_v26 = vld [vmem:[%s5502_s10 + $0xf80] sm:$0xff]  ;;  %v796_v28 = vld [vmem:[%s5502_s10 + $0xf88] sm:$0xff] }
 0x12f   : > { %3524 = vmatprep.subr.bf16.mxu0 %v4916_v42  ;;  %3688 = vmatprep.subr.bf16.mxu1 %v4918_v43  ;;  %v4972_v42 = vcombine.high %v747_v34, %v751_v35  ;;  %v4974_v43 = vcombine.high %v748_v37, %v752_v38  ;;  %v799_v27 = vld [vmem:[%s5502_s10 + $0xfa0] sm:$0xff]  ;;  %v800_v29 = vld [vmem:[%s5502_s10 + $0xfa8] sm:$0xff] }
 0x130   : > { %3554 = vmatprep.mubr.bf16.mxu0 %v5776_v45  ;;  %3718 = vmatprep.mubr.bf16.mxu1 %v5776_v45 }
 0x132   : > { %3525 = vmatpush1.bf16.msra.mxu0 %v4915_v48  ;;  %3689 = vmatpush1.bf16.msra.mxu1 %v4917_v49  ;;  %v4971_v48 = vcombine.low %v747_v34, %v751_v35  ;;  %v4973_v49 = vcombine.low %v748_v37, %v752_v38  ;;  %v803_v34 = vld [vmem:[%s5502_s10 + $0xfc0] sm:$0xff]  ;;  %v804_v37 = vld [vmem:[%s5502_s10 + $0xfc8] sm:$0xff] }
 0x133   : > { %3526 = vmatprep.subr.bf16.mxu0 %v4924_v50  ;;  %3690 = vmatprep.subr.bf16.mxu1 %v4926_v51  ;;  %v4980_v50 = vcombine.high %v755_v25, %v759_v44  ;;  %v4982_v51 = vcombine.high %v756_v46, %v760_v47  ;;  %v807_v35 = vld [vmem:[%s5502_s10 + $0xfe0] sm:$0xff]  ;;  %v808_v38 = vld [vmem:[%s5502_s10 + $0xfe8] sm:$0xff] }
 0x136   : > { %3527 = vmatpush1.bf16.msra.mxu0 %v4923_v58  ;;  %3691 = vmatpush1.bf16.msra.mxu1 %v4925_v59  ;;  %v4979_v58 = vcombine.low %v755_v25, %v759_v44  ;;  %v4981_v59 = vcombine.low %v756_v46, %v760_v47  ;;  %v301_v25 = vld [vmem:[%s5502_s10 + $0x10] sm:$0xff]  ;;  %v302_v46 = vld [vmem:[%s5502_s10 + $0x18] sm:$0xff] }
 0x137   : > { %3528 = vmatprep.subr.bf16.mxu0 %v4932_v60  ;;  %3692 = vmatprep.subr.bf16.mxu1 %v4934_v61  ;;  %v4988_v60 = vcombine.high %v763_v52, %v767_v54  ;;  %v4990_v61 = vcombine.high %v764_v55, %v768_v56  ;;  %v305_v44 = vld [vmem:[%s5502_s10 + $0x30] sm:$0xff]  ;;  %v306_v47 = vld [vmem:[%s5502_s10 + $0x38] sm:$0xff] }
 0x13a   : > { %3529 = vmatpush1.bf16.msra.mxu0 %v4931_v2  ;;  %3693 = vmatpush1.bf16.msra.mxu1 %v4933_v3  ;;  %v4987_v2 = vcombine.low %v763_v52, %v767_v54  ;;  %v4989_v3 = vcombine.low %v764_v55, %v768_v56  ;;  %v309_v52 = vld [vmem:[%s5502_s10 + $0x50] sm:$0xff]  ;;  %v5844_v55 = vcombine.low %v5770_v39, %v5770_v39  ;;  %v310_v56 = vld [vmem:[%s5502_s10 + $0x58] sm:$0xff] }
 0x13b   : > { %3530 = vmatprep.subr.bf16.mxu0 %v4940_v4  ;;  %3694 = vmatprep.subr.bf16.mxu1 %v4942_v5  ;;  %v4996_v4 = vcombine.high %v771_v62, %v775_v63  ;;  %v4998_v5 = vcombine.high %v772_v0, %v776_v1  ;;  %v313_v54 = vld [vmem:[%s5502_s10 + $0x70] sm:$0xff]  ;;  %v318_v39 = vld [vmem:[%s5502_s10 + $0x98] sm:$0xff] }
 0x13e   : > { %3531 = vmatpush1.bf16.msra.mxu0 %v4939_v10  ;;  %3695 = vmatpush1.bf16.msra.mxu1 %v4941_v11  ;;  %v4995_v10 = vcombine.low %v771_v62, %v775_v63  ;;  %v4997_v11 = vcombine.low %v772_v0, %v776_v1  ;;  %v317_v63 = vld [vmem:[%s5502_s10 + $0x90] sm:$0xff]  ;;  %v322_v1 = vld [vmem:[%s5502_s10 + $0xb8] sm:$0xff] }
 0x13f   : > { %3532 = vmatprep.subr.bf16.mxu0 %v4948_v13  ;;  %3696 = vmatprep.subr.bf16.mxu1 %v4950_v14  ;;  %v5004_v13 = vcombine.high %v779_v6, %v783_v7  ;;  %v5006_v14 = vcombine.high %v780_v8, %v784_v9  ;;  %v321_v0 = vld [vmem:[%s5502_s10 + $0xb0] sm:$0xff] }
 0x142   : > { %3533 = vmatpush1.bf16.msra.mxu0 %v4947_v53  ;;  %3697 = vmatpush1.bf16.msra.mxu1 %v4949_v20  ;;  %v5003_v53 = vcombine.low %v779_v6, %v783_v7  ;;  %v5005_v20 = vcombine.low %v780_v8, %v784_v9  ;;  %v325_v6 = vld [vmem:[%s5502_s10 + $0xd0] sm:$0xff]  ;;  %v326_v8 = vld [vmem:[%s5502_s10 + $0xd8] sm:$0xff] }
 0x143   : > { %3534 = vmatprep.subr.bf16.mxu0 %v4956_v23  ;;  %3698 = vmatprep.subr.bf16.mxu1 %v4958_v24  ;;  %v5012_v23 = vcombine.high %v787_v16, %v791_v17  ;;  %v5014_v24 = vcombine.high %v788_v18, %v792_v19  ;;  %v329_v7 = vld [vmem:[%s5502_s10 + $0xf0] sm:$0xff]  ;;  %v330_v9 = vld [vmem:[%s5502_s10 + $0xf8] sm:$0xff] }
 0x146   : > { %3535 = vmatpush1.bf16.msra.mxu0 %v4955_v15  ;;  %3699 = vmatpush1.bf16.msra.mxu1 %v4957_v30  ;;  %v5011_v15 = vcombine.low %v787_v16, %v791_v17  ;;  %v5013_v30 = vcombine.low %v788_v18, %v792_v19  ;;  %v333_v16 = vld [vmem:[%s5502_s10 + $0x110] sm:$0xff]  ;;  %v334_v18 = vld [vmem:[%s5502_s10 + $0x118] sm:$0xff] }
 0x147   : > { %3536 = vmatprep.subr.bf16.mxu0 %v4964_v32  ;;  %3700 = vmatprep.subr.bf16.mxu1 %v4966_v33  ;;  %v5020_v32 = vcombine.high %v795_v26, %v799_v27  ;;  %v5022_v33 = vcombine.high %v796_v28, %v800_v29  ;;  %v337_v17 = vld [vmem:[%s5502_s10 + $0x130] sm:$0xff]  ;;  %v338_v19 = vld [vmem:[%s5502_s10 + $0x138] sm:$0xff] }
 0x14a   : > { %3537 = vmatpush1.bf16.msra.mxu0 %v4963_v40  ;;  %3701 = vmatpush1.bf16.msra.mxu1 %v4965_v41  ;;  %v5019_v40 = vcombine.low %v795_v26, %v799_v27  ;;  %v5021_v41 = vcombine.low %v796_v28, %v800_v29  ;;  %v345_v26 = vld [vmem:[%s5502_s10 + $0x170] sm:$0xff]  ;;  %v342_v27 = vld [vmem:[%s5502_s10 + $0x158] sm:$0xff]  ;;  %v4559_v29 = vcombine.low %v333_v16, %v337_v17 }
 0x14b   : > { %3538 = vmatprep.subr.bf16.mxu0 %v4972_v42  ;;  %3702 = vmatprep.subr.bf16.mxu1 %v4974_v43  ;;  %v5028_v42 = vcombine.high %v803_v34, %v807_v35  ;;  %v5030_v43 = vcombine.high %v804_v37, %v808_v38  ;;  %v346_v28 = vld [vmem:[%s5502_s10 + $0x178] sm:$0xff] }
 0x14e   : > { %3539 = vmatpush1.bf16.msra.mxu0 %v4971_v48  ;;  %3703 = vmatpush1.bf16.msra.mxu1 %v4973_v49  ;;  %v5027_v48 = vcombine.low %v803_v34, %v807_v35  ;;  %v5029_v49 = vcombine.low %v804_v37, %v808_v38  ;;  %v353_v34 = vld [vmem:[%s5502_s10 + $0x1b0] sm:$0xff]  ;;  %v350_v35 = vld [vmem:[%s5502_s10 + $0x198] sm:$0xff] }
 0x14f   : > { %3540 = vmatprep.subr.bf16.mxu0 %v4980_v50  ;;  %3704 = vmatprep.subr.bf16.mxu1 %v4982_v51  ;;  %v4528_v50 = vcombine.high %v301_v25, %v305_v44  ;;  %v4530_v51 = vcombine.high %v302_v46, %v306_v47  ;;  %v354_v37 = vld [vmem:[%s5502_s10 + $0x1b8] sm:$0xff] }
 0x152   : > { %3541 = vmatpush1.bf16.msra.mxu0 %v4979_v58  ;;  %3705 = vmatpush1.bf16.msra.mxu1 %v4981_v59  ;;  %v314_v58 = vld [vmem:[%s5502_s10 + $0x78] sm:$0xff]  ;;  %v4527_v59 = vcombine.low %v301_v25, %v305_v44  ;;  %v361_v25 = vld [vmem:[%s5502_s10 + $0x1f0] sm:$0xff] }
 0x153   : > { %3542 = vmatprep.subr.bf16.mxu0 %v4988_v60  ;;  %3706 = vmatprep.subr.bf16.mxu1 %v4990_v61  ;;  %v4529_v60 = vcombine.low %v302_v46, %v306_v47  ;;  %v4536_v61 = vcombine.high %v309_v52, %v313_v54  ;;  %v4538_v62 = vcombine.high %v310_v56, %v314_v58  ;;  %v358_v44 = vld [vmem:[%s5502_s10 + $0x1d8] sm:$0xff] }
 0x154   : > { %v362_v46 = vld [vmem:[%s5502_s10 + $0x1f8] sm:$0xff] }
 0x156   : > { %3543 = vmatpush1.bf16.msra.mxu0 %v4987_v2  ;;  %3707 = vmatpush1.bf16.msra.mxu1 %v4989_v3  ;;  %v4535_v2 = vcombine.low %v309_v52, %v313_v54  ;;  %v4537_v3 = vcombine.low %v310_v56, %v314_v58  ;;  %v369_v52 = vld [vmem:[%s5502_s10 + $0x230] sm:$0xff]  ;;  %v366_v54 = vld [vmem:[%s5502_s10 + $0x218] sm:$0xff] }
 0x157   : > { %3544 = vmatprep.subr.bf16.mxu0 %v4996_v4  ;;  %3708 = vmatprep.subr.bf16.mxu1 %v4998_v5  ;;  %v4544_v4 = vcombine.high %v317_v63, %v321_v0  ;;  %v4546_v5 = vcombine.high %v318_v39, %v322_v1  ;;  %v370_v56 = vld [vmem:[%s5502_s10 + $0x238] sm:$0xff] }
 0x15a   : > { %3545 = vmatpush1.bf16.msra.mxu0 %v4995_v10  ;;  %3709 = vmatpush1.bf16.msra.mxu1 %v4997_v11  ;;  %v4543_v10 = vcombine.low %v317_v63, %v321_v0  ;;  %v4545_v11 = vcombine.low %v318_v39, %v322_v1  ;;  %v377_v63 = vld [vmem:[%s5502_s10 + $0x270] sm:$0xff]  ;;  %v374_v0 = vld [vmem:[%s5502_s10 + $0x258] sm:$0xff] }
 0x15b   : > { %3546 = vmatprep.subr.bf16.mxu0 %v5004_v13  ;;  %3710 = vmatprep.subr.bf16.mxu1 %v5006_v14  ;;  %v4552_v13 = vcombine.high %v325_v6, %v329_v7  ;;  %v4554_v14 = vcombine.high %v326_v8, %v330_v9  ;;  %v378_v39 = vld [vmem:[%s5502_s10 + $0x278] sm:$0xff] }
 0x15e   : > { %3547 = vmatpush1.bf16.msra.mxu0 %v5003_v53  ;;  %3711 = vmatpush1.bf16.msra.mxu1 %v5005_v20  ;;  %v4551_v53 = vcombine.low %v325_v6, %v329_v7  ;;  %v4560_v20 = vcombine.high %v333_v16, %v337_v17  ;;  %v385_v6 = vld [vmem:[%s5502_s10 + $0x2b0] sm:$0xff]  ;;  %v382_v7 = vld [vmem:[%s5502_s10 + $0x298] sm:$0xff] }
 0x15f   : > { %3548 = vmatprep.subr.bf16.mxu0 %v5012_v23  ;;  %3712 = vmatprep.subr.bf16.mxu1 %v5014_v24  ;;  %v4562_v23 = vcombine.high %v334_v18, %v338_v19  ;;  %v341_v24 = vld [vmem:[%s5502_s10 + $0x150] sm:$0xff]  ;;  %v390_v17 = vld [vmem:[%s5502_s10 + $0x2d8] sm:$0xff] }
 0x160   : > { %v4567_v38 = vcombine.low %v341_v24, %v345_v26  ;;  %v393_v16 = vld [vmem:[%s5502_s10 + $0x2f0] sm:$0xff] }
 0x162   : > { %3549 = vmatpush1.bf16.msra.mxu0 %v5011_v15  ;;  %3713 = vmatpush1.bf16.msra.mxu1 %v5013_v30  ;;  %v4561_v15 = vcombine.low %v334_v18, %v338_v19  ;;  %v4568_v30 = vcombine.high %v341_v24, %v345_v26  ;;  %v394_v18 = vld [vmem:[%s5502_s10 + $0x2f8] sm:$0xff]  ;;  %v401_v24 = vld [vmem:[%s5502_s10 + $0x330] sm:$0xff] }
 0x163   : > { %3550 = vmatprep.subr.bf16.mxu0 %v5020_v32  ;;  %3714 = vmatprep.subr.bf16.mxu1 %v5022_v33  ;;  %v4570_v32 = vcombine.high %v342_v27, %v346_v28  ;;  %v349_v33 = vld [vmem:[%s5502_s10 + $0x190] sm:$0xff]  ;;  %v398_v26 = vld [vmem:[%s5502_s10 + $0x318] sm:$0xff] }
 0x164   : > { %v4575_v47 = vcombine.low %v349_v33, %v353_v34 }
 0x166   : > { %3551 = vmatpush1.bf16.msra.mxu0 %v5019_v40  ;;  %3715 = vmatpush1.bf16.msra.mxu1 %v5021_v41  ;;  %v4569_v40 = vcombine.low %v342_v27, %v346_v28  ;;  %v4576_v41 = vcombine.high %v349_v33, %v353_v34  ;;  %v402_v27 = vld [vmem:[%s5502_s10 + $0x338] sm:$0xff]  ;;  %v409_v33 = vld [vmem:[%s5502_s10 + $0x370] sm:$0xff] }
 0x167   : > { %3552 = vmatprep.subr.bf16.mxu0 %v5028_v42  ;;  %3716 = vmatprep.subr.bf16.mxu1 %v5030_v43  ;;  %v4578_v42 = vcombine.high %v350_v35, %v354_v37  ;;  %v357_v43 = vld [vmem:[%s5502_s10 + $0x1d0] sm:$0xff]  ;;  %v406_v34 = vld [vmem:[%s5502_s10 + $0x358] sm:$0xff] }
 0x168   : > { %v4583_v58 = vcombine.low %v357_v43, %v361_v25 }
 0x16a   : > { %3553 = vmatpush1.bf16.msra.mxu0 %v5027_v48  ;;  %3717 = vmatpush1.bf16.msra.mxu1 %v5029_v49  ;;  %v4577_v48 = vcombine.low %v350_v35, %v354_v37  ;;  %v4584_v49 = vcombine.high %v357_v43, %v361_v25  ;;  %v410_v35 = vld [vmem:[%s5502_s10 + $0x378] sm:$0xff]  ;;  %v417_v43 = vld [vmem:[%s5502_s10 + $0x3b0] sm:$0xff] }
 0x16b   : > { %3727 = vmatprep.subr.bf16.mxu0 %v4528_v50  ;;  %3891 = vmatprep.subr.bf16.mxu1 %v4530_v51  ;;  %v4586_v50 = vcombine.high %v358_v44, %v362_v46  ;;  %v365_v51 = vld [vmem:[%s5502_s10 + $0x210] sm:$0xff]  ;;  %v414_v25 = vld [vmem:[%s5502_s10 + $0x398] sm:$0xff] }
 0x16c   : > { %v4591_v1 = vcombine.low %v365_v51, %v369_v52 }
 0x16d   : > { %3555 = vmatmul.mubr.bf16.vlgmr.msra.gmra.mrb[0].mxu0 %v5844_v55  ;;  %3719 = vmatmul.mubr.bf16.vlgmr.msra.gmra.mrb[0].mxu1 %v5844_v55 }
 0x16e   : > { %3728 = vmatpush1.bf16.msra.mxu0 %v4527_v59  ;;  %3892 = vmatpush1.bf16.msra.mxu1 %v4529_v60  ;;  %v4585_v59 = vcombine.low %v358_v44, %v362_v46  ;;  %v4592_v60 = vcombine.high %v365_v51, %v369_v52  ;;  %v418_v44 = vld [vmem:[%s5502_s10 + $0x3b8] sm:$0xff]  ;;  %v425_v51 = vld [vmem:[%s5502_s10 + $0x3f0] sm:$0xff] }
 0x16f   : > { %3729 = vmatprep.subr.bf16.mxu0 %v4536_v61  ;;  %3893 = vmatprep.subr.bf16.mxu1 %v4538_v62  ;;  %v4594_v61 = vcombine.high %v366_v54, %v370_v56  ;;  %v373_v62 = vld [vmem:[%s5502_s10 + $0x250] sm:$0xff]  ;;  %v422_v52 = vld [vmem:[%s5502_s10 + $0x3d8] sm:$0xff] }
 0x170   : > { %3759 = vmatprep.mubr.bf16.mxu0 %v5555_v57  ;;  %3923 = vmatprep.mubr.bf16.mxu1 %v5555_v57  ;;  %v4553_v57 = vcombine.low %v326_v8, %v330_v9  ;;  %v386_v8 = vld [vmem:[%s5502_s10 + $0x2b8] sm:$0xff]  ;;  %v4599_v9 = vcombine.low %v373_v62, %v377_v63 }
 0x172   : > { %3730 = vmatpush1.bf16.msra.mxu0 %v4535_v2  ;;  %3894 = vmatpush1.bf16.msra.mxu1 %v4537_v3  ;;  %v4593_v2 = vcombine.low %v366_v54, %v370_v56  ;;  %v4600_v3 = vcombine.high %v373_v62, %v377_v63  ;;  %v426_v54 = vld [vmem:[%s5502_s10 + $0x3f8] sm:$0xff]  ;;  %v433_v62 = vld [vmem:[%s5502_s10 + $0x430] sm:$0xff] }
 0x173   : > { %3731 = vmatprep.subr.bf16.mxu0 %v4544_v4  ;;  %3895 = vmatprep.subr.bf16.mxu1 %v4546_v5  ;;  %v4602_v4 = vcombine.high %v374_v0, %v378_v39  ;;  %v381_v5 = vld [vmem:[%s5502_s10 + $0x290] sm:$0xff]  ;;  %v430_v63 = vld [vmem:[%s5502_s10 + $0x418] sm:$0xff] }
 0x174   : > { %v4607_v19 = vcombine.low %v381_v5, %v385_v6 }
 0x176   : > { %3732 = vmatpush1.bf16.msra.mxu0 %v4543_v10  ;;  %3896 = vmatpush1.bf16.msra.mxu1 %v4545_v11  ;;  %v4601_v10 = vcombine.low %v374_v0, %v378_v39  ;;  %v4608_v11 = vcombine.high %v381_v5, %v385_v6  ;;  %v434_v0 = vld [vmem:[%s5502_s10 + $0x438] sm:$0xff]  ;;  %v441_v5 = vld [vmem:[%s5502_s10 + $0x470] sm:$0xff] }
 0x177   : > { %3733 = vmatprep.subr.bf16.mxu0 %v4552_v13  ;;  %3897 = vmatprep.subr.bf16.mxu1 %v4554_v14  ;;  %v4610_v13 = vcombine.high %v382_v7, %v386_v8  ;;  %v389_v14 = vld [vmem:[%s5502_s10 + $0x2d0] sm:$0xff]  ;;  %v438_v6 = vld [vmem:[%s5502_s10 + $0x458] sm:$0xff] }
 0x178   : > { %v4615_v28 = vcombine.low %v389_v14, %v393_v16 }
 0x17a   : > { %3734 = vmatpush1.bf16.msra.mxu0 %v4551_v53  ;;  %3898 = vmatpush1.bf16.msra.mxu1 %v4553_v57  ;;  %v4609_v53 = vcombine.low %v382_v7, %v386_v8  ;;  %v4616_v57 = vcombine.high %v389_v14, %v393_v16  ;;  %v442_v7 = vld [vmem:[%s5502_s10 + $0x478] sm:$0xff]  ;;  %v449_v14 = vld [vmem:[%s5502_s10 + $0x4b0] sm:$0xff] }
 0x17b   : > { %3735 = vmatprep.subr.bf16.mxu0 %v4560_v20  ;;  %3899 = vmatprep.subr.bf16.mxu1 %v4562_v23  ;;  %v4618_v20 = vcombine.high %v390_v17, %v394_v18  ;;  %v397_v23 = vld [vmem:[%s5502_s10 + $0x310] sm:$0xff]  ;;  %v446_v16 = vld [vmem:[%s5502_s10 + $0x498] sm:$0xff] }
 0x17c   : > { %v4623_v37 = vcombine.low %v397_v23, %v401_v24 }
 0x17e   : > { %3736 = vmatpush1.bf16.msra.mxu0 %v4559_v29  ;;  %3900 = vmatpush1.bf16.msra.mxu1 %v4561_v15  ;;  %v4617_v29 = vcombine.low %v390_v17, %v394_v18  ;;  %v4624_v15 = vcombine.high %v397_v23, %v401_v24  ;;  %v450_v17 = vld [vmem:[%s5502_s10 + $0x4b8] sm:$0xff]  ;;  %v457_v23 = vld [vmem:[%s5502_s10 + $0x4f0] sm:$0xff] }
 0x17f   : > { %3737 = vmatprep.subr.bf16.mxu0 %v4568_v30  ;;  %3901 = vmatprep.subr.bf16.mxu1 %v4570_v32  ;;  %v4626_v30 = vcombine.high %v398_v26, %v402_v27  ;;  %v405_v32 = vld [vmem:[%s5502_s10 + $0x350] sm:$0xff]  ;;  %v454_v24 = vld [vmem:[%s5502_s10 + $0x4d8] sm:$0xff] }
 0x180   : > { %v4631_v46 = vcombine.low %v405_v32, %v409_v33 }
 0x182   : > { %3738 = vmatpush1.bf16.msra.mxu0 %v4567_v38  ;;  %3902 = vmatpush1.bf16.msra.mxu1 %v4569_v40  ;;  %v4625_v38 = vcombine.low %v398_v26, %v402_v27  ;;  %v4632_v40 = vcombine.high %v405_v32, %v409_v33  ;;  %v458_v26 = vld [vmem:[%s5502_s10 + $0x4f8] sm:$0xff]  ;;  %v4673_v27 = vcombine.low %v446_v16, %v450_v17 }
 0x183   : > { %3739 = vmatprep.subr.bf16.mxu0 %v4576_v41  ;;  %3903 = vmatprep.subr.bf16.mxu1 %v4578_v42  ;;  %v4634_v41 = vcombine.high %v406_v34, %v410_v35  ;;  %v413_v42 = vld [vmem:[%s5502_s10 + $0x390] sm:$0xff]  ;;  %v462_v32 = vld [vmem:[%s5502_s10 + $0x518] sm:$0xff] }
 0x184   : > { %v4639_v56 = vcombine.low %v413_v42, %v417_v43  ;;  %v466_v33 = vld [vmem:[%s5502_s10 + $0x538] sm:$0xff] }
 0x186   : > { %3740 = vmatpush1.bf16.msra.mxu0 %v4575_v47  ;;  %3904 = vmatpush1.bf16.msra.mxu1 %v4577_v48  ;;  %v4633_v47 = vcombine.low %v406_v34, %v410_v35  ;;  %v4640_v48 = vcombine.high %v413_v42, %v417_v43  ;;  %v474_v42 = vld [vmem:[%s5502_s10 + $0x578] sm:$0xff] }
 0x187   : > { %3741 = vmatprep.subr.bf16.mxu0 %v4584_v49  ;;  %3905 = vmatprep.subr.bf16.mxu1 %v4586_v50  ;;  %v4642_v49 = vcombine.high %v414_v25, %v418_v44  ;;  %v421_v50 = vld [vmem:[%s5502_s10 + $0x3d0] sm:$0xff] }
 0x188   : > { %v4647_v39 = vcombine.low %v421_v50, %v425_v51 }
 0x18a   : > { %3742 = vmatpush1.bf16.msra.mxu0 %v4583_v58  ;;  %3906 = vmatpush1.bf16.msra.mxu1 %v4585_v59  ;;  %v4641_v58 = vcombine.low %v414_v25, %v418_v44  ;;  %v4648_v59 = vcombine.high %v421_v50, %v425_v51  ;;  %v4689_v25 = vcombine.low %v462_v32, %v466_v33  ;;  %v482_v50 = vld [vmem:[%s5502_s10 + $0x5b8] sm:$0xff] }
 0x18b   : > { %3743 = vmatprep.subr.bf16.mxu0 %v4592_v60  ;;  %3907 = vmatprep.subr.bf16.mxu1 %v4594_v61  ;;  %v4650_v60 = vcombine.high %v422_v52, %v426_v54  ;;  %v429_v61 = vld [vmem:[%s5502_s10 + $0x410] sm:$0xff] }
 0x18c   : > { %v4655_v8 = vcombine.low %v429_v61, %v433_v62 }
 0x18e   : > { %3744 = vmatpush1.bf16.msra.mxu0 %v4591_v1  ;;  %3908 = vmatpush1.bf16.msra.mxu1 %v4593_v2  ;;  %v4649_v1 = vcombine.low %v422_v52, %v426_v54  ;;  %v4656_v2 = vcombine.high %v429_v61, %v433_v62  ;;  %v490_v61 = vld [vmem:[%s5502_s10 + $0x5f8] sm:$0xff] }
 0x18f   : > { %3745 = vmatprep.subr.bf16.mxu0 %v4600_v3  ;;  %3909 = vmatprep.subr.bf16.mxu1 %v4602_v4  ;;  %v4658_v3 = vcombine.high %v430_v63, %v434_v0  ;;  %v437_v4 = vld [vmem:[%s5502_s10 + $0x450] sm:$0xff] }
 0x190   : > { %v4663_v18 = vcombine.low %v437_v4, %v441_v5 }
 0x192   : > { %3746 = vmatpush1.bf16.msra.mxu0 %v4599_v9  ;;  %3910 = vmatpush1.bf16.msra.mxu1 %v4601_v10  ;;  %v4657_v9 = vcombine.low %v430_v63, %v434_v0  ;;  %v4664_v10 = vcombine.high %v437_v4, %v441_v5  ;;  %v498_v4 = vld [vmem:[%s5502_s10 + $0x638] sm:$0xff] }
 0x193   : > { %3747 = vmatprep.subr.bf16.mxu0 %v4608_v11  ;;  %3911 = vmatprep.subr.bf16.mxu1 %v4610_v13  ;;  %v4666_v11 = vcombine.high %v438_v6, %v442_v7  ;;  %v445_v13 = vld [vmem:[%s5502_s10 + $0x490] sm:$0xff] }
 0x196   : > { %3748 = vmatpush1.bf16.msra.mxu0 %v4607_v19  ;;  %3912 = vmatpush1.bf16.msra.mxu1 %v4609_v53  ;;  %v4665_v19 = vcombine.low %v438_v6, %v442_v7  ;;  %v4672_v53 = vcombine.high %v445_v13, %v449_v14 }
 0x197   : > { %3749 = vmatprep.subr.bf16.mxu0 %v4616_v57  ;;  %3913 = vmatprep.subr.bf16.mxu1 %v4618_v20  ;;  %v4674_v57 = vcombine.high %v446_v16, %v450_v17  ;;  %v453_v20 = vld [vmem:[%s5502_s10 + $0x4d0] sm:$0xff] }
 0x198   : > { %v4679_v34 = vcombine.low %v453_v20, %v457_v23 }
 0x19a   : > { %3750 = vmatpush1.bf16.msra.mxu0 %v4615_v28  ;;  %3914 = vmatpush1.bf16.msra.mxu1 %v4617_v29  ;;  %v4680_v28 = vcombine.high %v453_v20, %v457_v23  ;;  %v4682_v29 = vcombine.high %v454_v24, %v458_v26  ;;  %v514_v20 = vld [vmem:[%s5502_s10 + $0x6b8] sm:$0xff] }
 0x19b   : > { %3751 = vmatprep.subr.bf16.mxu0 %v4624_v15  ;;  %3915 = vmatprep.subr.bf16.mxu1 %v4626_v30  ;;  %v461_v15 = vld [vmem:[%s5502_s10 + $0x510] sm:$0xff] }
 0x19c   : > { %v465_v30 = vld [vmem:[%s5502_s10 + $0x530] sm:$0xff] }
 0x19d   : > { %v4688_v35 = vcombine.high %v461_v15, %v465_v30  ;;  %v4687_v43 = vcombine.low %v461_v15, %v465_v30  ;;  %v522_v15 = vld [vmem:[%s5502_s10 + $0x6f8] sm:$0xff] }
 0x19e   : > { %3752 = vmatpush1.bf16.msra.mxu0 %v4623_v37  ;;  %3916 = vmatpush1.bf16.msra.mxu1 %v4625_v38  ;;  %v4690_v37 = vcombine.high %v462_v32, %v466_v33  ;;  %v469_v38 = vld [vmem:[%s5502_s10 + $0x550] sm:$0xff] }
 0x19f   : > { %3753 = vmatprep.subr.bf16.mxu0 %v4632_v40  ;;  %3917 = vmatprep.subr.bf16.mxu1 %v4634_v41  ;;  %v473_v40 = vld [vmem:[%s5502_s10 + $0x570] sm:$0xff]  ;;  %v470_v41 = vld [vmem:[%s5502_s10 + $0x558] sm:$0xff] }
 0x1a0   : > { %v4696_v44 = vcombine.high %v469_v38, %v473_v40  ;;  %v4695_v51 = vcombine.low %v469_v38, %v473_v40  ;;  %v4697_v52 = vcombine.low %v470_v41, %v474_v42  ;;  %v530_v38 = vld [vmem:[%s5502_s10 + $0x738] sm:$0xff] }
 0x1a2   : > { %3754 = vmatpush1.bf16.msra.mxu0 %v4631_v46  ;;  %3918 = vmatpush1.bf16.msra.mxu1 %v4633_v47  ;;  %v4698_v46 = vcombine.high %v470_v41, %v474_v42  ;;  %v477_v47 = vld [vmem:[%s5502_s10 + $0x590] sm:$0xff] }
 0x1a3   : > { %3755 = vmatprep.subr.bf16.mxu0 %v4640_v48  ;;  %3919 = vmatprep.subr.bf16.mxu1 %v4642_v49  ;;  %v481_v48 = vld [vmem:[%s5502_s10 + $0x5b0] sm:$0xff]  ;;  %v478_v49 = vld [vmem:[%s5502_s10 + $0x598] sm:$0xff] }
 0x1a4   : > { %v4704_v54 = vcombine.high %v477_v47, %v481_v48  ;;  %v4703_v62 = vcombine.low %v477_v47, %v481_v48  ;;  %v4705_v63 = vcombine.low %v478_v49, %v482_v50  ;;  %v538_v47 = vld [vmem:[%s5502_s10 + $0x778] sm:$0xff] }
 0x1a6   : > { %3756 = vmatpush1.bf16.msra.mxu0 %v4639_v56  ;;  %3920 = vmatpush1.bf16.msra.mxu1 %v4641_v58  ;;  %v4706_v56 = vcombine.high %v478_v49, %v482_v50  ;;  %v485_v58 = vld [vmem:[%s5502_s10 + $0x5d0] sm:$0xff] }
 0x1a7   : > { %3757 = vmatprep.subr.bf16.mxu0 %v4648_v59  ;;  %3921 = vmatprep.subr.bf16.mxu1 %v4650_v60  ;;  %v489_v59 = vld [vmem:[%s5502_s10 + $0x5f0] sm:$0xff]  ;;  %v486_v60 = vld [vmem:[%s5502_s10 + $0x5d8] sm:$0xff] }
 0x1a8   : > { %v4712_v0 = vcombine.high %v485_v58, %v489_v59  ;;  %v4711_v5 = vcombine.low %v485_v58, %v489_v59  ;;  %v4713_v6 = vcombine.low %v486_v60, %v490_v61  ;;  %v546_v58 = vld [vmem:[%s5502_s10 + $0x7b8] sm:$0xff] }
 0x1aa   : > { %3758 = vmatpush1.bf16.msra.mxu0 %v4647_v39  ;;  %3922 = vmatpush1.bf16.msra.mxu1 %v4649_v1  ;;  %v4714_v39 = vcombine.high %v486_v60, %v490_v61  ;;  %v493_v1 = vld [vmem:[%s5502_s10 + $0x610] sm:$0xff] }
 0x1ab   : > { %3768 = vmatprep.subr.bf16.mxu0 %v4656_v2  ;;  %3932 = vmatprep.subr.bf16.mxu1 %v4658_v3  ;;  %v497_v2 = vld [vmem:[%s5502_s10 + $0x630] sm:$0xff]  ;;  %v494_v3 = vld [vmem:[%s5502_s10 + $0x618] sm:$0xff] }
 0x1ac   : > { %v4720_v7 = vcombine.high %v493_v1, %v497_v2  ;;  %v4721_v16 = vcombine.low %v494_v3, %v498_v4 }
 0x1ad   : > { %3760 = vmatmul.mubr.bf16.vlgmr.msra.gmra.mrb[4].mxu0 %v5601_v12  ;;  %3924 = vmatmul.mubr.bf16.vlgmr.msra.gmra.mrb[4].mxu1 %v5601_v12  ;;  %v4671_v12 = vcombine.low %v445_v13, %v449_v14  ;;  %v506_v13 = vld [vmem:[%s5502_s10 + $0x678] sm:$0xff]  ;;  %v4719_v14 = vcombine.low %v493_v1, %v497_v2 }
 0x1ae   : > { %3769 = vmatpush1.bf16.msra.mxu0 %v4655_v8  ;;  %3933 = vmatpush1.bf16.msra.mxu1 %v4657_v9  ;;  %v4722_v8 = vcombine.high %v494_v3, %v498_v4  ;;  %v501_v9 = vld [vmem:[%s5502_s10 + $0x650] sm:$0xff]  ;;  %v554_v1 = vld [vmem:[%s5502_s10 + $0x7f8] sm:$0xff] }
 0x1af   : > { %3770 = vmatprep.subr.bf16.mxu0 %v4664_v10  ;;  %3934 = vmatprep.subr.bf16.mxu1 %v4666_v11  ;;  %v505_v10 = vld [vmem:[%s5502_s10 + $0x670] sm:$0xff]  ;;  %v502_v11 = vld [vmem:[%s5502_s10 + $0x658] sm:$0xff] }
 0x1b0   : > { %3800 = vmatprep.mubr.bf16.mxu0 %v5614_v21  ;;  %3964 = vmatprep.mubr.bf16.mxu1 %v5614_v21  ;;  %v4681_v21 = vcombine.low %v454_v24, %v458_v26  ;;  %v4728_v17 = vcombine.high %v501_v9, %v505_v10  ;;  %v4727_v23 = vcombine.low %v501_v9, %v505_v10  ;;  %v562_v9 = vld [vmem:[%s5502_s10 + $0x838] sm:$0xff] }
 0x1b1   : > { %v4729_v24 = vcombine.low %v502_v11, %v506_v13 }
 0x1b2   : > { %3771 = vmatpush1.bf16.msra.mxu0 %v4663_v18  ;;  %3935 = vmatpush1.bf16.msra.mxu1 %v4665_v19  ;;  %v4730_v18 = vcombine.high %v502_v11, %v506_v13  ;;  %v509_v19 = vld [vmem:[%s5502_s10 + $0x690] sm:$0xff] }
 0x1b3   : > { %3772 = vmatprep.subr.bf16.mxu0 %v4672_v53  ;;  %3936 = vmatprep.subr.bf16.mxu1 %v4674_v57  ;;  %v513_v53 = vld [vmem:[%s5502_s10 + $0x6b0] sm:$0xff]  ;;  %v510_v57 = vld [vmem:[%s5502_s10 + $0x698] sm:$0xff] }
 0x1b4   : > { %v4736_v26 = vcombine.high %v509_v19, %v513_v53  ;;  %v4735_v30 = vcombine.low %v509_v19, %v513_v53  ;;  %v4737_v32 = vcombine.low %v510_v57, %v514_v20  ;;  %v570_v19 = vld [vmem:[%s5502_s10 + $0x878] sm:$0xff] }
 0x1b6   : > { %3773 = vmatpush1.bf16.msra.mxu0 %v4671_v12  ;;  %3937 = vmatpush1.bf16.msra.mxu1 %v4673_v27  ;;  %v4738_v12 = vcombine.high %v510_v57, %v514_v20  ;;  %v517_v27 = vld [vmem:[%s5502_s10 + $0x6d0] sm:$0xff] }
 0x1b7   : > { %3774 = vmatprep.subr.bf16.mxu0 %v4680_v28  ;;  %3938 = vmatprep.subr.bf16.mxu1 %v4682_v29  ;;  %v521_v28 = vld [vmem:[%s5502_s10 + $0x6f0] sm:$0xff]  ;;  %v518_v29 = vld [vmem:[%s5502_s10 + $0x6d8] sm:$0xff] }
 0x1b8   : > { %v4744_v33 = vcombine.high %v517_v27, %v521_v28  ;;  %v4743_v40 = vcombine.low %v517_v27, %v521_v28  ;;  %v4745_v41 = vcombine.low %v518_v29, %v522_v15  ;;  %v578_v27 = vld [vmem:[%s5502_s10 + $0x8b8] sm:$0xff] }
 0x1ba   : > { %3775 = vmatpush1.bf16.msra.mxu0 %v4679_v34  ;;  %3939 = vmatpush1.bf16.msra.mxu1 %v4681_v21  ;;  %v4746_v34 = vcombine.high %v518_v29, %v522_v15  ;;  %v525_v21 = vld [vmem:[%s5502_s10 + $0x710] sm:$0xff] }
 0x1bb   : > { %3776 = vmatprep.subr.bf16.mxu0 %v4688_v35  ;;  %3940 = vmatprep.subr.bf16.mxu1 %v4690_v37  ;;  %v529_v35 = vld [vmem:[%s5502_s10 + $0x730] sm:$0xff]  ;;  %v526_v37 = vld [vmem:[%s5502_s10 + $0x718] sm:$0xff] }
 0x1bc   : > { %v4752_v42 = vcombine.high %v525_v21, %v529_v35  ;;  %v4751_v48 = vcombine.low %v525_v21, %v529_v35  ;;  %v4753_v49 = vcombine.low %v526_v37, %v530_v38  ;;  %v586_v21 = vld [vmem:[%s5502_s10 + $0x8f8] sm:$0xff] }
 0x1be   : > { %3777 = vmatpush1.bf16.msra.mxu0 %v4687_v43  ;;  %3941 = vmatpush1.bf16.msra.mxu1 %v4689_v25  ;;  %v4754_v43 = vcombine.high %v526_v37, %v530_v38  ;;  %v533_v25 = vld [vmem:[%s5502_s10 + $0x750] sm:$0xff] }
 0x1bf   : > { %3778 = vmatprep.subr.bf16.mxu0 %v4696_v44  ;;  %3942 = vmatprep.subr.bf16.mxu1 %v4698_v46  ;;  %v537_v44 = vld [vmem:[%s5502_s10 + $0x770] sm:$0xff]  ;;  %v534_v46 = vld [vmem:[%s5502_s10 + $0x758] sm:$0xff] }
 0x1c0   : > { %v4760_v50 = vcombine.high %v533_v25, %v537_v44  ;;  %v4759_v59 = vcombine.low %v533_v25, %v537_v44  ;;  %v4761_v60 = vcombine.low %v534_v46, %v538_v47 }
 0x1c2   : > { %3779 = vmatpush1.bf16.msra.mxu0 %v4695_v51  ;;  %3943 = vmatpush1.bf16.msra.mxu1 %v4697_v52  ;;  %v4762_v51 = vcombine.high %v534_v46, %v538_v47  ;;  %v541_v52 = vld [vmem:[%s5502_s10 + $0x790] sm:$0xff] }
 0x1c3   : > { %3780 = vmatprep.subr.bf16.mxu0 %v4704_v54  ;;  %3944 = vmatprep.subr.bf16.mxu1 %v4706_v56  ;;  %v545_v54 = vld [vmem:[%s5502_s10 + $0x7b0] sm:$0xff]  ;;  %v542_v56 = vld [vmem:[%s5502_s10 + $0x798] sm:$0xff] }
 0x1c4   : > { %v4768_v61 = vcombine.high %v541_v52, %v545_v54  ;;  %v4767_v2 = vcombine.low %v541_v52, %v545_v54  ;;  %v4769_v3 = vcombine.low %v542_v56, %v546_v58  ;;  %v597_v47 = vld [vmem:[%s5502_s10 + $0x950] sm:$0xff] }
 0x1c6   : > { %3781 = vmatpush1.bf16.msra.mxu0 %v4703_v62  ;;  %3945 = vmatpush1.bf16.msra.mxu1 %v4705_v63  ;;  %v4770_v62 = vcombine.high %v542_v56, %v546_v58  ;;  %v549_v63 = vld [vmem:[%s5502_s10 + $0x7d0] sm:$0xff] }
 0x1c7   : > { %3782 = vmatprep.subr.bf16.mxu0 %v4712_v0  ;;  %3946 = vmatprep.subr.bf16.mxu1 %v4714_v39  ;;  %v553_v0 = vld [vmem:[%s5502_s10 + $0x7f0] sm:$0xff]  ;;  %v550_v39 = vld [vmem:[%s5502_s10 + $0x7d8] sm:$0xff] }
 0x1c8   : > { %v4776_v4 = vcombine.high %v549_v63, %v553_v0  ;;  %v4775_v10 = vcombine.low %v549_v63, %v553_v0  ;;  %v4777_v11 = vcombine.low %v550_v39, %v554_v1  ;;  %v605_v58 = vld [vmem:[%s5502_s10 + $0x990] sm:$0xff] }
 0x1ca   : > { %3783 = vmatpush1.bf16.msra.mxu0 %v4711_v5  ;;  %3947 = vmatpush1.bf16.msra.mxu1 %v4713_v6  ;;  %v4778_v5 = vcombine.high %v550_v39, %v554_v1  ;;  %v557_v6 = vld [vmem:[%s5502_s10 + $0x810] sm:$0xff] }
 0x1cb   : > { %3784 = vmatprep.subr.bf16.mxu0 %v4720_v7  ;;  %3948 = vmatprep.subr.bf16.mxu1 %v4722_v8  ;;  %v561_v7 = vld [vmem:[%s5502_s10 + $0x830] sm:$0xff]  ;;  %v558_v8 = vld [vmem:[%s5502_s10 + $0x818] sm:$0xff] }
 0x1cc   : > { %v4784_v13 = vcombine.high %v557_v6, %v561_v7  ;;  %v4783_v53 = vcombine.low %v557_v6, %v561_v7  ;;  %v4785_v57 = vcombine.low %v558_v8, %v562_v9  ;;  %v613_v1 = vld [vmem:[%s5502_s10 + $0x9d0] sm:$0xff] }
 0x1ce   : > { %3785 = vmatpush1.bf16.msra.mxu0 %v4719_v14  ;;  %3949 = vmatpush1.bf16.msra.mxu1 %v4721_v16  ;;  %v4786_v14 = vcombine.high %v558_v8, %v562_v9  ;;  %v565_v16 = vld [vmem:[%s5502_s10 + $0x850] sm:$0xff] }
 0x1cf   : > { %3786 = vmatprep.subr.bf16.mxu0 %v4728_v17  ;;  %3950 = vmatprep.subr.bf16.mxu1 %v4730_v18  ;;  %v569_v17 = vld [vmem:[%s5502_s10 + $0x870] sm:$0xff]  ;;  %v566_v18 = vld [vmem:[%s5502_s10 + $0x858] sm:$0xff] }
 0x1d0   : > { %v4792_v20 = vcombine.high %v565_v16, %v569_v17  ;;  %v4791_v28 = vcombine.low %v565_v16, %v569_v17  ;;  %v4793_v29 = vcombine.low %v566_v18, %v570_v19  ;;  %v621_v9 = vld [vmem:[%s5502_s10 + $0xa10] sm:$0xff] }
 0x1d2   : > { %3787 = vmatpush1.bf16.msra.mxu0 %v4727_v23  ;;  %3951 = vmatpush1.bf16.msra.mxu1 %v4729_v24  ;;  %v4794_v23 = vcombine.high %v566_v18, %v570_v19  ;;  %v573_v24 = vld [vmem:[%s5502_s10 + $0x890] sm:$0xff] }
 0x1d3   : > { %3788 = vmatprep.subr.bf16.mxu0 %v4736_v26  ;;  %3952 = vmatprep.subr.bf16.mxu1 %v4738_v12  ;;  %v577_v26 = vld [vmem:[%s5502_s10 + $0x8b0] sm:$0xff]  ;;  %v574_v12 = vld [vmem:[%s5502_s10 + $0x898] sm:$0xff] }
 0x1d4   : > { %v4800_v15 = vcombine.high %v573_v24, %v577_v26  ;;  %v4801_v35 = vcombine.low %v574_v12, %v578_v27  ;;  %v629_v19 = vld [vmem:[%s5502_s10 + $0xa50] sm:$0xff] }
 0x1d6   : > { %3789 = vmatpush1.bf16.msra.mxu0 %v4735_v30  ;;  %3953 = vmatpush1.bf16.msra.mxu1 %v4737_v32  ;;  %v4802_v30 = vcombine.high %v574_v12, %v578_v27  ;;  %v581_v32 = vld [vmem:[%s5502_s10 + $0x8d0] sm:$0xff] }
 0x1d7   : > { %3790 = vmatprep.subr.bf16.mxu0 %v4744_v33  ;;  %3954 = vmatprep.subr.bf16.mxu1 %v4746_v34  ;;  %v585_v33 = vld [vmem:[%s5502_s10 + $0x8f0] sm:$0xff]  ;;  %v582_v34 = vld [vmem:[%s5502_s10 + $0x8d8] sm:$0xff] }
 0x1d8   : > { %v4808_v37 = vcombine.high %v581_v32, %v585_v33  ;;  %v4810_v38 = vcombine.high %v582_v34, %v586_v21  ;;  %v4807_v25 = vcombine.low %v581_v32, %v585_v33  ;;  %v637_v27 = vld [vmem:[%s5502_s10 + $0xa90] sm:$0xff] }
 0x1da   : > { %3791 = vmatpush1.bf16.msra.mxu0 %v4743_v40  ;;  %3955 = vmatpush1.bf16.msra.mxu1 %v4745_v41  ;;  %v589_v40 = vld [vmem:[%s5502_s10 + $0x910] sm:$0xff] }
 0x1db   : > { %3792 = vmatprep.subr.bf16.mxu0 %v4752_v42  ;;  %3956 = vmatprep.subr.bf16.mxu1 %v4754_v43  ;;  %v593_v41 = vld [vmem:[%s5502_s10 + $0x930] sm:$0xff]  ;;  %v590_v42 = vld [vmem:[%s5502_s10 + $0x918] sm:$0xff] }
 0x1dc   : > { %v594_v43 = vld [vmem:[%s5502_s10 + $0x938] sm:$0xff]  ;;  %v4816_v44 = vcombine.high %v589_v40, %v593_v41 }
 0x1dd   : > { %v4818_v46 = vcombine.high %v590_v42, %v594_v43  ;;  %v4817_v52 = vcombine.low %v590_v42, %v594_v43  ;;  %v653_v43 = vld [vmem:[%s5502_s10 + $0xb10] sm:$0xff] }
 0x1de   : > { %3793 = vmatpush1.bf16.msra.mxu0 %v4751_v48  ;;  %3957 = vmatpush1.bf16.msra.mxu1 %v4753_v49  ;;  %v601_v48 = vld [vmem:[%s5502_s10 + $0x970] sm:$0xff]  ;;  %v598_v49 = vld [vmem:[%s5502_s10 + $0x958] sm:$0xff] }
 0x1df   : > { %3794 = vmatprep.subr.bf16.mxu0 %v4760_v50  ;;  %3958 = vmatprep.subr.bf16.mxu1 %v4762_v51  ;;  %v602_v50 = vld [vmem:[%s5502_s10 + $0x978] sm:$0xff]  ;;  %v4815_v51 = vcombine.low %v589_v40, %v593_v41  ;;  %v4824_v54 = vcombine.high %v597_v47, %v601_v48 }
 0x1e0   : > { %v4826_v56 = vcombine.high %v598_v49, %v602_v50  ;;  %v4825_v63 = vcombine.low %v598_v49, %v602_v50  ;;  %v661_v50 = vld [vmem:[%s5502_s10 + $0xb50] sm:$0xff] }
 0x1e2   : > { %3795 = vmatpush1.bf16.msra.mxu0 %v4759_v59  ;;  %3959 = vmatpush1.bf16.msra.mxu1 %v4761_v60  ;;  %v609_v59 = vld [vmem:[%s5502_s10 + $0x9b0] sm:$0xff]  ;;  %v606_v60 = vld [vmem:[%s5502_s10 + $0x998] sm:$0xff] }
 0x1e3   : > { %3796 = vmatprep.subr.bf16.mxu0 %v4768_v61  ;;  %3960 = vmatprep.subr.bf16.mxu1 %v4770_v62  ;;  %v610_v61 = vld [vmem:[%s5502_s10 + $0x9b8] sm:$0xff]  ;;  %v4823_v62 = vcombine.low %v597_v47, %v601_v48  ;;  %v4832_v0 = vcombine.high %v605_v58, %v609_v59 }
 0x1e4   : > { %v4834_v39 = vcombine.high %v606_v60, %v610_v61  ;;  %v4833_v6 = vcombine.low %v606_v60, %v610_v61  ;;  %v669_v61 = vld [vmem:[%s5502_s10 + $0xb90] sm:$0xff] }
 0x1e6   : > { %3797 = vmatpush1.bf16.msra.mxu0 %v4767_v2  ;;  %3961 = vmatpush1.bf16.msra.mxu1 %v4769_v3  ;;  %v617_v2 = vld [vmem:[%s5502_s10 + $0x9f0] sm:$0xff]  ;;  %v614_v3 = vld [vmem:[%s5502_s10 + $0x9d8] sm:$0xff] }
 0x1e7   : > { %3798 = vmatprep.subr.bf16.mxu0 %v4776_v4  ;;  %3962 = vmatprep.subr.bf16.mxu1 %v4778_v5  ;;  %v618_v4 = vld [vmem:[%s5502_s10 + $0x9f8] sm:$0xff]  ;;  %v4831_v5 = vcombine.low %v605_v58, %v609_v59  ;;  %v4840_v7 = vcombine.high %v613_v1, %v617_v2 }
 0x1e8   : > { %v4842_v8 = vcombine.high %v614_v3, %v618_v4  ;;  %v4841_v16 = vcombine.low %v614_v3, %v618_v4  ;;  %v677_v4 = vld [vmem:[%s5502_s10 + $0xbd0] sm:$0xff] }
 0x1ea   : > { %3799 = vmatpush1.bf16.msra.mxu0 %v4775_v10  ;;  %3963 = vmatpush1.bf16.msra.mxu1 %v4777_v11  ;;  %v625_v10 = vld [vmem:[%s5502_s10 + $0xa30] sm:$0xff]  ;;  %v622_v11 = vld [vmem:[%s5502_s10 + $0xa18] sm:$0xff] }
 0x1eb   : > { %3809 = vmatprep.subr.bf16.mxu0 %v4784_v13  ;;  %3973 = vmatprep.subr.bf16.mxu1 %v4786_v14  ;;  %v626_v13 = vld [vmem:[%s5502_s10 + $0xa38] sm:$0xff]  ;;  %v4839_v14 = vcombine.low %v613_v1, %v617_v2  ;;  %v4848_v17 = vcombine.high %v621_v9, %v625_v10 }
 0x1ec   : > { %v4850_v18 = vcombine.high %v622_v11, %v626_v13 }
 0x1ed   : > { %3801 = vmatmul.mubr.bf16.vlgmr.msra.gmra.mrb[4].mxu0 %v5682_v22  ;;  %3965 = vmatmul.mubr.bf16.vlgmr.msra.gmra.mrb[4].mxu1 %v5682_v22  ;;  %v4799_v22 = vcombine.low %v573_v24, %v577_v26  ;;  %v4849_v24 = vcombine.low %v622_v11, %v626_v13  ;;  %v685_v13 = vld [vmem:[%s5502_s10 + $0xc10] sm:$0xff] }
 0x1ee   : > { %3810 = vmatpush1.bf16.msra.mxu0 %v4783_v53  ;;  %3974 = vmatpush1.bf16.msra.mxu1 %v4785_v57  ;;  %v633_v53 = vld [vmem:[%s5502_s10 + $0xa70] sm:$0xff]  ;;  %v630_v57 = vld [vmem:[%s5502_s10 + $0xa58] sm:$0xff] }
 0x1ef   : > { %3811 = vmatprep.subr.bf16.mxu0 %v4792_v20  ;;  %3975 = vmatprep.subr.bf16.mxu1 %v4794_v23  ;;  %v634_v20 = vld [vmem:[%s5502_s10 + $0xa78] sm:$0xff]  ;;  %v4847_v23 = vcombine.low %v621_v9, %v625_v10  ;;  %v4856_v26 = vcombine.high %v629_v19, %v633_v53 }
 0x1f0   : > { %3841 = vmatprep.mubr.bf16.mxu0 %v5695_v31  ;;  %4005 = vmatprep.mubr.bf16.mxu1 %v5695_v31  ;;  %v4809_v31 = vcombine.low %v582_v34, %v586_v21  ;;  %v4858_v12 = vcombine.high %v630_v57, %v634_v20  ;;  %v4857_v32 = vcombine.low %v630_v57, %v634_v20  ;;  %v645_v21 = vld [vmem:[%s5502_s10 + $0xad0] sm:$0xff] }
 0x1f1   : > { %v693_v20 = vld [vmem:[%s5502_s10 + $0xc50] sm:$0xff] }
 0x1f2   : > { %3812 = vmatpush1.bf16.msra.mxu0 %v4791_v28  ;;  %3976 = vmatpush1.bf16.msra.mxu1 %v4793_v29  ;;  %v641_v28 = vld [vmem:[%s5502_s10 + $0xab0] sm:$0xff]  ;;  %v638_v29 = vld [vmem:[%s5502_s10 + $0xa98] sm:$0xff] }
 0x1f3   : > { %3813 = vmatprep.subr.bf16.mxu0 %v4800_v15  ;;  %3977 = vmatprep.subr.bf16.mxu1 %v4802_v30  ;;  %v642_v15 = vld [vmem:[%s5502_s10 + $0xab8] sm:$0xff]  ;;  %v4855_v30 = vcombine.low %v629_v19, %v633_v53  ;;  %v4864_v33 = vcombine.high %v637_v27, %v641_v28 }
 0x1f4   : > { %v4866_v34 = vcombine.high %v638_v29, %v642_v15  ;;  %v4865_v40 = vcombine.low %v638_v29, %v642_v15  ;;  %v701_v15 = vld [vmem:[%s5502_s10 + $0xc90] sm:$0xff] }
 0x1f6   : > { %3814 = vmatpush1.bf16.msra.mxu0 %v4799_v22  ;;  %3978 = vmatpush1.bf16.msra.mxu1 %v4801_v35  ;;  %v649_v22 = vld [vmem:[%s5502_s10 + $0xaf0] sm:$0xff]  ;;  %v646_v35 = vld [vmem:[%s5502_s10 + $0xad8] sm:$0xff] }
 0x1f7   : > { %3815 = vmatprep.subr.bf16.mxu0 %v4808_v37  ;;  %3979 = vmatprep.subr.bf16.mxu1 %v4810_v38  ;;  %v650_v37 = vld [vmem:[%s5502_s10 + $0xaf8] sm:$0xff]  ;;  %v4863_v38 = vcombine.low %v637_v27, %v641_v28  ;;  %v4872_v41 = vcombine.high %v645_v21, %v649_v22 }
 0x1f8   : > { %v4874_v42 = vcombine.high %v646_v35, %v650_v37  ;;  %v4873_v47 = vcombine.low %v646_v35, %v650_v37  ;;  %v709_v37 = vld [vmem:[%s5502_s10 + $0xcd0] sm:$0xff] }
 0x1fa   : > { %3816 = vmatpush1.bf16.msra.mxu0 %v4807_v25  ;;  %3980 = vmatpush1.bf16.msra.mxu1 %v4809_v31  ;;  %v657_v25 = vld [vmem:[%s5502_s10 + $0xb30] sm:$0xff]  ;;  %v654_v31 = vld [vmem:[%s5502_s10 + $0xb18] sm:$0xff] }
 0x1fb   : > { %3817 = vmatprep.subr.bf16.mxu0 %v4816_v44  ;;  %3981 = vmatprep.subr.bf16.mxu1 %v4818_v46  ;;  %v658_v44 = vld [vmem:[%s5502_s10 + $0xb38] sm:$0xff]  ;;  %v4871_v46 = vcombine.low %v645_v21, %v649_v22  ;;  %v4880_v48 = vcombine.high %v653_v43, %v657_v25 }
 0x1fc   : > { %v4882_v49 = vcombine.high %v654_v31, %v658_v44  ;;  %v4881_v58 = vcombine.low %v654_v31, %v658_v44  ;;  %v717_v31 = vld [vmem:[%s5502_s10 + $0xd10] sm:$0xff] }
 0x1fd   : > { %v721_v44 = vld [vmem:[%s5502_s10 + $0xd30] sm:$0xff] }
 0x1fe   : > { %3818 = vmatpush1.bf16.msra.mxu0 %v4815_v51  ;;  %3982 = vmatpush1.bf16.msra.mxu1 %v4817_v52  ;;  %v665_v51 = vld [vmem:[%s5502_s10 + $0xb70] sm:$0xff]  ;;  %v662_v52 = vld [vmem:[%s5502_s10 + $0xb58] sm:$0xff] }
 0x1ff   : > { %3819 = vmatprep.subr.bf16.mxu0 %v4824_v54  ;;  %3983 = vmatprep.subr.bf16.mxu1 %v4826_v56  ;;  %v666_v54 = vld [vmem:[%s5502_s10 + $0xb78] sm:$0xff]  ;;  %v4879_v56 = vcombine.low %v653_v43, %v657_v25  ;;  %v4888_v59 = vcombine.high %v661_v50, %v665_v51 }
 0x200   : > { %v4890_v60 = vcombine.high %v662_v52, %v666_v54  ;;  %v4889_v1 = vcombine.low %v662_v52, %v666_v54  ;;  %v729_v52 = vld [vmem:[%s5502_s10 + $0xd70] sm:$0xff]  ;;  %v6071_v54 = vld [vmem:[%s5502_s10 + $0xd58] sm:$0xff] }
 0x202   : > { %3820 = vmatpush1.bf16.msra.mxu0 %v4823_v62  ;;  %3984 = vmatpush1.bf16.msra.mxu1 %v4825_v63  ;;  %v673_v62 = vld [vmem:[%s5502_s10 + $0xbb0] sm:$0xff]  ;;  %v670_v63 = vld [vmem:[%s5502_s10 + $0xb98] sm:$0xff] }
 0x203   : > { %3821 = vmatprep.subr.bf16.mxu0 %v4832_v0  ;;  %3985 = vmatprep.subr.bf16.mxu1 %v4834_v39  ;;  %v674_v0 = vld [vmem:[%s5502_s10 + $0xbb8] sm:$0xff]  ;;  %v4887_v39 = vcombine.low %v661_v50, %v665_v51  ;;  %v4896_v2 = vcombine.high %v669_v61, %v673_v62  ;;  %v725_v51 = vld [vmem:[%s5502_s10 + $0xd50] sm:$0xff] }
 0x204   : > { %v4898_v3 = vcombine.high %v670_v63, %v674_v0  ;;  %v4897_v9 = vcombine.low %v670_v63, %v674_v0  ;;  %v6089_v63 = vld [vmem:[%s5502_s10 + $0xdd0] sm:$0xff] }
 0x206   : > { %3822 = vmatpush1.bf16.msra.mxu0 %v4831_v5  ;;  %3986 = vmatpush1.bf16.msra.mxu1 %v4833_v6  ;;  %v681_v5 = vld [vmem:[%s5502_s10 + $0xbf0] sm:$0xff]  ;;  %v678_v6 = vld [vmem:[%s5502_s10 + $0xbd8] sm:$0xff] }
 0x207   : > { %3823 = vmatprep.subr.bf16.mxu0 %v4840_v7  ;;  %3987 = vmatprep.subr.bf16.mxu1 %v4842_v8  ;;  %v682_v7 = vld [vmem:[%s5502_s10 + $0xbf8] sm:$0xff]  ;;  %v4895_v8 = vcombine.low %v669_v61, %v673_v62  ;;  %v4904_v10 = vcombine.high %v677_v4, %v681_v5 }
 0x208   : > { %v4906_v11 = vcombine.high %v678_v6, %v682_v7  ;;  %v4905_v19 = vcombine.low %v678_v6, %v682_v7  ;;  %v6083_v61 = vld [vmem:[%s5502_s10 + $0xd98] sm:$0xff]  ;;  %v6103_v6 = vld [vmem:[%s5502_s10 + $0xe10] sm:$0xff] }
 0x209   : > { %v6086_v62 = vld [vmem:[%s5502_s10 + $0xdb8] sm:$0xff]  ;;  %v6106_v7 = vld [vmem:[%s5502_s10 + $0xe30] sm:$0xff] }
 0x20a   : > { %3824 = vmatpush1.bf16.msra.mxu0 %v4839_v14  ;;  %3988 = vmatpush1.bf16.msra.mxu1 %v4841_v16  ;;  %v689_v14 = vld [vmem:[%s5502_s10 + $0xc30] sm:$0xff]  ;;  %v686_v16 = vld [vmem:[%s5502_s10 + $0xc18] sm:$0xff] }
 0x20b   : > { %3825 = vmatprep.subr.bf16.mxu0 %v4848_v17  ;;  %3989 = vmatprep.subr.bf16.mxu1 %v4850_v18  ;;  %v690_v17 = vld [vmem:[%s5502_s10 + $0xc38] sm:$0xff]  ;;  %v4903_v18 = vcombine.low %v677_v4, %v681_v5  ;;  %v4912_v53 = vcombine.high %v685_v13, %v689_v14  ;;  %v4951_v4 = vcombine.low %v725_v51, %v729_v52 }
 0x20c   : > { %v4914_v57 = vcombine.high %v686_v16, %v690_v17  ;;  %v4913_v27 = vcombine.low %v686_v16, %v690_v17  ;;  %v6123_v16 = vld [vmem:[%s5502_s10 + $0xe50] sm:$0xff] }
 0x20d   : > { %v6126_v17 = vld [vmem:[%s5502_s10 + $0xe70] sm:$0xff] }
 0x20e   : > { %3826 = vmatpush1.bf16.msra.mxu0 %v4847_v23  ;;  %3990 = vmatpush1.bf16.msra.mxu1 %v4849_v24  ;;  %v697_v23 = vld [vmem:[%s5502_s10 + $0xc70] sm:$0xff]  ;;  %v694_v24 = vld [vmem:[%s5502_s10 + $0xc58] sm:$0xff] }
 0x20f   : > { %3827 = vmatprep.subr.bf16.mxu0 %v4856_v26  ;;  %3991 = vmatprep.subr.bf16.mxu1 %v4858_v12  ;;  %v698_v26 = vld [vmem:[%s5502_s10 + $0xc78] sm:$0xff]  ;;  %v4911_v12 = vcombine.low %v685_v13, %v689_v14  ;;  %v4920_v28 = vcombine.high %v693_v20, %v697_v23  ;;  %v4961_v13 = vcombine.low %v6083_v61, %v6086_v62 }
 0x210   : > { %v4922_v29 = vcombine.high %v694_v24, %v698_v26  ;;  %v4921_v21 = vcombine.low %v694_v24, %v698_v26  ;;  %v6120_v14 = vld [vmem:[%s5502_s10 + $0xe38] sm:$0xff]  ;;  %v4975_v26 = vcombine.low %v6103_v6, %v6106_v7 }
 0x212   : > { %3828 = vmatpush1.bf16.msra.mxu0 %v4855_v30  ;;  %3992 = vmatpush1.bf16.msra.mxu1 %v4857_v32  ;;  %v705_v30 = vld [vmem:[%s5502_s10 + $0xcb0] sm:$0xff]  ;;  %v702_v32 = vld [vmem:[%s5502_s10 + $0xc98] sm:$0xff] }
 0x213   : > { %3829 = vmatprep.subr.bf16.mxu0 %v4864_v33  ;;  %3993 = vmatprep.subr.bf16.mxu1 %v4866_v34  ;;  %v706_v33 = vld [vmem:[%s5502_s10 + $0xcb8] sm:$0xff]  ;;  %v4919_v34 = vcombine.low %v693_v20, %v697_v23  ;;  %v4928_v22 = vcombine.high %v701_v15, %v705_v30 }
 0x214   : > { %v4930_v35 = vcombine.high %v702_v32, %v706_v33  ;;  %v6137_v20 = vld [vmem:[%s5502_s10 + $0xe58] sm:$0xff] }
 0x215   : > { %v6140_v23 = vld [vmem:[%s5502_s10 + $0xe78] sm:$0xff] }
 0x216   : > { %3830 = vmatpush1.bf16.msra.mxu0 %v4863_v38  ;;  %3994 = vmatpush1.bf16.msra.mxu1 %v4865_v40  ;;  %v713_v38 = vld [vmem:[%s5502_s10 + $0xcf0] sm:$0xff]  ;;  %v710_v40 = vld [vmem:[%s5502_s10 + $0xcd8] sm:$0xff] }
 0x217   : > { %3831 = vmatprep.subr.bf16.mxu0 %v4872_v41  ;;  %3995 = vmatprep.subr.bf16.mxu1 %v4874_v42  ;;  %v714_v41 = vld [vmem:[%s5502_s10 + $0xcf8] sm:$0xff]  ;;  %v4929_v42 = vcombine.low %v702_v32, %v706_v33  ;;  %v4936_v43 = vcombine.high %v709_v37, %v713_v38 }
 0x218   : > { %v4938_v25 = vcombine.high %v710_v40, %v714_v41 }
 0x21a   : > { %3832 = vmatpush1.bf16.msra.mxu0 %v4871_v46  ;;  %3996 = vmatpush1.bf16.msra.mxu1 %v4873_v47  ;;  %v718_v46 = vld [vmem:[%s5502_s10 + $0xd18] sm:$0xff] }
 0x21b   : > { %3833 = vmatprep.subr.bf16.mxu0 %v4880_v48  ;;  %3997 = vmatprep.subr.bf16.mxu1 %v4882_v49  ;;  %v722_v47 = vld [vmem:[%s5502_s10 + $0xd38] sm:$0xff]  ;;  %v4937_v48 = vcombine.low %v710_v40, %v714_v41  ;;  %v4944_v49 = vcombine.high %v717_v31, %v721_v44 }
 0x21c   : > { %v4946_v50 = vcombine.high %v718_v46, %v722_v47  ;;  %v4945_v0 = vcombine.low %v718_v46, %v722_v47 }
 0x21e   : > { %3834 = vmatpush1.bf16.msra.mxu0 %v4879_v56  ;;  %3998 = vmatpush1.bf16.msra.mxu1 %v4881_v58  ;;  %v6074_v56 = vld [vmem:[%s5502_s10 + $0xd78] sm:$0xff]  ;;  %v6077_v58 = vld [vmem:[%s5502_s10 + $0xd90] sm:$0xff] }
 0x21f   : > { %3835 = vmatprep.subr.bf16.mxu0 %v4888_v59  ;;  %3999 = vmatprep.subr.bf16.mxu1 %v4890_v60  ;;  %v6080_v59 = vld [vmem:[%s5502_s10 + $0xdb0] sm:$0xff]  ;;  %v4943_v60 = vcombine.low %v717_v31, %v721_v44  ;;  %v4954_v5 = vcombine.high %v6071_v54, %v6074_v56 }
 0x222   : > { %3836 = vmatpush1.bf16.msra.mxu0 %v4887_v39  ;;  %4000 = vmatpush1.bf16.msra.mxu1 %v4889_v1  ;;  %v4952_v39 = vcombine.high %v725_v51, %v729_v52  ;;  %v6092_v1 = vld [vmem:[%s5502_s10 + $0xdf0] sm:$0xff] }
 0x223   : > { %3837 = vmatprep.subr.bf16.mxu0 %v4896_v2  ;;  %4001 = vmatprep.subr.bf16.mxu1 %v4898_v3  ;;  %v6095_v2 = vld [vmem:[%s5502_s10 + $0xdd8] sm:$0xff] }
 0x224   : > { %v6098_v3 = vld [vmem:[%s5502_s10 + $0xdf8] sm:$0xff] }
 0x225   : > { %v4970_v24 = vcombine.high %v6095_v2, %v6098_v3 }
 0x226   : > { %3838 = vmatpush1.bf16.msra.mxu0 %v4895_v8  ;;  %4002 = vmatpush1.bf16.msra.mxu1 %v4897_v9  ;;  %v6109_v8 = vld [vmem:[%s5502_s10 + $0xe18] sm:$0xff]  ;;  %v4953_v9 = vcombine.low %v6071_v54, %v6074_v56 }
 0x227   : > { %3839 = vmatprep.subr.bf16.mxu0 %v4904_v10  ;;  %4003 = vmatprep.subr.bf16.mxu1 %v4906_v11  ;;  %v4959_v10 = vcombine.low %v6077_v58, %v6080_v59  ;;  %v4960_v11 = vcombine.high %v6077_v58, %v6080_v59 }
 0x22a   : > { %3840 = vmatpush1.bf16.msra.mxu0 %v4903_v18  ;;  %4004 = vmatpush1.bf16.msra.mxu1 %v4905_v19  ;;  %v4962_v18 = vcombine.high %v6083_v61, %v6086_v62  ;;  %v4967_v19 = vcombine.low %v6089_v63, %v6092_v1 }
 0x22b   : > { %3850 = vmatprep.subr.bf16.mxu0 %v4912_v53  ;;  %4014 = vmatprep.subr.bf16.mxu1 %v4914_v57  ;;  %v4968_v53 = vcombine.high %v6089_v63, %v6092_v1  ;;  %v4969_v57 = vcombine.low %v6095_v2, %v6098_v3  ;;  %v765_v63 = vld [vmem:[%s5502_s10 + $0xe90] sm:$0xff] }
 0x22c   : > { %v769_v1 = vld [vmem:[%s5502_s10 + $0xeb0] sm:$0xff] }
 0x22d   : > { %3842 = vmatmul.mubr.bf16.vlgmr.msra.gmra.mrb[4].mxu0 %v5763_v36  ;;  %4006 = vmatmul.mubr.bf16.vlgmr.msra.gmra.mrb[4].mxu1 %v5763_v36  ;;  %v4927_v36 = vcombine.low %v701_v15, %v705_v30  ;;  %v4983_v15 = vcombine.low %v6123_v16, %v6126_v17  ;;  %v4984_v30 = vcombine.high %v6123_v16, %v6126_v17 }
 0x22e   : > { %3851 = vmatpush1.bf16.msra.mxu0 %v4911_v12  ;;  %4015 = vmatpush1.bf16.msra.mxu1 %v4913_v27  ;;  %v4976_v12 = vcombine.high %v6103_v6, %v6106_v7  ;;  %v777_v6 = vld [vmem:[%s5502_s10 + $0xef0] sm:$0xff] }
 0x22f   : > { %3852 = vmatprep.subr.bf16.mxu0 %v4920_v28  ;;  %4016 = vmatprep.subr.bf16.mxu1 %v4922_v29  ;;  %v4977_v28 = vcombine.low %v6109_v8, %v6120_v14  ;;  %v4978_v29 = vcombine.high %v6109_v8, %v6120_v14 }
 0x230   : > { %3882 = vmatprep.mubr.bf16.mxu0 %v5776_v45  ;;  %4046 = vmatprep.mubr.bf16.mxu1 %v5776_v45  ;;  %v4935_v45 = vcombine.low %v709_v37, %v713_v38 }
 0x232   : > { %3853 = vmatpush1.bf16.msra.mxu0 %v4919_v34  ;;  %4017 = vmatpush1.bf16.msra.mxu1 %v4921_v21 }
 0x233   : > { %3854 = vmatprep.subr.bf16.mxu0 %v4928_v22  ;;  %4018 = vmatprep.subr.bf16.mxu1 %v4930_v35  ;;  %v4985_v22 = vcombine.low %v6137_v20, %v6140_v23  ;;  %v4986_v35 = vcombine.high %v6137_v20, %v6140_v23 }
 0x236   : > { %3855 = vmatpush1.bf16.msra.mxu0 %v4927_v36  ;;  %4019 = vmatpush1.bf16.msra.mxu1 %v4929_v42 }
 0x237   : > { %3856 = vmatprep.subr.bf16.mxu0 %v4936_v43  ;;  %4020 = vmatprep.subr.bf16.mxu1 %v4938_v25 }
 0x23a   : > { %3857 = vmatpush1.bf16.msra.mxu0 %v4935_v45  ;;  %4021 = vmatpush1.bf16.msra.mxu1 %v4937_v48 }
 0x23b   : > { %3858 = vmatprep.subr.bf16.mxu0 %v4944_v49  ;;  %4022 = vmatprep.subr.bf16.mxu1 %v4946_v50 }
 0x23e   : > { %3859 = vmatpush1.bf16.msra.mxu0 %v4943_v60  ;;  %4023 = vmatpush1.bf16.msra.mxu1 %v4945_v0 }
 0x23f   : > { %3860 = vmatprep.subr.bf16.mxu0 %v4952_v39  ;;  %4024 = vmatprep.subr.bf16.mxu1 %v4954_v5 }
 0x240   : > { %v6148_v27 = vpop.f32.mrb[0].mxu0  ;;  %v6161_v34 = vpop.f32.mrb[0].mxu1 }
 0x241   : > { %v4055_v32 = vrot.slane %v6148_v27, 4  ;;  %v4111_v33 = vmul.f32 %v6148_v27, %v6148_v27  ;;  %v6163_v21 = vpop.f32.mrb[1].mxu0  ;;  %v4067_v37 = vrot.slane %v6161_v34, 4  ;;  %v4113_v38 = vmul.f32 %v6161_v34, %v6161_v34  ;;  %v6175_v36 = vpop.f32.mrb[1].mxu1 }
 0x242   : > { %v4061_v40 = vrot.slane %v6163_v21, 4  ;;  %v4112_v41 = vmul.f32 %v6163_v21, %v6163_v21  ;;  %v3560_v42 = vpop.f32.mrb[2].mxu0  ;;  %3861 = vmatpush1.bf16.msra.mxu0 %v4951_v4  ;;  %v4073_v31 = vrot.slane %v6175_v36, 4  ;;  %v4114_v44 = vmul.f32 %v6175_v36, %v6175_v36  ;;  %v3724_v46 = vpop.f32.mrb[2].mxu1  ;;  %4025 = vmatpush1.bf16.msra.mxu1 %v4953_v9 }
 0x243   : > { %v4056_v43 = vadd.f32 %v4055_v32, %v6148_v27  ;;  %v4119_v25 = vrot.slane %v4111_v33, 4  ;;  %v3561_v47 = vpop.f32.mrb[3].mxu0  ;;  %3862 = vmatprep.subr.bf16.mxu0 %v4960_v11  ;;  %v4068_v45 = vadd.f32 %v4067_v37, %v6161_v34  ;;  %v4131_v48 = vrot.slane %v4113_v38, 4  ;;  %v3725_v51 = vpop.f32.mrb[3].mxu1  ;;  %4026 = vmatprep.subr.bf16.mxu1 %v4962_v18 }
 0x244   : > { %v4062_v49 = vadd.f32 %v4061_v40, %v6163_v21  ;;  %v4125_v50 = vrot.slane %v4112_v41, 4  ;;  %v4074_v56 = vadd.f32 %v4073_v31, %v6175_v36  ;;  %v4137_v58 = vrot.slane %v4114_v44, 4 }
 0x245   : > { %v4057_v52 = vrot.slane %v4056_v43, 2  ;;  %v4120_v54 = vadd.f32 %v4119_v25, %v4111_v33  ;;  %v4069_v59 = vrot.slane %v4068_v45, 2  ;;  %v4132_v60 = vadd.f32 %v4131_v48, %v4113_v38  ;;  %v770_v48 = vld [vmem:[%s5502_s10 + $0xeb8] sm:$0xff] }
 0x246   : > { %v4063_v61 = vrot.slane %v4062_v49, 2  ;;  %v4126_v62 = vadd.f32 %v4125_v50, %v4112_v41  ;;  %3863 = vmatpush1.bf16.msra.mxu0 %v4959_v10  ;;  %v4075_v4 = vrot.slane %v4074_v56, 2  ;;  %v4138_v5 = vadd.f32 %v4137_v58, %v4114_v44  ;;  %4027 = vmatpush1.bf16.msra.mxu1 %v4961_v13  ;;  %v773_v58 = vld [vmem:[%s5502_s10 + $0xed0] sm:$0xff] }
 0x247   : > { %v4058_v0 = vadd.f32 %v4057_v52, %v4056_v43  ;;  %v4121_v39 = vrot.slane %v4120_v54, 2  ;;  %3864 = vmatprep.subr.bf16.mxu0 %v4968_v53  ;;  %v4070_v9 = vadd.f32 %v4069_v59, %v4068_v45  ;;  %v4133_v11 = vrot.slane %v4132_v60, 2  ;;  %4028 = vmatprep.subr.bf16.mxu1 %v4970_v24 }
 0x248   : > { %v4064_v32 = vadd.f32 %v4063_v61, %v4062_v49  ;;  %v4127_v18 = vrot.slane %v4126_v62, 2  ;;  %v4076_v40 = vadd.f32 %v4075_v4, %v4074_v56  ;;  %v4139_v42 = vrot.slane %v4138_v5, 2  ;;  %v774_v61 = vld [vmem:[%s5502_s10 + $0xed8] sm:$0xff] }
 0x249   : > { %v4059_v33 = vrot.slane %v4058_v0, 1  ;;  %v4122_v37 = vadd.f32 %v4121_v39, %v4120_v54  ;;  %v4071_v25 = vrot.slane %v4070_v9, 1  ;;  %v4134_v38 = vadd.f32 %v4133_v11, %v4132_v60 }
 0x24a   : > { %v4065_v10 = vrot.slane %v4064_v32, 1  ;;  %v4128_v41 = vadd.f32 %v4127_v18, %v4126_v62  ;;  %3865 = vmatpush1.bf16.msra.mxu0 %v4967_v19  ;;  %v4077_v43 = vrot.slane %v4076_v40, 1  ;;  %v4140_v24 = vadd.f32 %v4139_v42, %v4138_v5  ;;  %4029 = vmatpush1.bf16.msra.mxu1 %v4969_v57  ;;  %v766_v57 = vld [vmem:[%s5502_s10 + $0xe98] sm:$0xff]  ;;  %v781_v18 = vld [vmem:[%s5502_s10 + $0xf10] sm:$0xff] }
 0x24b   : > { %v4060_v13 = vadd.f32 %v4059_v33, %v4058_v0  ;;  %v4123_v53 = vrot.slane %v4122_v37, 1  ;;  %3866 = vmatprep.subr.bf16.mxu0 %v4976_v12  ;;  %v4072_v31 = vadd.f32 %v4071_v25, %v4070_v9  ;;  %v4135_v44 = vrot.slane %v4134_v38, 1  ;;  %4030 = vmatprep.subr.bf16.mxu1 %v4978_v29  ;;  %v778_v62 = vld [vmem:[%s5502_s10 + $0xef8] sm:$0xff]  ;;  %v785_v33 = vld [vmem:[%s5502_s10 + $0xf30] sm:$0xff] }
 0x24c   : > { %v4066_v46 = vadd.f32 %v4065_v10, %v4064_v32  ;;  %v4129_v47 = vrot.slane %v4128_v41, 1  ;;  %v4078_v2 = vadd.f32 %v4077_v43, %v4076_v40  ;;  %v4141_v3 = vrot.slane %v4140_v24, 1  ;;  %v782_v42 = vld [vmem:[%s5502_s10 + $0xf18] sm:$0xff]  ;;  %v789_v43 = vld [vmem:[%s5502_s10 + $0xf50] sm:$0xff] }
 0x24d   : > { %v6198_v19 = vmul.f32 0.5, %v4060_v13  ;;  %v4124_v45 = vadd.f32 %v4123_v53, %v4122_v37  ;;  %v6202_v12 = vmul.f32 0.5, %v4072_v31  ;;  %v4136_v49 = vadd.f32 %v4135_v44, %v4134_v38  ;;  %v786_v25 = vld [vmem:[%s5502_s10 + $0xf38] sm:$0xff] }
 0x24e   : > { %v6204_v50 = vmul.f32 0.5, %v4066_v46  ;;  %v4130_v51 = vadd.f32 %v4129_v47, %v4128_v41  ;;  %3867 = vmatpush1.bf16.msra.mxu0 %v4975_v26  ;;  %v6211_v54 = vmul.f32 0.5, %v4078_v2  ;;  %4031 = vmatpush1.bf16.msra.mxu1 %v4977_v28  ;;  %v4992_v56 = vcombine.high %v765_v63, %v769_v1  ;;  %v790_v44 = vld [vmem:[%s5502_s10 + $0xf58] sm:$0xff]  ;;  %v6250_v2 = vld [vmem:[%s5512_s9] sm:$0xff] }
 0x24f   : > { %v4167_v29 = vmul.f32 0.5, %v4124_v45  ;;  %v4175_v52 = vmul.f32 %v6198_v19, %v6198_v19  ;;  %3868 = vmatprep.subr.bf16.mxu0 %v4984_v30  ;;  %v4169_v7 = vmul.f32 0.5, %v4136_v49  ;;  %v4177_v26 = vmul.f32 %v6202_v12, %v6202_v12  ;;  %4032 = vmatprep.subr.bf16.mxu1 %v4986_v35  ;;  %v794_v46 = vld [vmem:[%s5502_s10 + $0xf78] sm:$0xff]  ;;  %v797_v49 = vld [vmem:[%s5502_s10 + $0xf90] sm:$0xff] }
 0x250   : > { %v4168_v59 = vmul.f32 0.5, %v4130_v51  ;;  %v4994_v60 = vcombine.high %v766_v57, %v770_v48  ;;  %v4176_v14 = vmul.f32 %v6204_v50, %v6204_v50  ;;  %v4142_v28 = vadd.f32 %v4141_v3, %v4140_v24  ;;  %v793_v24 = vld [vmem:[%s5502_s10 + $0xf70] sm:$0xff] }
 0x251   : > { %v4183_v8 = vsub.f32 %v4167_v29, %v4175_v52  ;;  %v4991_v30 = vcombine.low %v765_v63, %v769_v1  ;;  %v4185_v0 = vsub.f32 %v4169_v7, %v4177_v26  ;;  %v4178_v39 = vmul.f32 %v6211_v54, %v6211_v54  ;;  %v801_v51 = vld [vmem:[%s5502_s10 + $0xfb0] sm:$0xff]  ;;  %v798_v29 = vld [vmem:[%s5502_s10 + $0xf98] sm:$0xff] }
 0x252   : > { %3869 = vmatpush1.bf16.msra.mxu0 %v4983_v15  ;;  %v4993_v35 = vcombine.low %v766_v57, %v770_v48  ;;  %v5000_v4 = vcombine.high %v773_v58, %v777_v6  ;;  %v4233_v9 = vlaneseq  ;;  %v4184_v11 = vsub.f32 %v4168_v59, %v4176_v14  ;;  %4033 = vmatpush1.bf16.msra.mxu1 %v4985_v22  ;;  %v802_v52 = vld [vmem:[%s5502_s10 + $0xfb8] sm:$0xff] }
 0x253   : > { %v4191_v5 = vmax.f32 %v4183_v8, 0.0  ;;  %v4170_v32 = vmul.f32 0.5, %v4142_v28  ;;  %3870 = vmatprep.subr.bf16.mxu0 %v4992_v56  ;;  %v4193_v37 = vmax.f32 %v4185_v0, 0.0  ;;  %4034 = vmatprep.subr.bf16.mxu1 %v4994_v60  ;;  %v5002_v40 = vcombine.high %v774_v61, %v778_v62  ;;  %v6260_v56 = vld [vmem:[%s251_s8] sm:$0xff] }
 0x254   : > { %v4192_v17 = vmax.f32 %v4184_v11, 0.0  ;;  %v4999_v10 = vcombine.low %v773_v58, %v777_v6  ;;  %v5001_v41 = vcombine.low %v774_v61, %v778_v62  ;;  %v5008_v20 = vcombine.high %v781_v18, %v785_v33  ;;  %v809_v61 = vld [vmem:[%s5502_s10 + $0xff0] sm:$0xff] }
 0x255   : > { %v4207_v16 = vadd.f32 1e-05, %v4191_v5  ;;  %v4186_v15 = vsub.f32 %v4170_v32, %v4178_v39  ;;  %v4209_v38 = vadd.f32 1e-05, %v4193_v37  ;;  %v6242_v23 = vshrl.u32 %v4233_v9, 7 }
 0x256   : > { %3871 = vmatpush1.bf16.msra.mxu0 %v4991_v30  ;;  %v4208_v22 = vadd.f32 1e-05, %v4192_v17  ;;  %4035 = vmatpush1.bf16.msra.mxu1 %v4993_v35  ;;  %v5010_v53 = vcombine.high %v782_v42, %v786_v25  ;;  %v5007_v47 = vcombine.low %v781_v18, %v785_v33  ;;  %v5009_v1 = vcombine.low %v782_v42, %v786_v25  ;;  %v805_v30 = vld [vmem:[%s5502_s10 + $0xfd0] sm:$0xff] }
 0x257   : > { %5156 = vrsqrt.f32 %v4207_v16  ;;  %v4194_v13 = vmax.f32 %v4186_v15, 0.0  ;;  %3872 = vmatprep.subr.bf16.mxu0 %v5000_v4  ;;  %4036 = vmatprep.subr.bf16.mxu1 %v5002_v40  ;;  %v4235_v63 = vsub.s32 0, %v6242_v23  ;;  %v5016_v45 = vcombine.high %v789_v43, %v793_v24  ;;  %v810_v4 = vld [vmem:[%s5502_s10 + $0xff8] sm:$0xff] }
 0x258   : > { %5158 = vrsqrt.f32 %v4209_v38  ;;  %v4243_v3 = vsub.s32 2, %v6242_v23  ;;  %v4239_v57 = vsub.s32 1, %v6242_v23  ;;  %v5018_v48 = vcombine.high %v790_v44, %v794_v46 }
 0x259   : > { %5160 = vrsqrt.f32 %v4208_v22  ;;  %v4210_v31 = vadd.f32 1e-05, %v4194_v13  ;;  %v4247_v58 = vsub.s32 3, %v6242_v23  ;;  %v5015_v6 = vcombine.low %v789_v43, %v793_v24 }
 0x25a   : > { %3873 = vmatpush1.bf16.msra.mxu0 %v4999_v10  ;;  %4037 = vmatpush1.bf16.msra.mxu1 %v5001_v41  ;;  %v4236_v7 = vrot.slane %v6250_v2, %v4235_v63  ;;  %v5017_v26 = vcombine.low %v790_v44, %v794_v46  ;;  %v5024_v59 = vcombine.high %v797_v49, %v801_v51  ;;  %vm4341_vm0 = vcmp.lt.s32.totalorder %v6242_v23, 2 }
 0x25b   : > { %5162 = vrsqrt.f32 %v4210_v31  ;;  %3874 = vmatprep.subr.bf16.mxu0 %v5008_v20  ;;  %4038 = vmatprep.subr.bf16.mxu1 %v5010_v53  ;;  %v4199_v60 = vsub.f32 %v6148_v27, %v6198_v19  ;;  %v4244_v8 = vrot.slane %v6250_v2, %v4243_v3  ;;  %v4240_v14 = vrot.slane %v6250_v2, %v4239_v57  ;;  %v806_v19 = vld [vmem:[%s5502_s10 + $0xfd8] sm:$0xff] }
 0x25c   : > { %v5026_v28 = vcombine.high %v798_v29, %v802_v52  ;;  %v4286_v0 = vrot.slane %v6260_v56, %v4235_v63  ;;  %v4201_v39 = vsub.f32 %v6161_v34, %v6202_v12  ;;  %v4294_v35 = vrot.slane %v6260_v56, %v4243_v3 }
 0x25d   : > { %v4290_v27 = vrot.slane %v6260_v56, %v4239_v57  ;;  %v4200_v11 = vsub.f32 %v6163_v21, %v6204_v50  ;;  %v4248_v32 = vrot.slane %v6250_v2, %v4247_v58  ;;  %v5023_v34 = vcombine.low %v797_v49, %v801_v51 }
 0x25e   : > { %3875 = vmatpush1.bf16.msra.mxu0 %v5007_v47  ;;  %4039 = vmatpush1.bf16.msra.mxu1 %v5009_v1  ;;  %v5025_v33 = vcombine.low %v798_v29, %v802_v52  ;;  %v5032_v37 = vcombine.high %v805_v30, %v809_v61  ;;  %v4202_v17 = vsub.f32 %v6175_v36, %v6211_v54 }
 0x25f   : > { %3876 = vmatprep.subr.bf16.mxu0 %v5016_v45  ;;  %4040 = vmatprep.subr.bf16.mxu1 %v5018_v48  ;;  %v5034_v15 = vcombine.high %v806_v19, %v810_v4  ;;  %v4298_v42 = vrot.slane %v6260_v56, %v4247_v58  ;;  %v5031_v41 = vcombine.low %v805_v30, %v809_v61 }
 0x260   : > { %v5033_v36 = vcombine.low %v806_v19, %v810_v4 }
 0x261   : > { %v5157_v62 = vpop.eup %5156 }
 0x262   : > { %v5159_v5 = vpop.eup %5158  ;;  %v4223_v9 = vmul.f32 %v5157_v62, %v4199_v60  ;;  %3877 = vmatpush1.bf16.msra.mxu0 %v5015_v6  ;;  %4041 = vmatpush1.bf16.msra.mxu1 %v5017_v26 }
 0x263   : > { %v5161_v12 = vpop.eup %5160  ;;  %v4225_v18 = vmul.f32 %v5159_v5, %v4201_v39  ;;  %3878 = vmatprep.subr.bf16.mxu0 %v5024_v59  ;;  %4042 = vmatprep.subr.bf16.mxu1 %v5026_v28 }
 0x264   : > { %v4273_v40 = vmul.f32 %v4236_v7, %v4223_v9  ;;  %v4224_v16 = vmul.f32 %v5161_v12, %v4200_v11 }
 0x265   : > { %v5163_v21 = vpop.eup %5162  ;;  %v4275_v50 = vmul.f32 %v4244_v8, %v4225_v18 }
 0x266   : > { %v4323_v25 = vadd.f32 %v4286_v0, %v4273_v40  ;;  %v4274_v38 = vmul.f32 %v4240_v14, %v4224_v16  ;;  %v4226_v10 = vmul.f32 %v5163_v21, %v4202_v17  ;;  %3879 = vmatpush1.bf16.msra.mxu0 %v5023_v34  ;;  %4043 = vmatpush1.bf16.msra.mxu1 %v5025_v33 }
 0x267   : > { %v4325_v20 = vadd.f32 %v4294_v35, %v4275_v50  ;;  %3880 = vmatprep.subr.bf16.mxu0 %v5032_v37  ;;  %4044 = vmatprep.subr.bf16.mxu1 %v5034_v15 }
 0x268   : > { %v4331_v54 = vmax.f32 %v4323_v25, 0.0  ;;  %v4324_v22 = vadd.f32 %v4290_v27, %v4274_v38  ;;  %v4276_v13 = vmul.f32 %v4248_v32, %v4226_v10 }
 0x269   : > { %v4333_v53 = vmax.f32 %v4325_v20, 0.0 }
 0x26a   : > { %v4342_v43 = vsel %vm4341_vm0, %v4331_v54, 0.0  ;;  %v4332_v24 = vmax.f32 %v4324_v22, 0.0  ;;  %v4326_v31 = vadd.f32 %v4298_v42, %v4276_v13  ;;  %3881 = vmatpush1.bf16.msra.mxu0 %v5031_v41  ;;  %4045 = vmatpush1.bf16.msra.mxu1 %v5033_v36 }
 0x26b   : > { %v4344_v44 = vsel %vm4341_vm0, %v4333_v53, 0.0 }
 0x26c   : > { %v4343_v46 = vsel %vm4341_vm0, %v4332_v24, 0.0  ;;  %v4334_v47 = vmax.f32 %v4326_v31, 0.0 }
 0x26d   : > { %v5044_v63 = vpack.c.bf16 %v4343_v46, %v4342_v43  ;;  %3883 = vmatmul.mubr.bf16.vlgmr.msra.gmra.mrb[4].mxu0 %v5844_v55  ;;  %4047 = vmatmul.mubr.bf16.vlgmr.msra.gmra.mrb[4].mxu1 %v5844_v55 }
 0x26e   : > { %v4345_v1 = vsel %vm4341_vm0, %v4334_v47, 0.0 }
 0x26f   : > { %4382 = vst [vmem:[%s6302_s14] sm:$0xff] %v5044_v63  ;;  %v5045_v45 = vpack.c.bf16 %v4345_v1, %v4344_v44 }
 0x271   : > { %4383 = vst [vmem:[%s6302_s14 + $0x8] sm:$0xff] %v5045_v45 }
 0x340   : > { %v6312_v3 = vpop.f32.mrb[4].mxu0  ;;  %v6317_v49 = vpop.f32.mrb[4].mxu1 }
 0x341   : > { %v4079_v57 = vrot.slane %v6312_v3, 4  ;;  %v4115_v48 = vmul.f32 %v6312_v3, %v6312_v3  ;;  %v6319_v51 = vpop.f32.mrb[5].mxu0  ;;  %v4091_v29 = vrot.slane %v6317_v49, 4  ;;  %v4117_v52 = vmul.f32 %v6317_v49, %v6317_v49  ;;  %v6327_v6 = vpop.f32.mrb[5].mxu1 }
 0x342   : > { %v4085_v55 = vrot.slane %v6319_v51, 4  ;;  %v4116_v58 = vmul.f32 %v6319_v51, %v6319_v51  ;;  %v3888_v7 = vpop.f32.mrb[6].mxu0  ;;  %v4097_v60 = vrot.slane %v6327_v6, 4  ;;  %v4118_v8 = vmul.f32 %v6327_v6, %v6327_v6  ;;  %v4052_v14 = vpop.f32.mrb[6].mxu1 }
 0x343   : > { %v4080_v26 = vadd.f32 %v4079_v57, %v6312_v3  ;;  %v4143_v59 = vrot.slane %v4115_v48, 4  ;;  %v3889_v28 = vpop.f32.mrb[7].mxu0  ;;  %v4092_v30 = vadd.f32 %v4091_v29, %v6317_v49  ;;  %v4155_v61 = vrot.slane %v4117_v52, 4  ;;  %v4053_v39 = vpop.f32.mrb[7].mxu1 }
 0x344   : > { %v4086_v62 = vadd.f32 %v4085_v55, %v6319_v51  ;;  %v4149_v0 = vrot.slane %v4116_v58, 4  ;;  %v4098_v19 = vadd.f32 %v4097_v60, %v6327_v6  ;;  %v4161_v4 = vrot.slane %v4118_v8, 4 }
 0x345   : > { %v4081_v35 = vrot.slane %v4080_v26, 2  ;;  %v4144_v27 = vadd.f32 %v4143_v59, %v4115_v48  ;;  %v4093_v5 = vrot.slane %v4092_v30, 2  ;;  %v4156_v9 = vadd.f32 %v4155_v61, %v4117_v52 }
 0x346   : > { %v4087_v11 = vrot.slane %v4086_v62, 2  ;;  %v4150_v32 = vadd.f32 %v4149_v0, %v4116_v58  ;;  %v4099_v18 = vrot.slane %v4098_v19, 2  ;;  %v4162_v33 = vadd.f32 %v4161_v4, %v4118_v8 }
 0x347   : > { %v4082_v34 = vadd.f32 %v4081_v35, %v4080_v26  ;;  %v4145_v12 = vrot.slane %v4144_v27, 2  ;;  %v4094_v37 = vadd.f32 %v4093_v5, %v4092_v30  ;;  %v4157_v40 = vrot.slane %v4156_v9, 2 }
 0x348   : > { %v4088_v16 = vadd.f32 %v4087_v11, %v4086_v62  ;;  %v4151_v17 = vrot.slane %v4150_v32, 2  ;;  %v4100_v50 = vadd.f32 %v4099_v18, %v4098_v19  ;;  %v4163_v42 = vrot.slane %v4162_v33, 2 }
 0x349   : > { %v4083_v15 = vrot.slane %v4082_v34, 1  ;;  %v4146_v21 = vadd.f32 %v4145_v12, %v4144_v27  ;;  %v4095_v25 = vrot.slane %v4094_v37, 1  ;;  %v4158_v38 = vadd.f32 %v4157_v40, %v4156_v9 }
 0x34a   : > { %v4089_v10 = vrot.slane %v4088_v16, 1  ;;  %v4152_v41 = vadd.f32 %v4151_v17, %v4150_v32  ;;  %v4101_v54 = vrot.slane %v4100_v50, 1  ;;  %v4164_v22 = vadd.f32 %v4163_v42, %v4162_v33 }
 0x34b   : > { %v4084_v20 = vadd.f32 %v4083_v15, %v4082_v34  ;;  %v4147_v36 = vrot.slane %v4146_v21, 1  ;;  %v4096_v13 = vadd.f32 %v4095_v25, %v4094_v37  ;;  %v4159_v53 = vrot.slane %v4158_v38, 1 }
 0x34c   : > { %v4090_v43 = vadd.f32 %v4089_v10, %v4088_v16  ;;  %v4153_v24 = vrot.slane %v4152_v41, 1  ;;  %v4102_v46 = vadd.f32 %v4101_v54, %v4100_v50  ;;  %v4165_v47 = vrot.slane %v4164_v22, 1 }
 0x34d   : > { %v4107_v31 = vmul.f32 0.5, %v4084_v20  ;;  %v4148_v44 = vadd.f32 %v4147_v36, %v4146_v21  ;;  %v4109_v63 = vmul.f32 0.5, %v4096_v13  ;;  %v4160_v1 = vadd.f32 %v4159_v53, %v4158_v38 }
 0x34e   : > { %v4108_v45 = vmul.f32 0.5, %v4090_v43  ;;  %v4154_v57 = vadd.f32 %v4153_v24, %v4152_v41  ;;  %v4110_v52 = vmul.f32 0.5, %v4102_v46  ;;  %v4166_v60 = vadd.f32 %v4165_v47, %v4164_v22 }
 0x34f   : > { %v4171_v48 = vmul.f32 0.5, %v4148_v44  ;;  %v4179_v29 = vmul.f32 %v4107_v31, %v4107_v31  ;;  %v4173_v55 = vmul.f32 0.5, %v4160_v1  ;;  %v4181_v58 = vmul.f32 %v4109_v63, %v4109_v63 }
 0x350   : > { %v4172_v7 = vmul.f32 0.5, %v4154_v57  ;;  %v4180_v59 = vmul.f32 %v4108_v45, %v4108_v45  ;;  %v4182_v14 = vmul.f32 %v4110_v52, %v4110_v52  ;;  %v4174_v61 = vmul.f32 0.5, %v4166_v60 }
 0x351   : > { %v4187_v26 = vsub.f32 %v4171_v48, %v4179_v29  ;;  %v4189_v8 = vsub.f32 %v4173_v55, %v4181_v58  ;;  %v4251_v9 = vsub.s32 4, %v6242_v23  ;;  %v4259_v11 = vsub.s32 6, %v6242_v23 }
 0x352   : > { %v4188_v30 = vsub.f32 %v4172_v7, %v4180_v59  ;;  %v4190_v35 = vsub.f32 %v4174_v61, %v4182_v14  ;;  %v4255_v32 = vsub.s32 5, %v6242_v23  ;;  %v4263_v34 = vsub.s32 7, %v6242_v23 }
 0x353   : > { %v4195_v28 = vmax.f32 %v4187_v26, 0.0  ;;  %v4197_v62 = vmax.f32 %v4189_v8, 0.0  ;;  %v4203_v12 = vsub.f32 %v6312_v3, %v4107_v31  ;;  %v4252_v18 = vrot.slane %v6250_v2, %v4251_v9 }
 0x354   : > { %v4196_v39 = vmax.f32 %v4188_v30, 0.0  ;;  %v4198_v4 = vmax.f32 %v4190_v35, 0.0  ;;  %v4205_v37 = vsub.f32 %v6317_v49, %v4109_v63  ;;  %v4260_v40 = vrot.slane %v6250_v2, %v4259_v11 }
 0x355   : > { %v4211_v0 = vadd.f32 1e-05, %v4195_v28  ;;  %v4213_v27 = vadd.f32 1e-05, %v4197_v62  ;;  %v4302_v15 = vrot.slane %v6260_v56, %v4251_v9  ;;  %v4204_v21 = vsub.f32 %v6319_v51, %v4108_v45 }
 0x356   : > { %v4212_v19 = vadd.f32 1e-05, %v4196_v39  ;;  %v4214_v5 = vadd.f32 1e-05, %v4198_v4  ;;  %v4256_v50 = vrot.slane %v6250_v2, %v4255_v32  ;;  %v4310_v38 = vrot.slane %v6260_v56, %v4259_v11 }
 0x357   : > { %5164 = vrsqrt.f32 %v4211_v0  ;;  %v4264_v3 = vrot.slane %v6250_v2, %v4263_v34  ;;  %v4306_v49 = vrot.slane %v6260_v56, %v4255_v32  ;;  %v4206_v20 = vsub.f32 %v6327_v6, %v4110_v52 }
 0x358   : > { %5166 = vrsqrt.f32 %v4213_v27  ;;  %v4314_v53 = vrot.slane %v6260_v56, %v4263_v34 }
 0x359   : > { %5168 = vrsqrt.f32 %v4212_v19 }
 0x35a   : > { %5170 = vrsqrt.f32 %v4214_v5 }
 0x361   : > { %v5165_v33 = vpop.eup %5164 }
 0x362   : > { %v5167_v16 = vpop.eup %5166  ;;  %v4227_v17 = vmul.f32 %v5165_v33, %v4203_v12 }
 0x363   : > { %v5169_v42 = vpop.eup %5168  ;;  %v4229_v25 = vmul.f32 %v5167_v16, %v4205_v37 }
 0x364   : > { %v4277_v10 = vmul.f32 %v4252_v18, %v4227_v17  ;;  %v4228_v41 = vmul.f32 %v5169_v42, %v4204_v21  ;;  %v5171_v36 = vpop.eup %5170 }
 0x365   : > { %v4279_v54 = vmul.f32 %v4260_v40, %v4229_v25  ;;  %v4230_v51 = vmul.f32 %v5171_v36, %v4206_v20 }
 0x366   : > { %v4327_v22 = vadd.f32 %v4302_v15, %v4277_v10  ;;  %v4278_v13 = vmul.f32 %v4256_v50, %v4228_v41 }
 0x367   : > { %v4329_v43 = vadd.f32 %v4310_v38, %v4279_v54  ;;  %v4280_v44 = vmul.f32 %v4264_v3, %v4230_v51 }
 0x368   : > { %v4335_v24 = vmax.f32 %v4327_v22, 0.0  ;;  %v4328_v31 = vadd.f32 %v4306_v49, %v4278_v13 }
 0x369   : > { %v4337_v2 = vmax.f32 %v4329_v43, 0.0  ;;  %v4330_v63 = vadd.f32 %v4314_v53, %v4280_v44 }
 0x36a   : > { %v4346_v46 = vsel %vm4341_vm0, %v4335_v24, 0.0  ;;  %v4336_v47 = vmax.f32 %v4328_v31, 0.0 }
 0x36b   : > { %v4348_v6 = vsel %vm4341_vm0, %v4337_v2, 0.0  ;;  %v4338_v45 = vmax.f32 %v4330_v63, 0.0 }
 0x36c   : > { %v4347_v1 = vsel %vm4341_vm0, %v4336_v47, 0.0 }
 0x36d   : > { %v5046_v57 = vpack.c.bf16 %v4347_v1, %v4346_v46  ;;  %v4349_v56 = vsel %vm4341_vm0, %v4338_v45, 0.0 }
 0x36e   : > { %v5047_v48 = vpack.c.bf16 %v4349_v56, %v4348_v6 }
 0x36f   : > { %4384 = vst [vmem:[%s6302_s14 + $0x10] sm:$0xff] %v5046_v57 }
 0x370   : > { %4385 = vst [vmem:[%s6302_s14 + $0x18] sm:$0xff] %v5047_v48 }
 0x371 PF: > { %p17_p0 = scmp.ge.s32.totalorder %s5355_s20, 4   ;;  %s6390_s15 = smov %s5292_s16 }
 0x372   : > { %s6391_s16 = smov %s5296_s17  ;;  %s6392_s17 = smov %s5365_s23 }
 0x373   : > { %s6393_s18 = smov %s5355_s20  ;;  %19 = sbr.rel (!%p17_p0) target bundleno = 5 (0x5), region = 100 }
 0x37a   :  { %4408 = vsyncpa [#allocation3], 1 }
 0x37b   :  { %4410 = vsyncpa [#allocation3 + $0x1], 1 }
 0x37c   :  { %4411 = vsyncpa [#allocation5], 1 }
 0x37d   :  { %4413 = vsyncpa [#allocation5 + $0x1], 1 }

// kernel: generator_forward.9
= control target key start
LH: loop header
LB: loop body
LE: loop exit
PB: predicated region body
PF: predicated region fallthrough
CT: control target
= control target key end

     0   :  { %vm558_vm0 = vcmask 523264   ;;  %vm890_vm1 = vcmask 31744   ;;  %s1660_s1 = inlined_call_operand.vmem [shape: bf16[576,4], index: 1, kind: input, shape index: {}]   ;;  %s1661_s0 = inlined_call_operand.vmem [shape: bf16[128,576], index: 0, kind: input, shape index: {}]   ;;  %s1662_s2 = inlined_call_operand.vmem [shape: f32[1,4], index: 2, kind: input, shape index: {}]   ;;  %s1663_s3 = inlined_call_operand.vmem [shape: f32[128,4], index: 3, kind: output, shape index: {}]  }
   0x1   :  { %v1168_v0 = vld [vmem:[%s1660_s1 + $0x40] sm:$0xff]   ;;  %v1172_v4 = vld [vmem:[%s1660_s1 + $0x48] sm:$0xff]   ;;  %v1176_v8 = vld [vmem:[%s1660_s1 + $0x50] sm:$0xff]  }
   0x2   :  { %v1169_v1 = vld [vmem:[%s1660_s1 + $0xc0] sm:$0xff]   ;;  %996 = vmatprep.subr.bf16.mxu0 %v1168_v0  ;;  %v1173_v5 = vld [vmem:[%s1660_s1 + $0xc8] sm:$0xff]   ;;  %v1177_v9 = vld [vmem:[%s1660_s1 + $0xd0] sm:$0xff]  }
   0x3   :  { %v1170_v2 = vld [vmem:[%s1660_s1] sm:$0xff]   ;;  %1060 = vmatprep.subr.bf16.mxu1 %v1169_v1  ;;  %v1174_v6 = vld [vmem:[%s1660_s1 + $0x8] sm:$0xff]   ;;  %v1178_v10 = vld [vmem:[%s1660_s1 + $0x10] sm:$0xff]  }
   0x4   :  { %v1171_v3 = vld [vmem:[%s1660_s1 + $0x80] sm:$0xff]   ;;  %997 = vmatpush3.bf16.msra.mxu0 %v1170_v2  ;;  %v1175_v7 = vld [vmem:[%s1660_s1 + $0x88] sm:$0xff]   ;;  %v1179_v11 = vld [vmem:[%s1660_s1 + $0x90] sm:$0xff]  }
   0x5   :  { %1061 = vmatpush3.bf16.msra.mxu1 %v1171_v3  ;;  %998 = vmatprep.subr.bf16.mxu0 %v1172_v4  ;;  %v1180_v12 = vld [vmem:[%s1660_s1 + $0x58] sm:$0xff]   ;;  %v1184_v16 = vld [vmem:[%s1660_s1 + $0x60] sm:$0xff]   ;;  %v1188_v20 = vld [vmem:[%s1660_s1 + $0x68] sm:$0xff]  }
   0x6   :  { %1062 = vmatprep.subr.bf16.mxu1 %v1173_v5  ;;  %v1181_v13 = vld [vmem:[%s1660_s1 + $0xd8] sm:$0xff]   ;;  %v1185_v17 = vld [vmem:[%s1660_s1 + $0xe0] sm:$0xff]   ;;  %v1189_v21 = vld [vmem:[%s1660_s1 + $0xe8] sm:$0xff]  }
   0x7   :  { %v1182_v14 = vld [vmem:[%s1660_s1 + $0x18] sm:$0xff]   ;;  %v1186_v18 = vld [vmem:[%s1660_s1 + $0x20] sm:$0xff]   ;;  %v1190_v22 = vld [vmem:[%s1660_s1 + $0x28] sm:$0xff]  }
   0x8   :  { %999 = vmatpush3.bf16.msra.mxu0 %v1174_v6  ;;  %v1183_v15 = vld [vmem:[%s1660_s1 + $0x98] sm:$0xff]   ;;  %v1187_v19 = vld [vmem:[%s1660_s1 + $0xa0] sm:$0xff]   ;;  %v1191_v23 = vld [vmem:[%s1660_s1 + $0xa8] sm:$0xff]  }
   0x9   :  { %1063 = vmatpush3.bf16.msra.mxu1 %v1175_v7  ;;  %1000 = vmatprep.subr.bf16.mxu0 %v1176_v8  ;;  %v1192_v24 = vld [vmem:[%s1660_s1 + $0x70] sm:$0xff]   ;;  %v1196_v28 = vld [vmem:[%s1660_s1 + $0x78] sm:$0xff]   ;;  %v1205_v35 = vld [vmem:[%s1661_s0 + $0xc] ss:$20 sps:$4 sm:$0xff]  }
   0xa   :  { %1064 = vmatprep.subr.bf16.mxu1 %v1177_v9  ;;  %v1193_v25 = vld [vmem:[%s1660_s1 + $0xf0] sm:$0xff]   ;;  %v1197_v29 = vld [vmem:[%s1660_s1 + $0xf8] sm:$0xff]   ;;  %v1206_v36 = vld [vmem:[%s1660_s1 + $0x100] sm:$0xff]   ;;  %712 = vmatprep.mubr.bf16.mxu1 %v1205_v35 }
   0xb   :  { %v1194_v26 = vld [vmem:[%s1660_s1 + $0x30] sm:$0xff]   ;;  %v1198_v30 = vld [vmem:[%s1660_s1 + $0x38] sm:$0xff]   ;;  %v1207_v37 = vld [vmem:[%s1661_s0 + $0x2c] ss:$20 sps:$4 sm:$0xff]  }
   0xc   :  { %1001 = vmatpush3.bf16.msra.mxu0 %v1178_v10  ;;  %v1195_v27 = vld [vmem:[%s1660_s1 + $0xb0] sm:$0xff]   ;;  %v1199_v31 = vld [vmem:[%s1660_s1 + $0xb8] sm:$0xff]   ;;  %v1219_v42 = vld [vmem:[%s1660_s1 + $0x108] sm:$0xff]  }
   0xd   :  { %1065 = vmatpush3.bf16.msra.mxu1 %v1179_v11  ;;  %1002 = vmatprep.subr.bf16.mxu0 %v1180_v12  ;;  %v1200_v32 = vld [vmem:[%s1661_s0] ss:$20 sps:$4 sm:$0xff]   ;;  %v1202_v33 = vld [vmem:[%s1661_s0 + $0x4] ss:$20 sps:$4 sm:$0xff]   ;;  %v1203_v34 = vld [vmem:[%s1661_s0 + $0x8] ss:$20 sps:$4 sm:$0xff]  }
   0xe   :  { %1066 = vmatprep.subr.bf16.mxu1 %v1181_v13  ;;  %615 = vmatprep.mubr.bf16.mxu0 %v1202_v33  ;;  %v1209_v38 = vld [vmem:[%s1661_s0 + $0x34] ss:$20 sps:$4 sm:$0xff]   ;;  %v1212_v40 = vld [vmem:[%s1661_s0 + $0x30] ss:$20 sps:$4 sm:$0xff]   ;;  %v1218_v45 = vld [vmem:[%s1661_s0 + $0x58] ss:$20 sps:$4 sm:$0xff]  }
   0xf   :  { %v1211_v39 = vld [vmem:[%s1661_s0 + $0x28] ss:$20 sps:$4 sm:$0xff]   ;;  %v1217_v44 = vld [vmem:[%s1661_s0 + $0x50] ss:$20 sps:$4 sm:$0xff]   ;;  %v1224_v50 = vld [vmem:[%s1661_s0 + $0x78] ss:$20 sps:$4 sm:$0xff]  }
  0x10   :  { %1003 = vmatpush3.bf16.msra.mxu0 %v1182_v14  ;;  %v1213_v41 = vld [vmem:[%s1661_s0 + $0x54] ss:$20 sps:$4 sm:$0xff]   ;;  %v1215_v43 = vld [vmem:[%s1661_s0 + $0x5c] ss:$20 sps:$4 sm:$0xff]   ;;  %v1222_v48 = vld [vmem:[%s1661_s0 + $0x84] ss:$20 sps:$4 sm:$0xff]  }
  0x11   :  { %1067 = vmatpush3.bf16.msra.mxu1 %v1183_v15  ;;  %1004 = vmatprep.subr.bf16.mxu0 %v1184_v16  ;;  %v1232_v46 = vld [vmem:[%s1660_s1 + $0x110] sm:$0xff]   ;;  %v1245_v49 = vld [vmem:[%s1660_s1 + $0x118] sm:$0xff]   ;;  %v1228_v53 = vld [vmem:[%s1661_s0 + $0xac] ss:$20 sps:$4 sm:$0xff]  }
  0x12   :  { %1068 = vmatprep.subr.bf16.mxu1 %v1185_v17  ;;  %v1220_v47 = vld [vmem:[%s1661_s0 + $0x7c] ss:$20 sps:$4 sm:$0xff]   ;;  %v1225_v51 = vld [vmem:[%s1661_s0 + $0x80] ss:$20 sps:$4 sm:$0xff]   ;;  %v1226_v52 = vld [vmem:[%s1661_s0 + $0xa4] ss:$20 sps:$4 sm:$0xff]  }
  0x13   :  { %v1230_v54 = vld [vmem:[%s1661_s0 + $0xa0] ss:$20 sps:$4 sm:$0xff]   ;;  %v1231_v55 = vld [vmem:[%s1661_s0 + $0xa8] ss:$20 sps:$4 sm:$0xff]   ;;  %v1238_v59 = vld [vmem:[%s1661_s0 + $0xd0] ss:$20 sps:$4 sm:$0xff]  }
  0x14   :  { %1005 = vmatpush3.bf16.msra.mxu0 %v1186_v18  ;;  %v1233_v56 = vld [vmem:[%s1661_s0 + $0xcc] ss:$20 sps:$4 sm:$0xff]   ;;  %v1235_v57 = vld [vmem:[%s1661_s0 + $0xd4] ss:$20 sps:$4 sm:$0xff]   ;;  %v1241_v61 = vld [vmem:[%s1661_s0 + $0xfc] ss:$20 sps:$4 sm:$0xff]  }
  0x15   :  { %1069 = vmatpush3.bf16.msra.mxu1 %v1187_v19  ;;  %1006 = vmatprep.subr.bf16.mxu0 %v1188_v20  ;;  %v1237_v58 = vld [vmem:[%s1661_s0 + $0xc8] ss:$20 sps:$4 sm:$0xff]   ;;  %v1243_v62 = vld [vmem:[%s1661_s0 + $0xf0] ss:$20 sps:$4 sm:$0xff]   ;;  %v1244_v63 = vld [vmem:[%s1661_s0 + $0xf8] ss:$20 sps:$4 sm:$0xff]  }
  0x16   :  { %1070 = vmatprep.subr.bf16.mxu1 %v1189_v21  ;;  %v1239_v60 = vld [vmem:[%s1661_s0 + $0xf4] ss:$20 sps:$4 sm:$0xff]   ;;  %v1246_v0 = vld [vmem:[%s1661_s0 + $0x11c] ss:$20 sps:$4 sm:$0xff]   ;;  %v1248_v1 = vld [vmem:[%s1661_s0 + $0x124] ss:$20 sps:$4 sm:$0xff]  }
  0x17   :  { %v1250_v2 = vld [vmem:[%s1661_s0 + $0x118] ss:$20 sps:$4 sm:$0xff]   ;;  %v1251_v3 = vld [vmem:[%s1661_s0 + $0x120] ss:$20 sps:$4 sm:$0xff]   ;;  %v1252_v4 = vld [vmem:[%s1661_s0 + $0x10] ss:$20 sps:$4 sm:$0xff]  }
  0x18   :  { %1007 = vmatpush3.bf16.msra.mxu0 %v1190_v22  ;;  %v1253_v5 = vld [vmem:[%s1661_s0 + $0xb0] ss:$20 sps:$4 sm:$0xff]   ;;  %v1254_v6 = vld [vmem:[%s1661_s0 + $0x38] ss:$20 sps:$4 sm:$0xff]   ;;  %v1256_v8 = vld [vmem:[%s1661_s0 + $0x60] ss:$20 sps:$4 sm:$0xff]  }
  0x19   :  { %1071 = vmatpush3.bf16.msra.mxu1 %v1191_v23  ;;  %1008 = vmatprep.subr.bf16.mxu0 %v1192_v24  ;;  %v1255_v7 = vld [vmem:[%s1661_s0 + $0xd8] ss:$20 sps:$4 sm:$0xff]   ;;  %v1257_v9 = vld [vmem:[%s1661_s0 + $0x100] ss:$20 sps:$4 sm:$0xff]   ;;  %v1258_v10 = vld [vmem:[%s1661_s0 + $0x88] ss:$20 sps:$4 sm:$0xff]  }
  0x1a   :  { %1072 = vmatprep.subr.bf16.mxu1 %v1193_v25  ;;  %v1259_v11 = vld [vmem:[%s1661_s0 + $0x128] ss:$20 sps:$4 sm:$0xff]   ;;  %v1551_v14 = vld [vmem:[%s1662_s2] ss:$0 sm:$0xff] }
  0x1c   :  { %1009 = vmatpush3.bf16.msra.mxu0 %v1194_v26 }
  0x1d   :  { %1073 = vmatpush3.bf16.msra.mxu1 %v1195_v27  ;;  %1010 = vmatprep.subr.bf16.mxu0 %v1196_v28 }
  0x1e   :  { %1074 = vmatprep.subr.bf16.mxu1 %v1197_v29 }
  0x20   :  { %1011 = vmatpush3.bf16.msra.mxu0 %v1198_v30 }
  0x21   :  { %1075 = vmatpush3.bf16.msra.mxu1 %v1199_v31  ;;  %1136 = vmatprep.subr.bf16.mxu0 %v1206_v36 }
  0x22   :  { %1160 = vmatprep.subr.bf16.mxu1 %v1206_v36 }
  0x23   :  { %616 = vmatmul.mubr.bf16.vlgmr.msra.gmra.mrb[0].mxu0 %v1200_v32 }
  0x24   :  { %713 = vmatmul.mubr.bf16.vlgmr.msra.gmra.mrb[0].mxu1 %v1203_v34  ;;  %1137 = vmatpush3.bf16.msra.mxu0 %v1206_v36 }
  0x25   :  { %1164 = vmatpush3.bf16.msra.mxu1 %v1206_v36  ;;  %623 = vmatprep.mubr.bf16.mxu0 %v1207_v37 }
  0x26   :  { %720 = vmatprep.mubr.bf16.mxu1 %v1209_v38  ;;  %1138 = vmatprep.subr.bf16.mxu0 %v1219_v42 }
  0x27   :  { %1161 = vmatprep.subr.bf16.mxu1 %v1219_v42 }
  0x28   :  { %1139 = vmatpush3.bf16.msra.mxu0 %v1219_v42 }
  0x29   :  { %1165 = vmatpush3.bf16.msra.mxu1 %v1219_v42  ;;  %1140 = vmatprep.subr.bf16.mxu0 %v1232_v46 }
  0x2a   :  { %1162 = vmatprep.subr.bf16.mxu1 %v1232_v46 }
  0x2b   :  { %624 = vmatmul.mubr.bf16.gmra.mrb[4].mxu0 %v1211_v39 }
  0x2c   :  { %721 = vmatmul.mubr.bf16.gmra.mrb[4].mxu1 %v1212_v40  ;;  %631 = vmatprep.mubr.bf16.mxu0 %v1213_v41 }
  0x2d   :  { %728 = vmatprep.mubr.bf16.mxu1 %v1215_v43  ;;  %1141 = vmatpush3.bf16.msra.mxu0 %v1232_v46 }
  0x2e   :  { %1166 = vmatpush3.bf16.msra.mxu1 %v1232_v46  ;;  %1142 = vmatprep.subr.bf16.mxu0 %v1245_v49 }
  0x2f   :  { %1163 = vmatprep.subr.bf16.mxu1 %v1245_v49 }
  0x31   :  { %1143 = vmatpush3.bf16.msra.mxu0 %v1245_v49 }
  0x32   :  { %1167 = vmatpush3.bf16.msra.mxu1 %v1245_v49 }
  0x33   :  { %632 = vmatmul.mubr.bf16.gmra.mrb[8].mxu0 %v1217_v44 }
  0x34   :  { %729 = vmatmul.mubr.bf16.gmra.mrb[8].mxu1 %v1218_v45  ;;  %639 = vmatprep.mubr.bf16.mxu0 %v1220_v47 }
  0x35   :  { %736 = vmatprep.mubr.bf16.mxu1 %v1222_v48 }
  0x3b   :  { %640 = vmatmul.mubr.bf16.gmra.mrb[12].mxu0 %v1224_v50 }
  0x3c   :  { %737 = vmatmul.mubr.bf16.gmra.mrb[12].mxu1 %v1225_v51  ;;  %647 = vmatprep.mubr.bf16.mxu0 %v1226_v52 }
  0x3d   :  { %744 = vmatprep.mubr.bf16.mxu1 %v1228_v53 }
  0x43   :  { %648 = vmatmul.mubr.bf16.gmra.mrb[16].mxu0 %v1230_v54 }
  0x44   :  { %745 = vmatmul.mubr.bf16.gmra.mrb[16].mxu1 %v1231_v55  ;;  %655 = vmatprep.mubr.bf16.mxu0 %v1233_v56 }
  0x45   :  { %752 = vmatprep.mubr.bf16.mxu1 %v1235_v57 }
  0x4b   :  { %656 = vmatmul.mubr.bf16.gmra.mrb[20].mxu0 %v1237_v58 }
  0x4c   :  { %753 = vmatmul.mubr.bf16.gmra.mrb[20].mxu1 %v1238_v59  ;;  %663 = vmatprep.mubr.bf16.mxu0 %v1239_v60 }
  0x4d   :  { %760 = vmatprep.mubr.bf16.mxu1 %v1241_v61 }
  0x53   :  { %664 = vmatmul.mubr.bf16.gmra.mrb[24].mxu0 %v1243_v62 }
  0x54   :  { %761 = vmatmul.mubr.bf16.gmra.mrb[24].mxu1 %v1244_v63  ;;  %671 = vmatprep.mubr.bf16.mxu0 %v1246_v0 }
  0x55   :  { %768 = vmatprep.mubr.bf16.mxu1 %v1248_v1 }
  0x5b   :  { %672 = vmatmul.mubr.bf16.gmra.mrb[28].mxu0 %v1250_v2 }
  0x5c   :  { %769 = vmatmul.mubr.bf16.gmra.mrb[28].mxu1 %v1251_v3  ;;  %1144 = vmatprep.mubr.msk.bf16.mxu0 %vm558_vm0, %v1252_v4 }
  0x5d   :  { %1152 = vmatprep.mubr.msk.bf16.mxu1 %vm558_vm0, %v1253_v5 }
  0x63   :  { %1145 = vmatmul.mubr.msk.bf16.vlgmr.msra.gmra.mrb[32].mxu0 %vm558_vm0, %v1254_v6 }
  0x64   :  { %1153 = vmatmul.mubr.msk.bf16.vlgmr.msra.gmra.mrb[32].mxu1 %vm558_vm0, %v1255_v7  ;;  %1148 = vmatprep.mubr.msk.bf16.mxu0 %vm558_vm0, %v1256_v8 }
  0x65   :  { %1156 = vmatprep.mubr.msk.bf16.mxu1 %vm558_vm0, %v1257_v9 }
  0x6b   :  { %1149 = vmatmul.mubr.msk.bf16.gmra.mrb[36].mxu0 %vm558_vm0, %v1258_v10 }
  0x6c   :  { %1157 = vmatmul.mubr.msk.bf16.gmra.mrb[36].mxu1 %vm558_vm0, %v1259_v11 }
  0xf6   :  { %v1012_v12 = vpop.f32.mrb[0].mxu0 }
  0xf7   :  { %v1076_v13 = vpop.f32.mrb[0].mxu1  ;;  %v1013_v15 = vpop.f32.mrb[1].mxu0 }
  0xf8   :  { %v1014_v16 = vadd.f32 %v1013_v15, %v1012_v12  ;;  %v1077_v17 = vpop.f32.mrb[1].mxu1  ;;  %v1015_v18 = vpop.f32.mrb[2].mxu0 }
  0xf9   :  { %v1078_v19 = vadd.f32 %v1077_v17, %v1076_v13  ;;  %v1079_v20 = vpop.f32.mrb[2].mxu1  ;;  %v1016_v21 = vpop.f32.mrb[3].mxu0 }
  0xfa   :  { %v618_v22 = vadd.f32 %v1014_v16, %v1551_v14  ;;  %v1017_v23 = vadd.f32 %v1016_v21, %v1015_v18  ;;  %v1080_v24 = vpop.f32.mrb[3].mxu1 }
  0xfb   :  { %v1081_v25 = vadd.f32 %v1080_v24, %v1079_v20 }
  0xfc   :  { %v621_v26 = vadd.f32 %v1017_v23, %v1551_v14  ;;  %v1555_v27 = vadd.f32 %v1078_v19, %v618_v22 }
  0xfe   :  { %v1018_v28 = vpop.f32.mrb[4].mxu0  ;;  %v1557_v29 = vadd.f32 %v1081_v25, %v621_v26 }
  0xff   :  { %v1082_v30 = vpop.f32.mrb[4].mxu1  ;;  %v1019_v31 = vpop.f32.mrb[5].mxu0 }
 0x100   :  { %v1020_v32 = vadd.f32 %v1019_v31, %v1018_v28  ;;  %v1083_v33 = vpop.f32.mrb[5].mxu1  ;;  %v1021_v34 = vpop.f32.mrb[6].mxu0 }
 0x101   :  { %v1084_v35 = vadd.f32 %v1083_v33, %v1082_v30  ;;  %v1085_v36 = vpop.f32.mrb[6].mxu1  ;;  %v1022_v37 = vpop.f32.mrb[7].mxu0 }
 0x102   :  { %v626_v38 = vadd.f32 %v1020_v32, %v1551_v14  ;;  %v1023_v39 = vadd.f32 %v1022_v37, %v1021_v34  ;;  %v1086_v40 = vpop.f32.mrb[7].mxu1 }
 0x103   :  { %v1087_v41 = vadd.f32 %v1086_v40, %v1085_v36 }
 0x104   :  { %v629_v42 = vadd.f32 %v1023_v39, %v1551_v14  ;;  %v1561_v43 = vadd.f32 %v1084_v35, %v626_v38 }
 0x106   :  { %v1024_v44 = vpop.f32.mrb[8].mxu0  ;;  %v1563_v45 = vadd.f32 %v1087_v41, %v629_v42 }
 0x107   :  { %v1088_v46 = vpop.f32.mrb[8].mxu1  ;;  %v1025_v47 = vpop.f32.mrb[9].mxu0 }
 0x108   :  { %v1026_v48 = vadd.f32 %v1025_v47, %v1024_v44  ;;  %v1089_v49 = vpop.f32.mrb[9].mxu1  ;;  %v1027_v50 = vpop.f32.mrb[10].mxu0 }
 0x109   :  { %v1090_v51 = vadd.f32 %v1089_v49, %v1088_v46  ;;  %v1091_v52 = vpop.f32.mrb[10].mxu1  ;;  %v1028_v53 = vpop.f32.mrb[11].mxu0 }
 0x10a   :  { %v634_v54 = vadd.f32 %v1026_v48, %v1551_v14  ;;  %v1029_v55 = vadd.f32 %v1028_v53, %v1027_v50  ;;  %v1092_v56 = vpop.f32.mrb[11].mxu1 }
 0x10b   :  { %v1093_v57 = vadd.f32 %v1092_v56, %v1091_v52 }
 0x10c   :  { %v637_v58 = vadd.f32 %v1029_v55, %v1551_v14  ;;  %v1567_v59 = vadd.f32 %v1090_v51, %v634_v54 }
 0x10e   :  { %v1030_v60 = vpop.f32.mrb[12].mxu0  ;;  %v1569_v61 = vadd.f32 %v1093_v57, %v637_v58 }
 0x10f   :  { %v1094_v62 = vpop.f32.mrb[12].mxu1  ;;  %v1031_v63 = vpop.f32.mrb[13].mxu0 }
 0x110   :  { %v1032_v0 = vadd.f32 %v1031_v63, %v1030_v60  ;;  %v1095_v1 = vpop.f32.mrb[13].mxu1  ;;  %v1033_v2 = vpop.f32.mrb[14].mxu0 }
 0x111   :  { %v1096_v3 = vadd.f32 %v1095_v1, %v1094_v62  ;;  %v1097_v4 = vpop.f32.mrb[14].mxu1  ;;  %v1034_v5 = vpop.f32.mrb[15].mxu0 }
 0x112   :  { %v642_v6 = vadd.f32 %v1032_v0, %v1551_v14  ;;  %v1035_v7 = vadd.f32 %v1034_v5, %v1033_v2  ;;  %v1098_v8 = vpop.f32.mrb[15].mxu1 }
 0x113   :  { %v1099_v9 = vadd.f32 %v1098_v8, %v1097_v4 }
 0x114   :  { %v645_v10 = vadd.f32 %v1035_v7, %v1551_v14  ;;  %v1573_v11 = vadd.f32 %v1096_v3, %v642_v6 }
 0x116   :  { %v1036_v12 = vpop.f32.mrb[16].mxu0  ;;  %v1575_v13 = vadd.f32 %v1099_v9, %v645_v10 }
 0x117   :  { %v1100_v15 = vpop.f32.mrb[16].mxu1  ;;  %v1037_v16 = vpop.f32.mrb[17].mxu0 }
 0x118   :  { %v1038_v17 = vadd.f32 %v1037_v16, %v1036_v12  ;;  %v1101_v18 = vpop.f32.mrb[17].mxu1  ;;  %v1039_v19 = vpop.f32.mrb[18].mxu0 }
 0x119   :  { %v1102_v20 = vadd.f32 %v1101_v18, %v1100_v15  ;;  %v1103_v21 = vpop.f32.mrb[18].mxu1  ;;  %v1040_v22 = vpop.f32.mrb[19].mxu0 }
 0x11a   :  { %v650_v23 = vadd.f32 %v1038_v17, %v1551_v14  ;;  %v1041_v24 = vadd.f32 %v1040_v22, %v1039_v19  ;;  %v1104_v25 = vpop.f32.mrb[19].mxu1 }
 0x11b   :  { %v1105_v26 = vadd.f32 %v1104_v25, %v1103_v21 }
 0x11c   :  { %v653_v28 = vadd.f32 %v1041_v24, %v1551_v14  ;;  %v747_v30 = vadd.f32 %v1102_v20, %v650_v23 }
 0x11e   :  { %v1042_v31 = vpop.f32.mrb[20].mxu0  ;;  %v1579_v32 = vadd.f32 %v1105_v26, %v653_v28 }
 0x11f   :  { %v1106_v33 = vpop.f32.mrb[20].mxu1  ;;  %v1043_v34 = vpop.f32.mrb[21].mxu0 }
 0x120   :  { %v1044_v35 = vadd.f32 %v1043_v34, %v1042_v31  ;;  %v1107_v36 = vpop.f32.mrb[21].mxu1  ;;  %v1045_v37 = vpop.f32.mrb[22].mxu0 }
 0x121   :  { %v1108_v38 = vadd.f32 %v1107_v36, %v1106_v33  ;;  %v1109_v39 = vpop.f32.mrb[22].mxu1  ;;  %v1046_v40 = vpop.f32.mrb[23].mxu0 }
 0x122   :  { %v658_v41 = vadd.f32 %v1044_v35, %v1551_v14  ;;  %v1047_v42 = vadd.f32 %v1046_v40, %v1045_v37  ;;  %v1110_v44 = vpop.f32.mrb[23].mxu1 }
 0x123   :  { %v1111_v46 = vadd.f32 %v1110_v44, %v1109_v39 }
 0x124   :  { %v661_v47 = vadd.f32 %v1047_v42, %v1551_v14  ;;  %v755_v48 = vadd.f32 %v1108_v38, %v658_v41 }
 0x126   :  { %v1048_v49 = vpop.f32.mrb[24].mxu0  ;;  %v758_v50 = vadd.f32 %v1111_v46, %v661_v47 }
 0x127   :  { %v1112_v51 = vpop.f32.mrb[24].mxu1  ;;  %v1049_v52 = vpop.f32.mrb[25].mxu0 }
 0x128   :  { %v1050_v53 = vadd.f32 %v1049_v52, %v1048_v49  ;;  %v1113_v54 = vpop.f32.mrb[25].mxu1  ;;  %v1051_v55 = vpop.f32.mrb[26].mxu0 }
 0x129   :  { %v1114_v56 = vadd.f32 %v1113_v54, %v1112_v51  ;;  %v1115_v57 = vpop.f32.mrb[26].mxu1  ;;  %v1052_v58 = vpop.f32.mrb[27].mxu0 }
 0x12a   :  { %v666_v60 = vadd.f32 %v1050_v53, %v1551_v14  ;;  %v1053_v62 = vadd.f32 %v1052_v58, %v1051_v55  ;;  %v1116_v63 = vpop.f32.mrb[27].mxu1 }
 0x12b   :  { %v1117_v0 = vadd.f32 %v1116_v63, %v1115_v57 }
 0x12c   :  { %v669_v1 = vadd.f32 %v1053_v62, %v1551_v14  ;;  %v763_v2 = vadd.f32 %v1114_v56, %v666_v60 }
 0x12e   :  { %v1054_v3 = vpop.f32.mrb[28].mxu0  ;;  %v766_v4 = vadd.f32 %v1117_v0, %v669_v1 }
 0x12f   :  { %v1118_v5 = vpop.f32.mrb[28].mxu1  ;;  %v1055_v6 = vpop.f32.mrb[29].mxu0 }
 0x130   :  { %v1056_v7 = vadd.f32 %v1055_v6, %v1054_v3  ;;  %v1119_v8 = vpop.f32.mrb[29].mxu1  ;;  %v1057_v9 = vpop.f32.mrb[30].mxu0 }
 0x131   :  { %v1120_v10 = vadd.f32 %v1119_v8, %v1118_v5  ;;  %v1121_v12 = vpop.f32.mrb[30].mxu1  ;;  %v1058_v15 = vpop.f32.mrb[31].mxu0 }
 0x132   :  { %v674_v16 = vadd.f32 %v1056_v7, %v1551_v14  ;;  %v1059_v17 = vadd.f32 %v1058_v15, %v1057_v9  ;;  %v1122_v18 = vpop.f32.mrb[31].mxu1 }
 0x133   :  { %v1123_v19 = vadd.f32 %v1122_v18, %v1121_v12 }
 0x134   :  { %v677_v20 = vadd.f32 %v1059_v17, %v1551_v14  ;;  %v771_v21 = vadd.f32 %v1120_v10, %v674_v16 }
 0x136   :  { %v1146_v22 = vpop.f32.mrb[32].mxu0  ;;  %v774_v23 = vadd.f32 %v1123_v19, %v677_v20 }
 0x137   :  { %v820_v24 = vadd.f32 %v1146_v22, %v1561_v43  ;;  %v1154_v25 = vpop.f32.mrb[32].mxu1  ;;  %v811_v26 = vpop.f32.mrb[33].mxu0 }
 0x138   :  { %v852_v28 = vadd.f32 %v1154_v25, %v755_v48  ;;  %v812_v31 = vadd.f32 %v811_v26, %v1555_v27  ;;  %v843_v33 = vpop.f32.mrb[33].mxu1  ;;  %v1147_v34 = vpop.f32.mrb[34].mxu0 }
 0x139   :  { %1260 = vtanh.f32 %v820_v24  ;;  %v844_v35 = vadd.f32 %v843_v33, %v747_v30  ;;  %v823_v36 = vadd.f32 %v1147_v34, %v1563_v45  ;;  %v1155_v37 = vpop.f32.mrb[34].mxu1  ;;  %v814_v38 = vpop.f32.mrb[35].mxu0 }
 0x13a   :  { %1262 = vtanh.f32 %v852_v28  ;;  %v855_v14 = vadd.f32 %v1155_v37, %v758_v50  ;;  %v815_v39 = vadd.f32 %v814_v38, %v1557_v29  ;;  %v846_v40 = vpop.f32.mrb[35].mxu1 }
 0x13b   :  { %1264 = vtanh.f32 %v812_v31  ;;  %v847_v43 = vadd.f32 %v846_v40, %v1579_v32 }
 0x13c   :  { %1266 = vtanh.f32 %v844_v35 }
 0x13d   :  { %1268 = vtanh.f32 %v823_v36 }
 0x13e   :  { %1270 = vtanh.f32 %v855_v14  ;;  %v1150_v27 = vpop.f32.mrb[36].mxu0 }
 0x13f   :  { %1272 = vtanh.f32 %v815_v39  ;;  %v836_v41 = vadd.f32 %v1150_v27, %v1573_v11  ;;  %v1158_v30 = vpop.f32.mrb[36].mxu1  ;;  %v827_v42 = vpop.f32.mrb[37].mxu0 }
 0x140   :  { %1274 = vtanh.f32 %v847_v43  ;;  %v868_v45 = vadd.f32 %v1158_v30, %v771_v21  ;;  %v828_v44 = vadd.f32 %v827_v42, %v1567_v59  ;;  %v859_v46 = vpop.f32.mrb[37].mxu1  ;;  %v1151_v47 = vpop.f32.mrb[38].mxu0 }
 0x141   :  { %1276 = vtanh.f32 %v836_v41  ;;  %v860_v29 = vadd.f32 %v859_v46, %v763_v2  ;;  %v839_v32 = vadd.f32 %v1151_v47, %v1575_v13  ;;  %v1159_v48 = vpop.f32.mrb[38].mxu1  ;;  %v830_v49 = vpop.f32.mrb[39].mxu0 }
 0x142   :  { %1278 = vtanh.f32 %v868_v45  ;;  %v871_v50 = vadd.f32 %v1159_v48, %v774_v23  ;;  %v831_v51 = vadd.f32 %v830_v49, %v1569_v61  ;;  %v862_v11 = vpop.f32.mrb[39].mxu1 }
 0x143   :  { %v1261_v52 = vpop.eup %1260  ;;  %1280 = vtanh.f32 %v828_v44  ;;  %v863_v53 = vadd.f32 %v862_v11, %v766_v4 }
 0x144   :  { %v1263_v54 = vpop.eup %1262  ;;  %893 = vst.msk [vmem:[%s1663_s3 + $0x10] sm:$0xff] %vm890_vm1, %v1261_v52  ;;  %1282 = vtanh.f32 %v860_v29 }
 0x145   :  { %v1265_v59 = vpop.eup %1264  ;;  %901 = vst.msk [vmem:[%s1663_s3 + $0x50] sm:$0xff] %vm890_vm1, %v1263_v54  ;;  %1284 = vtanh.f32 %v839_v32 }
 0x146   :  { %v1267_v13 = vpop.eup %1266  ;;  %891 = vst.msk [vmem:[%s1663_s3] sm:$0xff] %vm890_vm1, %v1265_v59  ;;  %1286 = vtanh.f32 %v871_v50 }
 0x147   :  { %v1269_v61 = vpop.eup %1268  ;;  %899 = vst.msk [vmem:[%s1663_s3 + $0x40] sm:$0xff] %vm890_vm1, %v1267_v13  ;;  %1288 = vtanh.f32 %v831_v51 }
 0x148   :  { %v1271_v55 = vpop.eup %1270  ;;  %894 = vst.msk [vmem:[%s1663_s3 + $0x18] sm:$0xff] %vm890_vm1, %v1269_v61  ;;  %1290 = vtanh.f32 %v863_v53 }
 0x149   :  { %v1273_v56 = vpop.eup %1272  ;;  %902 = vst.msk [vmem:[%s1663_s3 + $0x58] sm:$0xff] %vm890_vm1, %v1271_v55 }
 0x14a   :  { %v1275_v57 = vpop.eup %1274  ;;  %892 = vst.msk [vmem:[%s1663_s3 + $0x8] sm:$0xff] %vm890_vm1, %v1273_v56 }
 0x14b   :  { %v1277_v58 = vpop.eup %1276  ;;  %900 = vst.msk [vmem:[%s1663_s3 + $0x48] sm:$0xff] %vm890_vm1, %v1275_v57 }
 0x14c   :  { %v1279_v60 = vpop.eup %1278  ;;  %897 = vst.msk [vmem:[%s1663_s3 + $0x30] sm:$0xff] %vm890_vm1, %v1277_v58 }
 0x14d   :  { %v1281_v62 = vpop.eup %1280  ;;  %905 = vst.msk [vmem:[%s1663_s3 + $0x70] sm:$0xff] %vm890_vm1, %v1279_v60 }
 0x14e   :  { %v1283_v63 = vpop.eup %1282  ;;  %895 = vst.msk [vmem:[%s1663_s3 + $0x20] sm:$0xff] %vm890_vm1, %v1281_v62 }
 0x14f   :  { %v1285_v0 = vpop.eup %1284  ;;  %903 = vst.msk [vmem:[%s1663_s3 + $0x60] sm:$0xff] %vm890_vm1, %v1283_v63 }
 0x150   :  { %v1287_v1 = vpop.eup %1286  ;;  %898 = vst.msk [vmem:[%s1663_s3 + $0x38] sm:$0xff] %vm890_vm1, %v1285_v0 }
 0x151   :  { %v1289_v2 = vpop.eup %1288  ;;  %906 = vst.msk [vmem:[%s1663_s3 + $0x78] sm:$0xff] %vm890_vm1, %v1287_v1 }
 0x152   :  { %v1291_v3 = vpop.eup %1290  ;;  %896 = vst.msk [vmem:[%s1663_s3 + $0x28] sm:$0xff] %vm890_vm1, %v1289_v2 }
 0x153   :  { %904 = vst.msk [vmem:[%s1663_s3 + $0x68] sm:$0xff] %vm890_vm1, %v1291_v3 }

</bundles_post_ra>
